<compile_context>
chip_gen: v7x
topology: tpu7x:2x2x1
jax: 0.10.0
libtpu: 0.0.40
codegen_flags: <defaults>
</compile_context>

<pallas_src>
import math

import jax
import jax.numpy as jnp
from jax import lax
from jax.experimental import pallas as pl
from jax.experimental.pallas import tpu as pltpu

PI = 0.5
SIGMA1 = 0.2
SIGMA2 = 0.001  # unused by the (faithful) mixture log_prob, kept for parity

LOG_SQRT_2PI = math.log(math.sqrt(2.0 * math.pi))
# constants of the collapsed mixture log-prob:  logp1 = C_MIX - v^2 * INV_2S1SQ
C_MIX = -math.log(SIGMA1) - LOG_SQRT_2PI
INV_2S1SQ = 1.0 / (2.0 * SIGMA1 * SIGMA1)


def _softplus(rho):
    # stable softplus; identical to log1p(exp(rho)) for rho <= 0 (the init range)
    return jnp.maximum(rho, 0.0) + jnp.log1p(jnp.exp(-jnp.abs(rho)))


def _bayes_linear_kernel(x_ref, w_mu_ref, w_rho_ref, eps_w_ref,
                         b_mu_ref, b_rho_ref, eps_b_ref,
                         y_ref, lp_ref, lvp_ref, acc_ref):
    n = pl.program_id(0)                 # output-column (dim_out) tile
    k = pl.program_id(1)                 # reduction (dim_in) tile, innermost
    nk = pl.num_programs(1)

    # ---- reparameterized weight sample for this (TK, TN) tile ----
    w_mu = w_mu_ref[...]                 # (TK, TN)
    w_rho = w_rho_ref[...]
    eps_w = eps_w_ref[...]
    w_sigma = _softplus(w_rho)
    w = w_mu + w_sigma * eps_w

    # ---- matmul accumulation: y_tile += x_tile @ w_tile (canonical K,N RHS) ----
    @pl.when(k == 0)
    def _init_acc():
        acc_ref[...] = jnp.zeros_like(acc_ref)

    acc_ref[...] += jnp.dot(x_ref[...], w, preferred_element_type=jnp.float32)

    # ---- scalar KL accumulators (resident (1,1) output blocks) ----
    @pl.when(jnp.logical_and(n == 0, k == 0))
    def _init_scalars():
        lp_ref[...] = jnp.zeros_like(lp_ref)
        lvp_ref[...] = jnp.zeros_like(lvp_ref)

    # log_prior: both mixture components use SIGMA1 (reproduced source bug), so
    # log(PI*p1 + (1-PI)*p2) == logp1 exactly -> sum logp1 directly (no exp/log).
    lp_ref[...] += jnp.sum(C_MIX - (w * w) * INV_2S1SQ, keepdims=True)
    # log q(w|theta): (w - mu) == sigma*eps, so the quadratic term is 0.5*eps^2.
    lvp_ref[...] += jnp.sum(-LOG_SQRT_2PI - jnp.log(w_sigma)
                            - 0.5 * (eps_w * eps_w), keepdims=True)

    # ---- last K step: sample bias tile, finalize y and the bias KL terms ----
    @pl.when(k == nk - 1)
    def _finalize():
        b_mu = b_mu_ref[...]             # (1, TN)
        b_rho = b_rho_ref[...]
        eps_b = eps_b_ref[...]
        b_sigma = _softplus(b_rho)
        b = b_mu + b_sigma * eps_b

        y_ref[...] = (acc_ref[...] + b).astype(y_ref.dtype)

        lp_ref[...] += jnp.sum(C_MIX - (b * b) * INV_2S1SQ, keepdims=True)
        lvp_ref[...] += jnp.sum(-LOG_SQRT_2PI - jnp.log(b_sigma)
                                - 0.5 * (eps_b * eps_b), keepdims=True)


def _pick_tile(dim, candidates=(512, 256, 128)):
    """Largest lane-friendly tile that divides dim; else a single full block."""
    for t in candidates:
        if dim % t == 0:
            return t
    return dim


def bayesian_linear_forward(x, w_mu, w_rho, b_mu, b_rho, eps_w, eps_b):
    """Training / sample=True path of BayesianLinear.forward.

    Returns (y, log_prior, log_variational_posterior).
    """
    B, dim_in = x.shape
    dim_out = w_mu.shape[0]

    # One-time layout change: (dim_out, dim_in) -> (dim_in, dim_out) so the MXU
    # gets a plain (B,K)@(K,N) matmul (no per-call transpose of the freshly
    # sampled w) and the y output last dim (dim_out) is lane-dense.
    w_mu_t = w_mu.T
    w_rho_t = w_rho.T
    eps_w_t = eps_w.T
    b_mu2 = b_mu.reshape(1, dim_out)
    b_rho2 = b_rho.reshape(1, dim_out)
    eps_b2 = eps_b.reshape(1, dim_out)

    TN = _pick_tile(dim_out)
    TK = _pick_tile(dim_in)
    grid = (dim_out // TN, dim_in // TK)   # K (reduction) axis last

    w_spec = pl.BlockSpec((TK, TN), lambda n, k: (k, n))
    b_spec = pl.BlockSpec((1, TN), lambda n, k: (0, n))

    grid_spec = pltpu.PrefetchScalarGridSpec(
        num_scalar_prefetch=0,
        grid=grid,
        in_specs=[
            pl.BlockSpec((B, TK), lambda n, k: (0, k)),   # x
            w_spec, w_spec, w_spec,                       # w_mu.T, w_rho.T, eps_w.T
            b_spec, b_spec, b_spec,                       # b_mu, b_rho, eps_b
        ],
        out_specs=(
            pl.BlockSpec((B, TN), lambda n, k: (0, n)),   # y (resident across k)
            pl.BlockSpec((1, 1), lambda n, k: (0, 0)),    # log_prior accumulator
            pl.BlockSpec((1, 1), lambda n, k: (0, 0)),    # log_posterior accumulator
        ),
        scratch_shapes=[pltpu.VMEM((B, TN), jnp.float32)],  # f32 y accumulator
    )

    cost = pl.CostEstimate(
        flops=2 * B * dim_in * dim_out + 12 * dim_in * dim_out,
        transcendentals=3 * dim_in * dim_out + 3 * dim_out,
        bytes_accessed=4 * (3 * dim_in * dim_out + B * dim_in
                            + B * dim_out + 3 * dim_out),
    )

    # NOTE: grid axes intentionally left with default (sequential/"arbitrary")
    # semantics: the (1,1) KL accumulators are shared across the N axis, so it
    # must not be sharded across TensorCores. (To exploit v7x's 2 TCs, emit
    # per-N-tile partial sums and reduce them in the wrapper instead.)
    y, lp, lvp = pl.pallas_call(
        _bayes_linear_kernel,
        out_shape=(
            jax.ShapeDtypeStruct((B, dim_out), x.dtype),
            jax.ShapeDtypeStruct((1, 1), jnp.float32),
            jax.ShapeDtypeStruct((1, 1), jnp.float32),
        ),
        grid_spec=grid_spec,
        cost_estimate=cost,
    )(x, w_mu_t, w_rho_t, eps_w_t, b_mu2, b_rho2, eps_b2)

    return y, lp[0, 0], lvp[0, 0]


def _reference_forward(x, w_mu, w_rho, b_mu, b_rho, eps_w, eps_b):
    """Pure-JAX reference mirroring the PyTorch forward (sample=True)."""
    w_sigma = jnp.log1p(jnp.exp(w_rho))
    b_sigma = jnp.log1p(jnp.exp(b_rho))
    w = w_mu + w_sigma * eps_w
    b = b_mu + b_sigma * eps_b

    def mix_lp(v):
        logp = -jnp.log(SIGMA1) - LOG_SQRT_2PI - v * v / (2.0 * SIGMA1 ** 2)
        p = jnp.exp(logp)
        return jnp.sum(jnp.log(PI * p + (1.0 - PI) * p))

    def gauss_lp(v, mu, sigma):
        return jnp.sum(-LOG_SQRT_2PI - jnp.log(sigma)
                       - (v - mu) ** 2 / (2.0 * sigma ** 2))

    y = jnp.dot(x, w.T, precision=lax.Precision.HIGHEST) + b
    log_prior = mix_lp(w) + mix_lp(b)
    log_post = gauss_lp(w, w_mu, w_sigma) + gauss_lp(b, b_mu, b_sigma)
    return y, log_prior, log_post


if __name__ == "__main__":
    key = jax.random.PRNGKey(0)
    k_x, k_wmu, k_wrho, k_bmu, k_brho, k_ew, k_eb = jax.random.split(key, 7)

    # Small but TPU-friendly shapes (multiples of 8 / 128) so the grid and
    # lane-dense stores are actually exercised: grid = (2, 2) with 128x128 tiles.
    batch, dim_in, dim_out = 8, 256, 256

    # Parameter init mirroring the PyTorch __init__:
    #   w_mu ~ U[-0.2, 0.2],  w_rho ~ U[-5, -4]   (same for bias)
    w_mu = -0.4 * jax.random.uniform(k_wmu, (dim_out, dim_in), jnp.float32) + 0.2
    w_rho = -1.0 * jax.random.uniform(k_wrho, (dim_out, dim_in), jnp.float32) - 4.0
    b_mu = -0.4 * jax.random.uniform(k_bmu, (dim_out,), jnp.float32) + 0.2
    b_rho = -1.0 * jax.random.uniform(k_brho, (dim_out,), jnp.float32) - 4.0

    x = jax.random.normal(k_x, (batch, dim_in), jnp.float32)
    eps_w = jax.random.normal(k_ew, (dim_out, dim_in), jnp.float32)
    eps_b = jax.random.normal(k_eb, (dim_out,), jnp.float32)

    fwd = jax.jit(bayesian_linear_forward)
    y, log_prior, log_post = jax.block_until_ready(
        fwd(x, w_mu, w_rho, b_mu, b_rho, eps_w, eps_b))

    y_ref, lp_ref, lvp_ref = _reference_forward(
        x, w_mu, w_rho, b_mu, b_rho, eps_w, eps_b)

    assert jnp.allclose(y, y_ref, atol=1e-3, rtol=1e-3), \
        float(jnp.max(jnp.abs(y - y_ref)))
    assert jnp.allclose(log_prior, lp_ref, atol=1e-2, rtol=2e-3), \
        (float(log_prior), float(lp_ref))
    assert jnp.allclose(log_post, lvp_ref, atol=1e-2, rtol=2e-3), \
        (float(log_post), float(lvp_ref))

    print("KERNEL_OK")
</pallas_src>

<mosaic_0001>
module attributes {stable_mosaic.version = 11 : i64} {
  func.func @_bayes_linear_kernel(%arg0: i32, %arg1: i32, %arg2: memref<8x256xf32, #tpu.memory_space<vmem>>, %arg3: memref<256x256xf32, #tpu.memory_space<vmem>>, %arg4: memref<256x256xf32, #tpu.memory_space<vmem>>, %arg5: memref<256x256xf32, #tpu.memory_space<vmem>>, %arg6: memref<1x256xf32, #tpu.memory_space<vmem>>, %arg7: memref<1x256xf32, #tpu.memory_space<vmem>>, %arg8: memref<1x256xf32, #tpu.memory_space<vmem>>, %arg9: memref<8x256xf32, #tpu.memory_space<vmem>>, %arg10: memref<1x1xf32, #tpu.memory_space<vmem>>, %arg11: memref<1x1xf32, #tpu.memory_space<vmem>>, %arg12: memref<8x256xf32, #tpu.memory_space<vmem>>) attributes {dimension_semantics = [#tpu.dimension_semantics<arbitrary>, #tpu.dimension_semantics<arbitrary>], iteration_bounds = array<i64: 1, 1>, scalar_prefetch = 0 : i64, scratch_operands = 1 : i64, tpu.core_type = #tpu.core_type<tc>, window_params = [{transform_indices = @transform_0, window_bounds = array<i64: 8, 256>}, {transform_indices = @transform_1, window_bounds = array<i64: 256, 256>}, {transform_indices = @transform_2, window_bounds = array<i64: 256, 256>}, {transform_indices = @transform_3, window_bounds = array<i64: 256, 256>}, {transform_indices = @transform_4, window_bounds = array<i64: 1, 256>}, {transform_indices = @transform_5, window_bounds = array<i64: 1, 256>}, {transform_indices = @transform_6, window_bounds = array<i64: 1, 256>}, {transform_indices = @transform_7, window_bounds = array<i64: 8, 256>}, {pipeline_mode = #tpu.pipeline_mode<synchronous>, transform_indices = @transform_8, window_bounds = array<i64: 1, 1>}, {pipeline_mode = #tpu.pipeline_mode<synchronous>, transform_indices = @transform_9, window_bounds = array<i64: 1, 1>}]} {
    %c0 = arith.constant 0 : index
    %c0_0 = arith.constant 0 : index
    %0 = vector.load %arg3[%c0, %c0_0] : memref<256x256xf32, #tpu.memory_space<vmem>>, vector<256x256xf32>
    %c0_1 = arith.constant 0 : index
    %c0_2 = arith.constant 0 : index
    %1 = vector.load %arg4[%c0_1, %c0_2] : memref<256x256xf32, #tpu.memory_space<vmem>>, vector<256x256xf32>
    %c0_3 = arith.constant 0 : index
    %c0_4 = arith.constant 0 : index
    %2 = vector.load %arg5[%c0_3, %c0_4] : memref<256x256xf32, #tpu.memory_space<vmem>>, vector<256x256xf32>
    %cst = arith.constant 0.000000e+00 : f32
    %3 = vector.broadcast %cst : f32 to vector<256x256xf32>
    %4 = arith.maximumf %1, %3 : vector<256x256xf32>
    %5 = math.absf %1 : vector<256x256xf32>
    %cst_5 = arith.constant 0.000000e+00 : f32
    %6 = vector.broadcast %cst_5 : f32 to vector<256x256xf32>
    %7 = arith.subf %6, %5 : vector<256x256xf32>
    %8 = math.exp %7 : vector<256x256xf32>
    %9 = math.log1p %8 : vector<256x256xf32>
    %10 = arith.addf %4, %9 : vector<256x256xf32>
    %11 = arith.mulf %10, %2 : vector<256x256xf32>
    %12 = arith.addf %0, %11 : vector<256x256xf32>
    %c0_i32 = arith.constant 0 : i32
    %13 = arith.cmpi eq, %arg1, %c0_i32 : i32
    %14 = arith.extui %13 : i1 to i32
    %c0_i32_6 = arith.constant 0 : i32
    %15 = arith.cmpi ne, %14, %c0_i32_6 : i32
    scf.if %15 {
      %cst_33 = arith.constant 0.000000e+00 : f32
      %57 = vector.broadcast %cst_33 : f32 to vector<8x256xf32>
      %c0_34 = arith.constant 0 : index
      %c0_35 = arith.constant 0 : index
      %58 = vector.load %arg12[%c0_34, %c0_35] : memref<8x256xf32, #tpu.memory_space<vmem>>, vector<8x256xf32>
      tpu.vector_store %arg12[%c0_34, %c0_35], %57 {strides = array<i32>} : memref<8x256xf32, #tpu.memory_space<vmem>>, vector<8x256xf32>,
    } else {
    }
    %c0_7 = arith.constant 0 : index
    %c0_8 = arith.constant 0 : index
    %16 = vector.load %arg12[%c0_7, %c0_8] : memref<8x256xf32, #tpu.memory_space<vmem>>, vector<8x256xf32>
    %c0_9 = arith.constant 0 : index
    %c0_10 = arith.constant 0 : index
    %17 = vector.load %arg2[%c0_9, %c0_10] : memref<8x256xf32, #tpu.memory_space<vmem>>, vector<8x256xf32>
    %cst_11 = arith.constant dense<0.000000e+00> : vector<8x256xf32>
    %18 = tpu.matmul %17, %12, %cst_11 {dimension_numbers = #tpu.dot_dimension_numbers<[1], [0], [0], [1], [0, 0, 1, 1], [], []>} : vector<8x256xf32>, vector<256x256xf32>, vector<8x256xf32> -> vector<8x256xf32>
    %19 = arith.addf %16, %18 : vector<8x256xf32>
    %c0_12 = arith.constant 0 : index
    %c0_13 = arith.constant 0 : index
    %20 = vector.load %arg12[%c0_12, %c0_13] : memref<8x256xf32, #tpu.memory_space<vmem>>, vector<8x256xf32>
    tpu.vector_store %arg12[%c0_12, %c0_13], %19 {strides = array<i32>} : memref<8x256xf32, #tpu.memory_space<vmem>>, vector<8x256xf32>,
    %c0_i32_14 = arith.constant 0 : i32
    %21 = arith.cmpi eq, %arg0, %c0_i32_14 : i32
    %c0_i32_15 = arith.constant 0 : i32
    %22 = arith.cmpi eq, %arg1, %c0_i32_15 : i32
    %23 = arith.andi %21, %22 : i1
    %24 = arith.extui %23 : i1 to i32
    %c0_i32_16 = arith.constant 0 : i32
    %25 = arith.cmpi ne, %24, %c0_i32_16 : i32
    scf.if %25 {
      %cst_33 = arith.constant 0.000000e+00 : f32
      %57 = vector.broadcast %cst_33 : f32 to vector<1x1xf32>
      %c0_34 = arith.constant 0 : index
      %c0_35 = arith.constant 0 : index
      %58 = vector.load %arg10[%c0_34, %c0_35] : memref<1x1xf32, #tpu.memory_space<vmem>>, vector<1x1xf32>
      tpu.vector_store %arg10[%c0_34, %c0_35], %57 {strides = array<i32>} : memref<1x1xf32, #tpu.memory_space<vmem>>, vector<1x1xf32>,
      %cst_36 = arith.constant 0.000000e+00 : f32
      %59 = vector.broadcast %cst_36 : f32 to vector<1x1xf32>
      %c0_37 = arith.constant 0 : index
      %c0_38 = arith.constant 0 : index
      %60 = vector.load %arg11[%c0_37, %c0_38] : memref<1x1xf32, #tpu.memory_space<vmem>>, vector<1x1xf32>
      tpu.vector_store %arg11[%c0_37, %c0_38], %59 {strides = array<i32>} : memref<1x1xf32, #tpu.memory_space<vmem>>, vector<1x1xf32>,
    } else {
    }
    %c0_17 = arith.constant 0 : index
    %c0_18 = arith.constant 0 : index
    %26 = vector.load %arg10[%c0_17, %c0_18] : memref<1x1xf32, #tpu.memory_space<vmem>>, vector<1x1xf32>
    %27 = arith.mulf %12, %12 : vector<256x256xf32>
    %cst_19 = arith.constant 1.250000e+01 : f32
    %28 = vector.broadcast %cst_19 : f32 to vector<256x256xf32>
    %29 = arith.mulf %27, %28 : vector<256x256xf32>
    %cst_20 = arith.constant 0.690499365 : f32
    %30 = vector.broadcast %cst_20 : f32 to vector<256x256xf32>
    %31 = arith.subf %30, %29 : vector<256x256xf32>
    %32 = vector.shape_cast %31 : vector<256x256xf32> to vector<1x256x256xf32>
    %cst_21 = arith.constant dense<0.000000e+00> : vector<1xf32>
    %33 = vector.multi_reduction <add>, %32, %cst_21 [1, 2] : vector<1x256x256xf32> to vector<1xf32>
    %34 = vector.shape_cast %33 : vector<1xf32> to vector<1x1x1xf32>
    %35 = vector.extract %34[0, 0, 0] : f32 from vector<1x1x1xf32>
    %36 = vector.broadcast %35 : f32 to vector<1x1xf32>
    %37 = arith.addf %26, %36 : vector<1x1xf32>
    %c0_22 = arith.constant 0 : index
    %c0_23 = arith.constant 0 : index
    %38 = vector.load %arg10[%c0_22, %c0_23] : memref<1x1xf32, #tpu.memory_space<vmem>>, vector<1x1xf32>
    tpu.vector_store %arg10[%c0_22, %c0_23], %37 {strides = array<i32>} : memref<1x1xf32, #tpu.memory_space<vmem>>, vector<1x1xf32>,
    %c0_24 = arith.constant 0 : index
    %c0_25 = arith.constant 0 : index
    %39 = vector.load %arg11[%c0_24, %c0_25] : memref<1x1xf32, #tpu.memory_space<vmem>>, vector<1x1xf32>
    %40 = math.log %10 : vector<256x256xf32>
    %cst_26 = arith.constant -0.918938517 : f32
    %41 = vector.broadcast %cst_26 : f32 to vector<256x256xf32>
    %42 = arith.subf %41, %40 : vector<256x256xf32>
    %43 = arith.mulf %2, %2 : vector<256x256xf32>
    %cst_27 = arith.constant 5.000000e-01 : f32
    %44 = vector.broadcast %cst_27 : f32 to vector<256x256xf32>
    %45 = arith.mulf %44, %43 : vector<256x256xf32>
    %46 = arith.subf %42, %45 : vector<256x256xf32>
    %47 = vector.shape_cast %46 : vector<256x256xf32> to vector<1x256x256xf32>
    %cst_28 = arith.constant dense<0.000000e+00> : vector<1xf32>
    %48 = vector.multi_reduction <add>, %47, %cst_28 [1, 2] : vector<1x256x256xf32> to vector<1xf32>
    %49 = vector.shape_cast %48 : vector<1xf32> to vector<1x1x1xf32>
    %50 = vector.extract %49[0, 0, 0] : f32 from vector<1x1x1xf32>
    %51 = vector.broadcast %50 : f32 to vector<1x1xf32>
    %52 = arith.addf %39, %51 : vector<1x1xf32>
    %c0_29 = arith.constant 0 : index
    %c0_30 = arith.constant 0 : index
    %53 = vector.load %arg11[%c0_29, %c0_30] : memref<1x1xf32, #tpu.memory_space<vmem>>, vector<1x1xf32>
    tpu.vector_store %arg11[%c0_29, %c0_30], %52 {strides = array<i32>} : memref<1x1xf32, #tpu.memory_space<vmem>>, vector<1x1xf32>,
    %c0_i32_31 = arith.constant 0 : i32
    %54 = arith.cmpi eq, %arg1, %c0_i32_31 : i32
    %55 = arith.extui %54 : i1 to i32
    %c0_i32_32 = arith.constant 0 : i32
    %56 = arith.cmpi ne, %55, %c0_i32_32 : i32
    scf.if %56 {
      %c0_33 = arith.constant 0 : index
      %c0_34 = arith.constant 0 : index
      %57 = vector.load %arg6[%c0_33, %c0_34] : memref<1x256xf32, #tpu.memory_space<vmem>>, vector<1x256xf32>
      %c0_35 = arith.constant 0 : index
      %c0_36 = arith.constant 0 : index
      %58 = vector.load %arg7[%c0_35, %c0_36] : memref<1x256xf32, #tpu.memory_space<vmem>>, vector<1x256xf32>
      %c0_37 = arith.constant 0 : index
      %c0_38 = arith.constant 0 : index
      %59 = vector.load %arg8[%c0_37, %c0_38] : memref<1x256xf32, #tpu.memory_space<vmem>>, vector<1x256xf32>
      %cst_39 = arith.constant 0.000000e+00 : f32
      %60 = vector.broadcast %cst_39 : f32 to vector<1x256xf32>
      %61 = arith.maximumf %58, %60 : vector<1x256xf32>
      %62 = math.absf %58 : vector<1x256xf32>
      %cst_40 = arith.constant 0.000000e+00 : f32
      %63 = vector.broadcast %cst_40 : f32 to vector<1x256xf32>
      %64 = arith.subf %63, %62 : vector<1x256xf32>
      %65 = math.exp %64 : vector<1x256xf32>
      %66 = math.log1p %65 : vector<1x256xf32>
      %67 = arith.addf %61, %66 : vector<1x256xf32>
      %68 = arith.mulf %67, %59 : vector<1x256xf32>
      %69 = arith.addf %57, %68 : vector<1x256xf32>
      %c0_41 = arith.constant 0 : index
      %c0_42 = arith.constant 0 : index
      %70 = vector.load %arg12[%c0_41, %c0_42] : memref<8x256xf32, #tpu.memory_space<vmem>>, vector<8x256xf32>
      %71 = vector.broadcast %69 : vector<1x256xf32> to vector<8x256xf32>
      %72 = arith.addf %70, %71 : vector<8x256xf32>
      %c0_43 = arith.constant 0 : index
      %c0_44 = arith.constant 0 : index
      %73 = vector.load %arg9[%c0_43, %c0_44] : memref<8x256xf32, #tpu.memory_space<vmem>>, vector<8x256xf32>
      tpu.vector_store %arg9[%c0_43, %c0_44], %72 {strides = array<i32>} : memref<8x256xf32, #tpu.memory_space<vmem>>, vector<8x256xf32>,
      %c0_45 = arith.constant 0 : index
      %c0_46 = arith.constant 0 : index
      %74 = vector.load %arg10[%c0_45, %c0_46] : memref<1x1xf32, #tpu.memory_space<vmem>>, vector<1x1xf32>
      %75 = arith.mulf %69, %69 : vector<1x256xf32>
      %cst_47 = arith.constant 1.250000e+01 : f32
      %76 = vector.broadcast %cst_47 : f32 to vector<1x256xf32>
      %77 = arith.mulf %75, %76 : vector<1x256xf32>
      %cst_48 = arith.constant 0.690499365 : f32
      %78 = vector.broadcast %cst_48 : f32 to vector<1x256xf32>
      %79 = arith.subf %78, %77 : vector<1x256xf32>
      %80 = vector.shape_cast %79 : vector<1x256xf32> to vector<1x1x256xf32>
      %cst_49 = arith.constant dense<0.000000e+00> : vector<1xf32>
      %81 = vector.multi_reduction <add>, %80, %cst_49 [1, 2] : vector<1x1x256xf32> to vector<1xf32>
      %82 = vector.shape_cast %81 : vector<1xf32> to vector<1x1x1xf32>
      %83 = vector.extract %82[0, 0, 0] : f32 from vector<1x1x1xf32>
      %84 = vector.broadcast %83 : f32 to vector<1x1xf32>
      %85 = arith.addf %74, %84 : vector<1x1xf32>
      %c0_50 = arith.constant 0 : index
      %c0_51 = arith.constant 0 : index
      %86 = vector.load %arg10[%c0_50, %c0_51] : memref<1x1xf32, #tpu.memory_space<vmem>>, vector<1x1xf32>
      tpu.vector_store %arg10[%c0_50, %c0_51], %85 {strides = array<i32>} : memref<1x1xf32, #tpu.memory_space<vmem>>, vector<1x1xf32>,
      %c0_52 = arith.constant 0 : index
      %c0_53 = arith.constant 0 : index
      %87 = vector.load %arg11[%c0_52, %c0_53] : memref<1x1xf32, #tpu.memory_space<vmem>>, vector<1x1xf32>
      %88 = math.log %67 : vector<1x256xf32>
      %cst_54 = arith.constant -0.918938517 : f32
      %89 = vector.broadcast %cst_54 : f32 to vector<1x256xf32>
      %90 = arith.subf %89, %88 : vector<1x256xf32>
      %91 = arith.mulf %59, %59 : vector<1x256xf32>
      %cst_55 = arith.constant 5.000000e-01 : f32
      %92 = vector.broadcast %cst_55 : f32 to vector<1x256xf32>
      %93 = arith.mulf %92, %91 : vector<1x256xf32>
      %94 = arith.subf %90, %93 : vector<1x256xf32>
      %95 = vector.shape_cast %94 : vector<1x256xf32> to vector<1x1x256xf32>
      %cst_56 = arith.constant dense<0.000000e+00> : vector<1xf32>
      %96 = vector.multi_reduction <add>, %95, %cst_56 [1, 2] : vector<1x1x256xf32> to vector<1xf32>
      %97 = vector.shape_cast %96 : vector<1xf32> to vector<1x1x1xf32>
      %98 = vector.extract %97[0, 0, 0] : f32 from vector<1x1x1xf32>
      %99 = vector.broadcast %98 : f32 to vector<1x1xf32>
      %100 = arith.addf %87, %99 : vector<1x1xf32>
      %c0_57 = arith.constant 0 : index
      %c0_58 = arith.constant 0 : index
      %101 = vector.load %arg11[%c0_57, %c0_58] : memref<1x1xf32, #tpu.memory_space<vmem>>, vector<1x1xf32>
      tpu.vector_store %arg11[%c0_57, %c0_58], %100 {strides = array<i32>} : memref<1x1xf32, #tpu.memory_space<vmem>>, vector<1x1xf32>,
    } else {
    }
    return
  }
  func.func @transform_0(%arg0: i32, %arg1: i32) -> (i32, i32) {
    %c0_i32 = arith.constant 0 : i32
    %c0_i32_0 = arith.constant 0 : i32
    return %c0_i32, %arg1 : i32, i32
  }
  func.func @transform_1(%arg0: i32, %arg1: i32) -> (i32, i32) {
    %c0_i32 = arith.constant 0 : i32
    return %arg1, %arg0 : i32, i32
  }
  func.func @transform_2(%arg0: i32, %arg1: i32) -> (i32, i32) {
    %c0_i32 = arith.constant 0 : i32
    return %arg1, %arg0 : i32, i32
  }
  func.func @transform_3(%arg0: i32, %arg1: i32) -> (i32, i32) {
    %c0_i32 = arith.constant 0 : i32
    return %arg1, %arg0 : i32, i32
  }
  func.func @transform_4(%arg0: i32, %arg1: i32) -> (i32, i32) {
    %c0_i32 = arith.constant 0 : i32
    %c0_i32_0 = arith.constant 0 : i32
    return %c0_i32, %arg0 : i32, i32
  }
  func.func @transform_5(%arg0: i32, %arg1: i32) -> (i32, i32) {
    %c0_i32 = arith.constant 0 : i32
    %c0_i32_0 = arith.constant 0 : i32
    return %c0_i32, %arg0 : i32, i32
  }
  func.func @transform_6(%arg0: i32, %arg1: i32) -> (i32, i32) {
    %c0_i32 = arith.constant 0 : i32
    %c0_i32_0 = arith.constant 0 : i32
    return %c0_i32, %arg0 : i32, i32
  }
  func.func @transform_7(%arg0: i32, %arg1: i32) -> (i32, i32) {
    %c0_i32 = arith.constant 0 : i32
    %c0_i32_0 = arith.constant 0 : i32
    return %c0_i32, %arg0 : i32, i32
  }
  func.func @transform_8(%arg0: i32, %arg1: i32) -> (i32, i32) {
    %c0_i32 = arith.constant 0 : i32
    %c0_i32_0 = arith.constant 0 : i32
    %c0_i32_1 = arith.constant 0 : i32
    return %c0_i32, %c0_i32_0 : i32, i32
  }
  func.func @transform_9(%arg0: i32, %arg1: i32) -> (i32, i32) {
    %c0_i32 = arith.constant 0 : i32
    %c0_i32_0 = arith.constant 0 : i32
    %c0_i32_1 = arith.constant 0 : i32
    return %c0_i32, %c0_i32_0 : i32, i32
  }
}

</mosaic_0001>

<bundles_post_ra>
// kernel: bayesian_linear_forward.1
= control target key start
LH: loop header
LB: loop body
LE: loop exit
PB: predicated region body
PF: predicated region fallthrough
CT: control target
= control target key end

     0   :  { %15 = vsyncpa [#allocation4], 0  ;;  %s5240_s0 = inlined_call_operand.vmem [shape: f32[8,256], index: 0, kind: input, shape index: {}]   ;;  %s5241_s1 = inlined_call_operand.vmem [shape: f32[256,256], index: 1, kind: input, shape index: {}]   ;;  %s5242_s2 = inlined_call_operand.vmem [shape: f32[256,256], index: 2, kind: input, shape index: {}]   ;;  %s5243_s3 = inlined_call_operand.vmem [shape: f32[256,256], index: 3, kind: input, shape index: {}]   ;;  %s5244_s4 = inlined_call_operand.vmem [shape: f32[1,256], index: 4, kind: input, shape index: {}]   ;;  %s5245_s5 = inlined_call_operand.vmem [shape: f32[1,256], index: 5, kind: input, shape index: {}]   ;;  %s5246_s6 = inlined_call_operand.vmem [shape: f32[1,256], index: 6, kind: input, shape index: {}]   ;;  %s5247_s7 = inlined_call_operand.hbm [shape: f32[8,256], index: 7, kind: output, shape index: {0}]   ;;  %s5248_s8 = inlined_call_operand.hbm [shape: f32[1,1], index: 8, kind: output, shape index: {1}]   ;;  %s5249_s9 = inlined_call_operand.hbm [shape: f32[1,1], index: 9, kind: output, shape index: {2}]  }
   0x1   :  { %v2871_v0 = vld [vmem:[%s5242_s2 + $0x8] sm:$0xff]  ;;  %v2876_v1 = vld [vmem:[%s5242_s2 + $0x18] sm:$0xff]  ;;  %v2883_v4 = vld [vmem:[%s5242_s2] sm:$0xff] }
   0x2   :  { %v288_v2 = vand.u32 2147483647, %v2871_v0  ;;  %v290_v3 = vand.u32 2147483647, %v2876_v1  ;;  %v2888_v6 = vld [vmem:[%s5242_s2 + $0x10] sm:$0xff]  ;;  %v2893_v7 = vld [vmem:[%s5243_s3 + $0x8] sm:$0xff] }
   0x3   :  { %v287_v10 = vand.u32 2147483647, %v2883_v4  ;;  %v289_v11 = vand.u32 2147483647, %v2888_v6  ;;  %v1867_v13 = vmul.f32 %v2893_v7, %v2893_v7  ;;  %v2902_v14 = vld [vmem:[%s5242_s2 + $0x28] sm:$0xff]  ;;  %v2907_v15 = vld [vmem:[%s5243_s3 + $0x18] sm:$0xff] }
   0x4   :  { %v352_v5 = vsub.f32 0.0, %v288_v2  ;;  %v354_v8 = vsub.f32 0.0, %v290_v3  ;;  %v2912_v18 = vld [vmem:[%s5242_s2 + $0x38] sm:$0xff]  ;;  %v224_v19 = vmax.f32 %v2871_v0, 0.0  ;;  %v226_v20 = vmax.f32 %v2876_v1, 0.0  ;;  %v2921_v22 = vld [vmem:[%s5243_s3] sm:$0xff] }
   0x5   :  { %v351_v16 = vsub.f32 0.0, %v287_v10  ;;  %v353_v17 = vsub.f32 0.0, %v289_v11  ;;  %v1869_v21 = vmul.f32 %v2907_v15, %v2907_v15  ;;  %v2926_v23 = vld [vmem:[%s5242_s2 + $0x20] sm:$0xff]  ;;  %v2931_v24 = vld [vmem:[%s5242_s2 + $0x30] sm:$0xff]  ;;  %v292_v27 = vand.u32 2147483647, %v2902_v14 }
   0x6   :  { %v417_v9 = vmul.f32 1.442695, %v352_v5  ;;  %v421_v12 = vmul.f32 1.442695, %v354_v8  ;;  %v2934_v28 = vmul.f32 0.5, %v1867_v13  ;;  %v2939_v29 = vld [vmem:[%s5243_s3 + $0x10] sm:$0xff]  ;;  %v1866_v31 = vmul.f32 %v2921_v22, %v2921_v22 }
   0x7   :  { %v415_v25 = vmul.f32 1.442695, %v351_v16  ;;  %v419_v26 = vmul.f32 1.442695, %v353_v17  ;;  %v223_v30 = vmax.f32 %v2883_v4, 0.0  ;;  %v1868_v33 = vmul.f32 %v2939_v29, %v2939_v29  ;;  %v2953_v37 = vld [vmem:[%s5243_s3 + $0x28] sm:$0xff] }
   0x8   :  { %2354 = vpow2.f32 %v417_v9  ;;  %v294_v32 = vand.u32 2147483647, %v2912_v18  ;;  %v356_v34 = vsub.f32 0.0, %v292_v27  ;;  %v291_v35 = vand.u32 2147483647, %v2926_v23  ;;  %v2960_v41 = vld [vmem:[%s5243_s3 + $0x38] sm:$0xff] }
   0x9   :  { %2356 = vpow2.f32 %v421_v12  ;;  %v2948_v36 = vmul.f32 0.5, %v1869_v21  ;;  %v293_v39 = vand.u32 2147483647, %v2931_v24  ;;  %v1871_v43 = vmul.f32 %v2953_v37, %v2953_v37  ;;  %v2971_v49 = vld [vmem:[%s5242_s2 + $0x48] sm:$0xff]  ;;  %v2984_v59 = vld [vmem:[%s5242_s2 + $0x58] sm:$0xff]  ;;  %v2992_v3 = vld [vmem:[%s5243_s3 + $0x20] sm:$0xff] }
   0xa   :  { %2358 = vpow2.f32 %v415_v25  ;;  %v358_v38 = vsub.f32 0.0, %v294_v32  ;;  %v425_v42 = vmul.f32 1.442695, %v356_v34  ;;  %v355_v44 = vsub.f32 0.0, %v291_v35  ;;  %v2997_v5 = vld [vmem:[%s5243_s3 + $0x30] sm:$0xff]  ;;  %v34_v0 = vld [vmem:[%s5241_s1 + $0x18] sm:$0xff] }
   0xb   :  { %2360 = vpow2.f32 %v419_v26  ;;  %v2964_v45 = vmul.f32 0.5, %v1866_v31  ;;  %v1873_v47 = vmul.f32 %v2960_v41, %v2960_v41  ;;  %v357_v48 = vsub.f32 0.0, %v293_v39 }
   0xc   :  { %v429_v46 = vmul.f32 1.442695, %v358_v38  ;;  %v2973_v50 = vmul.f32 0.5, %v1868_v33  ;;  %2362 = vpow2.f32 %v425_v42  ;;  %v423_v52 = vmul.f32 1.442695, %v355_v44 }
   0xd   :  { %v427_v55 = vmul.f32 1.442695, %v357_v48  ;;  %v2978_v57 = vmul.f32 0.5, %v1871_v43  ;;  %v296_v60 = vand.u32 2147483647, %v2971_v49  ;;  %v2987_v2 = vmul.f32 0.5, %v1873_v47 }
   0xe   :  { %2364 = vpow2.f32 %v429_v46  ;;  %v1870_v10 = vmul.f32 %v2992_v3, %v2992_v3  ;;  %v3003_v11 = vmul.f32 %v2997_v5, %v2997_v5  ;;  %v298_v16 = vand.u32 2147483647, %v2984_v59 }
   0xf   :  { %2366 = vpow2.f32 %v423_v52  ;;  %v360_v26 = vsub.f32 0.0, %v296_v60 }
  0x10   :  { %2368 = vpow2.f32 %v427_v55  ;;  %v3008_v42 = vmul.f32 0.5, %v1870_v10  ;;  %v362_v46 = vsub.f32 0.0, %v298_v16 }
  0x11   :  { %v433_v55 = vmul.f32 1.442695, %v360_v26 }
  0x12   :  { %v2355_v56 = vpop.eup %2354  ;;  %v437_v16 = vmul.f32 1.442695, %v362_v46 }
  0x13   :  { %v2357_v61 = vpop.eup %2356  ;;  %v552_v62 = vadd.f32 1.0, %v2355_v56  ;;  %v555_v63 = vmul.f32 -0.5, %v2355_v56  ;;  %v558_v12 = vand.u32 2147483647, %v2355_v56 }
  0x14   :  { %v570_v8 = vadd.f32 1.0, %v2357_v61  ;;  %v573_v9 = vmul.f32 -0.5, %v2357_v61  ;;  %v576_v13 = vand.u32 2147483647, %v2357_v61  ;;  %v2359_v17 = vpop.eup %2358 }
  0x15   :  { %2370 = vlog2.f32 %v552_v62  ;;  %v556_v21 = vadd.f32 1.0, %v555_v63  ;;  %v2361_v27 = vpop.eup %2360  ;;  %v543_v31 = vadd.f32 1.0, %v2359_v17  ;;  %v546_v32 = vmul.f32 -0.5, %v2359_v17 }
  0x16   :  { %2372 = vlog2.f32 %v570_v8  ;;  %v574_v25 = vadd.f32 1.0, %v573_v9  ;;  %v549_v35 = vand.u32 2147483647, %v2359_v17  ;;  %v561_v38 = vadd.f32 1.0, %v2361_v27  ;;  %v2363_v47 = vpop.eup %2362 }
  0x17   :  { %v564_v39 = vmul.f32 -0.5, %v2361_v27  ;;  %vm3010_vm0 = vcmp.lt.f32.partialorder %v558_v12, 0.0004427343  ;;  %vm3014_vm1 = vcmp.lt.f32.partialorder %v576_v13, 0.0004427343  ;;  %2374 = vlog2.f32 %v543_v31 }
  0x18   :  { %v557_v48 = vmul.f32 %v2355_v56, %v556_v21  ;;  %v575_v52 = vmul.f32 %v2357_v61, %v574_v25  ;;  %2376 = vlog2.f32 %v561_v38  ;;  %v2365_v60 = vpop.eup %2364  ;;  %v547_v62 = vadd.f32 1.0, %v546_v32 }
  0x19   :  { %v567_v63 = vand.u32 2147483647, %v2361_v27  ;;  %v588_v8 = vadd.f32 1.0, %v2363_v47  ;;  %v591_v9 = vmul.f32 -0.5, %v2363_v47  ;;  %v2367_v10 = vpop.eup %2366  ;;  %vm3018_vm2 = vcmp.lt.f32.partialorder %v549_v35, 0.0004427343 }
  0x1a   :  { %v565_v13 = vadd.f32 1.0, %v564_v39  ;;  %v606_v34 = vadd.f32 1.0, %v2365_v60  ;;  %v609_v33 = vmul.f32 -0.5, %v2365_v60  ;;  %v3022_v31 = vpop.eup %2368  ;;  %v594_v56 = vand.u32 2147483647, %v2363_v47 }
  0x1b   :  { %2378 = vlog2.f32 %v588_v8  ;;  %v579_v61 = vadd.f32 1.0, %v2367_v10  ;;  %v592_v21 = vadd.f32 1.0, %v591_v9  ;;  %v612_v25 = vand.u32 2147483647, %v2365_v60 }
  0x1c   :  { %2380 = vlog2.f32 %v606_v34  ;;  %v582_v26 = vmul.f32 -0.5, %v2367_v10  ;;  %v548_v38 = vmul.f32 %v2359_v17, %v547_v62  ;;  %vm3024_vm3 = vcmp.lt.f32.partialorder %v567_v63, 0.0004427343 }
  0x1d   :  { %v610_v58 = vadd.f32 1.0, %v609_v33  ;;  %v597_v39 = vadd.f32 1.0, %v3022_v31  ;;  %v566_v51 = vmul.f32 %v2361_v27, %v565_v13  ;;  %2382 = vlog2.f32 %v579_v61 }
  0x1e   :  { %v585_v8 = vand.u32 2147483647, %v2367_v10  ;;  %vm3029_vm4 = vcmp.lt.f32.partialorder %v594_v56, 0.0004427343  ;;  %v583_v34 = vadd.f32 1.0, %v582_v26  ;;  %v593_v62 = vmul.f32 %v2363_v47, %v592_v21 }
  0x1f   :  { %v2371_v32 = vpop.eup %2370  ;;  %2384 = vlog2.f32 %v597_v39  ;;  %vm3035_vm5 = vcmp.lt.f32.partialorder %v612_v25, 0.0004427343  ;;  %v600_v63 = vmul.f32 -0.5, %v3022_v31  ;;  %v611_v13 = vmul.f32 %v2365_v60, %v610_v58 }
  0x20   :  { %v2373_v54 = vpop.eup %2372  ;;  %v554_v53 = vmul.f32 0.6931472, %v2371_v32  ;;  %v603_v56 = vand.u32 2147483647, %v3022_v31  ;;  %vm3050_vm6 = vcmp.lt.f32.partialorder %v585_v8, 0.0004427343  ;;  %2386 = vpow2.f32 %v433_v55 }
  0x21   :  { %v572_v40 = vmul.f32 0.6931472, %v2373_v54  ;;  %v2375_v27 = vpop.eup %2374  ;;  %v3058_v58 = vmul.f32 %v2367_v10, %v583_v34 }
  0x22   :  { %v560_v17 = vsel %vm3010_vm0, %v557_v48, %v554_v53  ;;  %v2377_v61 = vpop.eup %2376  ;;  %v32_v53 = vld [vmem:[%s5241_s1 + $0x8] sm:$0xff]  ;;  %v545_v47 = vmul.f32 0.6931472, %v2375_v27 }
  0x23   :  { %v578_v54 = vsel %vm3014_vm1, %v575_v52, %v572_v40  ;;  %v1120_v9 = vadd.f32 %v560_v17, %v224_v19  ;;  %v563_v40 = vmul.f32 0.6931472, %v2377_v61 }
  0x24   :  { %v1122_v43 = vadd.f32 %v578_v54, %v226_v20  ;;  %v551_v1 = vsel %vm3018_vm2, %v548_v38, %v545_v47  ;;  %v601_v20 = vadd.f32 1.0, %v600_v63 }
  0x25   :  { %v1184_v19 = vmul.f32 %v1120_v9, %v2893_v7  ;;  %2388 = vlog2.f32 %v1120_v9 }
  0x26   :  { %v1186_v44 = vmul.f32 %v1122_v43, %v2907_v15  ;;  %2390 = vlog2.f32 %v1122_v43 }
  0x27   :  { %16 = vsyncpa [#allocation6], 0  ;;  %v2379_v52 = vpop.eup %2378  ;;  %v1248_v55 = vadd.f32 %v1184_v19, %v32_v53  ;;  %v569_v60 = vsel %vm3024_vm3, %v566_v51, %v563_v40  ;;  %v1119_v7 = vadd.f32 %v551_v1, %v223_v30  ;;  %vm3067_vm7 = vcmp.lt.f32.partialorder %v603_v56, 0.0004427343  ;;  %v31_v12 = vld [vmem:[%s5241_s1] sm:$0xff]  ;;  %v33_v4 = vld [vmem:[%s5241_s1 + $0x10] sm:$0xff] }
  0x28   :  { %v2381_v10 = vpop.eup %2380  ;;  %v1250_v15 = vadd.f32 %v1186_v44, %v34_v0  ;;  %v5266_v25 = vmax.f32 %v2888_v6, 0.0  ;;  %v590_v32 = vmul.f32 0.6931472, %v2379_v52  ;;  %2392 = vpow2.f32 %v437_v16  ;;  %v36_v46 = vld [vmem:[%s5241_s1 + $0x28] sm:$0xff]  ;;  %v3113_v48 = vld [vmem:[%s5242_s2 + $0x40] sm:$0xff] }
  0x29   :  { %v1406_v38 = vmul.f32 %v1248_v55, %v1248_v55  ;;  %v1183_v30 = vmul.f32 %v1119_v7, %v2921_v22  ;;  %2394 = vlog2.f32 %v1119_v7  ;;  %v608_v51 = vmul.f32 0.6931472, %v2381_v10  ;;  %v2383_v35 = vpop.eup %2382 }
  0x2a   :  { %v1121_v26 = vadd.f32 %v569_v60, %v5266_v25  ;;  %v2278_v39 = vpack.c.bf16 %v1250_v15, %v1248_v55  ;;  %v1408_v8 = vmul.f32 %v1250_v15, %v1250_v15  ;;  %v2385_v17 = vpop.eup %2384  ;;  %v596_v16 = vsel %vm3029_vm4, %v593_v62, %v590_v32 }
  0x2b   :  { %v1470_v6 = vmul.f32 12.5, %v1406_v38  ;;  %v1247_v63 = vadd.f32 %v1183_v30, %v31_v12  ;;  %v614_v27 = vsel %vm3035_vm5, %v611_v13, %v608_v51  ;;  %v5267_v22 = vmax.f32 %v2902_v14, 0.0  ;;  %v3093_v33 = vpop.eup %2386  ;;  %v38_v14 = vld [vmem:[%s5241_s1 + $0x38] sm:$0xff] }
  0x2c   :  { %v1185_v34 = vmul.f32 %v1121_v26, %v2939_v29  ;;  %2396 = vlog2.f32 %v1121_v26  ;;  %2279 = vmatprep.subr.bf16.mxu0 %v2278_v39  ;;  %v5268_v56 = vmax.f32 %v2912_v18, 0.0  ;;  %v602_v29 = vmul.f32 %v3022_v31, %v601_v20  ;;  %v3126_v39 = vld [vmem:[%s5242_s2 + $0x50] sm:$0xff] }
  0x2d   :  { %v1124_v9 = vadd.f32 %v596_v16, %v5267_v22  ;;  %v1472_v53 = vmul.f32 12.5, %v1408_v8  ;;  %v1405_v43 = vmul.f32 %v1247_v63, %v1247_v63  ;;  %v581_v62 = vmul.f32 0.6931472, %v2383_v35 }
  0x2e   :  { %v1249_v54 = vadd.f32 %v1185_v34, %v33_v4  ;;  %v1126_v61 = vadd.f32 %v614_v27, %v5268_v56  ;;  %v599_v47 = vmul.f32 0.6931472, %v2385_v17  ;;  %v1534_v13 = vsub.f32 0.69049937, %v1470_v6 }
  0x2f   :  { %v1188_v18 = vmul.f32 %v1124_v9, %v2953_v37  ;;  %v2389_v31 = vpop.eup %2388  ;;  %v1469_v40 = vmul.f32 12.5, %v1405_v43  ;;  %2398 = vlog2.f32 %v1124_v9  ;;  %v587_v1 = vsel %vm3050_vm6, %v3058_v58, %v581_v62  ;;  %v35_v9 = vld [vmem:[%s5241_s1 + $0x20] sm:$0xff] }
  0x30   :  { %v2280_v0 = vpack.c.bf16 %v1249_v54, %v1247_v63  ;;  %v1407_v19 = vmul.f32 %v1249_v54, %v1249_v54  ;;  %v1190_v44 = vmul.f32 %v1126_v61, %v2960_v41  ;;  %v2391_v20 = vpop.eup %2390  ;;  %v1677_v52 = vmul.f32 0.6931472, %v2389_v31  ;;  %v3108_v41 = vld [vmem:[%s5243_s3 + $0x48] sm:$0xff] }
  0x31   :  { %v1252_v60 = vadd.f32 %v1188_v18, %v36_v46  ;;  %2400 = vlog2.f32 %v1126_v61  ;;  %v1681_v7 = vmul.f32 0.6931472, %v2391_v20  ;;  %v1533_v10 = vsub.f32 0.69049937, %v1469_v40 }
  0x32   :  { %2281 = vmatpush1.bf16.msra.mxu0 %v2280_v0  ;;  %v1471_v55 = vmul.f32 12.5, %v1407_v19  ;;  %v1254_v15 = vadd.f32 %v1190_v44, %v38_v14  ;;  %v605_v37 = vsel %vm3067_vm7, %v602_v29, %v599_v47  ;;  %v3115_v58 = vpop.eup %2392  ;;  %v1803_v12 = vsub.f32 -0.9189385, %v1677_v52 }
  0x33   :  { %v5269_v26 = vmax.f32 %v2926_v23, 0.0  ;;  %v3121_v21 = vmul.f32 %v3108_v41, %v3108_v41  ;;  %v2395_v38 = vpop.eup %2394  ;;  %v1536_v4 = vsub.f32 0.69049937, %v1472_v53  ;;  %v1805_v30 = vsub.f32 -0.9189385, %v1681_v7 }
  0x34   :  { %v1535_v25 = vsub.f32 0.69049937, %v1471_v55  ;;  %v1597_v51 = vadd.f32 %v1534_v13, %v1533_v10  ;;  %v2282_v35 = vpack.c.bf16 %v1254_v15, %v1252_v60  ;;  %v1995_v34 = vsub.f32 %v1803_v12, %v2934_v28  ;;  %v37_v28 = vld [vmem:[%s5241_s1 + $0x30] sm:$0xff] }
  0x35   :  { %v1123_v32 = vadd.f32 %v587_v1, %v5269_v26  ;;  %v1675_v17 = vmul.f32 0.6931472, %v2395_v38  ;;  %v5270_v23 = vmax.f32 %v2931_v24, 0.0  ;;  %v295_v63 = vand.u32 2147483647, %v3113_v48 }
  0x36   :  { %v2397_v8 = vpop.eup %2396  ;;  %v1997_v16 = vsub.f32 %v1805_v30, %v2948_v36  ;;  %v1598_v27 = vadd.f32 %v1597_v51, %v1535_v25  ;;  %2283 = vmatprep.subr.bf16.mxu0 %v2282_v35  ;;  %v1410_v22 = vmul.f32 %v1252_v60, %v1252_v60  ;;  %v297_v29 = vand.u32 2147483647, %v3126_v39 }
  0x37   :  { %v1125_v6 = vadd.f32 %v605_v37, %v5270_v23  ;;  %v1679_v54 = vmul.f32 0.6931472, %v2397_v8  ;;  %v1802_v56 = vsub.f32 -0.9189385, %v1675_v17  ;;  %v1187_v24 = vmul.f32 %v1123_v32, %v2992_v3  ;;  %v3156_v8 = vld [vmem:[%s5243_s3 + $0x58] sm:$0xff] }
  0x38   :  { %v1599_v36 = vadd.f32 %v1598_v27, %v1536_v4  ;;  %v1412_v43 = vmul.f32 %v1254_v15, %v1254_v15  ;;  %2402 = vlog2.f32 %v1123_v32  ;;  %v1474_v19 = vmul.f32 12.5, %v1410_v22 }
  0x39   :  { %v1189_v61 = vmul.f32 %v1125_v6, %v2997_v5  ;;  %v1804_v53 = vsub.f32 -0.9189385, %v1679_v54  ;;  %v1994_v46 = vsub.f32 %v1802_v56, %v2964_v45  ;;  %v1251_v62 = vadd.f32 %v1187_v24, %v35_v9  ;;  %v2399_v13 = vpop.eup %2398 }
  0x3a   :  { %2404 = vlog2.f32 %v1125_v6  ;;  %v624_v14 = vadd.f32 1.0, %v3093_v33  ;;  %v359_v3 = vsub.f32 0.0, %v295_v63  ;;  %v1685_v31 = vmul.f32 0.6931472, %v2399_v13 }
  0x3b   :  { %v1253_v47 = vadd.f32 %v1189_v61, %v37_v28  ;;  %v1996_v0 = vsub.f32 %v1804_v53, %v2973_v50  ;;  %v2401_v18 = vpop.eup %2400  ;;  %v2058_v5 = vadd.f32 %v1995_v34, %v1994_v46  ;;  %v1409_v44 = vmul.f32 %v1251_v62, %v1251_v62 }
  0x3c   :  { %v1689_v1 = vmul.f32 0.6931472, %v2401_v18  ;;  %2406 = vlog2.f32 %v624_v14  ;;  %v627_v45 = vmul.f32 -0.5, %v3093_v33  ;;  %v1476_v55 = vmul.f32 12.5, %v1412_v43 }
  0x3d   :  { %v2284_v40 = vpack.c.bf16 %v1253_v47, %v1251_v62  ;;  %v1411_v20 = vmul.f32 %v1253_v47, %v1253_v47  ;;  %v2059_v52 = vadd.f32 %v2058_v5, %v1996_v0  ;;  %v1807_v60 = vsub.f32 -0.9189385, %v1685_v31  ;;  %v3192_v31 = vld [vmem:[%s5242_s2 + $0x60] sm:$0xff] }
  0x3e   :  { %v1473_v7 = vmul.f32 12.5, %v1409_v44  ;;  %v1538_v50 = vsub.f32 0.69049937, %v1474_v19  ;;  %v1809_v10 = vsub.f32 -0.9189385, %v1689_v1  ;;  %v642_v37 = vadd.f32 1.0, %v3115_v58 }
  0x3f   :  { %2285 = vmatpush1.bf16.msra.mxu0 %v2284_v40  ;;  %v1475_v15 = vmul.f32 12.5, %v1411_v20  ;;  %v2060_v12 = vadd.f32 %v2059_v52, %v1997_v16  ;;  %v1999_v25 = vsub.f32 %v1807_v60, %v2978_v57  ;;  %v630_v32 = vand.u32 2147483647, %v3093_v33  ;;  %v3168_v16 = vld [vmem:[%s5242_s2 + $0x68] sm:$0xff]  ;;  %v3200_v1 = vld [vmem:[%s5243_s3 + $0x40] sm:$0xff] }
  0x40   :  { %v1537_v26 = vsub.f32 0.69049937, %v1473_v7  ;;  %v3150_v38 = vsub.f32 %v1809_v10, %v2987_v2  ;;  %v628_v4 = vadd.f32 1.0, %v627_v45  ;;  %2408 = vlog2.f32 %v642_v37  ;;  %v3205_v45 = vld [vmem:[%s5242_s2 + $0x70] sm:$0xff] }
  0x41   :  { %v645_v30 = vmul.f32 -0.5, %v3115_v58  ;;  %v1539_v51 = vsub.f32 0.69049937, %v1475_v15  ;;  %v361_v34 = vsub.f32 0.0, %v297_v29  ;;  %v431_v17 = vmul.f32 1.442695, %v359_v3 }
  0x42   :  { %v1600_v35 = vadd.f32 %v1599_v36, %v1537_v26  ;;  %v2403_v57 = vpop.eup %2402  ;;  %v1936_v23 = vmul.f32 0.5, %v3003_v11  ;;  %v1877_v2 = vmul.f32 %v3156_v8, %v3156_v8  ;;  %v3162_v6 = vmul.f32 0.5, %v3121_v21  ;;  %v3173_v11 = vld [vmem:[%s5242_s2 + $0x78] sm:$0xff]  ;;  %v40_v15 = vld [vmem:[%s5241_s1 + $0x48] sm:$0xff] }
  0x43   :  { %v231_v63 = vmax.f32 %v3113_v48, 0.0  ;;  %v1540_v54 = vsub.f32 0.69049937, %v1476_v55  ;;  %v1683_v9 = vmul.f32 0.6931472, %v2403_v57  ;;  %2410 = vpow2.f32 %v431_v17 }
  0x44   :  { %v2405_v27 = vpop.eup %2404  ;;  %v1601_v22 = vadd.f32 %v1600_v35, %v1538_v50  ;;  %v629_v21 = vmul.f32 %v3093_v33, %v628_v4  ;;  %vm3176_vm8 = vcmp.lt.f32.partialorder %v630_v32, 0.0004427343  ;;  %v435_v24 = vmul.f32 1.442695, %v361_v34 }
  0x45   :  { %v1687_v28 = vmul.f32 0.6931472, %v2405_v27  ;;  %v1806_v29 = vsub.f32 -0.9189385, %v1683_v9  ;;  %v646_v36 = vadd.f32 1.0, %v645_v30  ;;  %v3186_v3 = vmul.f32 0.5, %v1877_v2 }
  0x46   :  { %v1602_v61 = vadd.f32 %v1601_v22, %v1539_v51  ;;  %v300_v53 = vand.u32 2147483647, %v3168_v16  ;;  %v2407_v43 = vpop.eup %2406  ;;  %v648_v62 = vand.u32 2147483647, %v3115_v58  ;;  %2412 = vpow2.f32 %v435_v24  ;;  %v3240_v2 = vld [vmem:[%s5243_s3 + $0x78] sm:$0xff] }
  0x47   :  { %v1808_v46 = vsub.f32 -0.9189385, %v1687_v28  ;;  %v302_v47 = vand.u32 2147483647, %v3173_v11  ;;  %v1998_v13 = vsub.f32 %v1806_v29, %v3008_v42  ;;  %v626_v33 = vmul.f32 0.6931472, %v2407_v43 }
  0x48   :  { %v3184_v0 = vadd.f32 %v1602_v61, %v1540_v54  ;;  %v364_v19 = vsub.f32 0.0, %v300_v53  ;;  %v233_v18 = vmax.f32 %v3126_v39, 0.0  ;;  %v647_v42 = vmul.f32 %v3115_v58, %v646_v36  ;;  %v42_v54 = vld [vmem:[%s5241_s1 + $0x58] sm:$0xff] }
  0x49   :  { %v2000_v14 = vsub.f32 %v1808_v46, %v1936_v23  ;;  %v366_v5 = vsub.f32 0.0, %v302_v47  ;;  %v2061_v40 = vadd.f32 %v2060_v12, %v1998_v13  ;;  %v632_v44 = vsel %vm3176_vm8, %v629_v21, %v626_v33  ;;  %v3221_v12 = vld [vmem:[%s5243_s3 + $0x50] sm:$0xff] }
  0x4a   :  { %v441_v20 = vmul.f32 1.442695, %v364_v19  ;;  %v2409_v52 = vpop.eup %2408  ;;  %vm3207_vm9 = vcmp.lt.f32.partialorder %v648_v62, 0.0004427343  ;;  %v5275_v60 = vmax.f32 %v2971_v49, 0.0  ;;  %v1874_v58 = vmul.f32 %v3200_v1, %v3200_v1 }
  0x4b   :  { %v445_v50 = vmul.f32 1.442695, %v366_v5  ;;  %v2062_v10 = vadd.f32 %v2061_v40, %v1999_v25  ;;  %v644_v37 = vmul.f32 0.6931472, %v2409_v52  ;;  %v299_v26 = vand.u32 2147483647, %v3192_v31 }
  0x4c   :  { %v1128_v7 = vadd.f32 %v632_v44, %v5275_v60  ;;  %2414 = vpow2.f32 %v441_v20  ;;  %v1876_v32 = vmul.f32 %v3221_v12, %v3221_v12  ;;  %v301_v25 = vand.u32 2147483647, %v3205_v45  ;;  %v3269_v52 = vld [vmem:[%s5243_s3 + $0x60] sm:$0xff] }
  0x4d   :  { %v2411_v4 = vpop.eup %2410  ;;  %v2063_v30 = vadd.f32 %v2062_v10, %v2000_v14  ;;  %v650_v51 = vsel %vm3207_vm9, %v647_v42, %v644_v37  ;;  %v363_v35 = vsub.f32 0.0, %v299_v26  ;;  %v5276_v34 = vmax.f32 %v2984_v59, 0.0  ;;  %v39_v26 = vld [vmem:[%s5241_s1 + $0x40] sm:$0xff] }
  0x4e   :  { %v1192_v49 = vmul.f32 %v1128_v7, %v3108_v41  ;;  %2416 = vlog2.f32 %v1128_v7  ;;  %v615_v23 = vadd.f32 1.0, %v2411_v4  ;;  %v3235_v41 = vld [vmem:[%s5243_s3 + $0x68] sm:$0xff]  ;;  %v236_v27 = vmax.f32 %v3168_v16, 0.0 }
  0x4f   :  { %2418 = vpow2.f32 %v445_v50  ;;  %v1130_v17 = vadd.f32 %v650_v51, %v5276_v34  ;;  %v3247_v59 = vadd.f32 %v2063_v30, %v3150_v38  ;;  %v1879_v22 = vmul.f32 %v3235_v41, %v3235_v41 }
  0x50   :  { %v1256_v57 = vadd.f32 %v1192_v49, %v40_v15  ;;  %v1881_v9 = vmul.f32 %v3240_v2, %v3240_v2  ;;  %v365_v28 = vsub.f32 0.0, %v301_v25  ;;  %v2413_v21 = vpop.eup %2412  ;;  %v618_v61 = vmul.f32 -0.5, %v2411_v4 }
  0x51   :  { %v1194_v56 = vmul.f32 %v1130_v17, %v3156_v8  ;;  %2420 = vlog2.f32 %v1130_v17  ;;  %v633_v29 = vadd.f32 1.0, %v2413_v21  ;;  %v636_v36 = vmul.f32 -0.5, %v2413_v21 }
  0x52   :  { %v1414_v24 = vmul.f32 %v1256_v57, %v1256_v57  ;;  %2422 = vlog2.f32 %v615_v23  ;;  %v439_v53 = vmul.f32 1.442695, %v363_v35  ;;  %v3254_v38 = vmul.f32 0.5, %v1874_v58  ;;  %v3274_v58 = vld [vmem:[%s5243_s3 + $0x70] sm:$0xff]  ;;  %v3301_v23 = vld [vmem:[%s5242_s2 + $0x98] sm:$0xff] }
  0x53   :  { %v1258_v43 = vadd.f32 %v1194_v56, %v42_v54  ;;  %v3256_v46 = vmul.f32 0.5, %v1876_v32  ;;  %v238_v62 = vmax.f32 %v3173_v11, 0.0  ;;  %v621_v47 = vand.u32 2147483647, %v2411_v4  ;;  %v3288_v32 = vld [vmem:[%s5242_s2 + $0x88] sm:$0xff] }
  0x54   :  { %2424 = vlog2.f32 %v633_v29  ;;  %v3259_v13 = vmul.f32 0.5, %v1879_v22  ;;  %v443_v33 = vmul.f32 1.442695, %v365_v28  ;;  %v3261_v19 = vmul.f32 12.5, %v1414_v24 }
  0x55   :  { %v2286_v8 = vpack.c.bf16 %v1258_v43, %v1256_v57  ;;  %v619_v14 = vadd.f32 1.0, %v618_v61  ;;  %v235_v5 = vmax.f32 %v3192_v31, 0.0  ;;  %v637_v44 = vadd.f32 1.0, %v636_v36 }
  0x56   :  { %v2415_v40 = vpop.eup %2414  ;;  %v639_v42 = vand.u32 2147483647, %v2413_v21  ;;  %v3264_v20 = vmul.f32 0.5, %v1881_v9  ;;  %2426 = vpow2.f32 %v439_v53  ;;  %v1416_v60 = vmul.f32 %v1258_v43, %v1258_v43 }
  0x57   :  { %2287 = vmatprep.subr.bf16.mxu0 %v2286_v8  ;;  %v660_v7 = vadd.f32 1.0, %v2415_v40  ;;  %v237_v50 = vmax.f32 %v3205_v45, 0.0  ;;  %v1878_v10 = vmul.f32 %v3269_v52, %v3269_v52  ;;  %vm3281_vm10 = vcmp.lt.f32.partialorder %v621_v47, 0.0004427343 }
  0x58   :  { %v2417_v55 = vpop.eup %2416  ;;  %v663_v49 = vmul.f32 -0.5, %v2415_v40  ;;  %2428 = vpow2.f32 %v443_v33  ;;  %v1542_v25 = vsub.f32 0.69049937, %v3261_v19  ;;  %v620_v30 = vmul.f32 %v2411_v4, %v619_v14 }
  0x59   :  { %v3279_v15 = vpop.eup %2418  ;;  %v1693_v37 = vmul.f32 0.6931472, %v2417_v55  ;;  %2430 = vlog2.f32 %v660_v7  ;;  %v1880_v51 = vmul.f32 %v3274_v58, %v3274_v58  ;;  %v638_v34 = vmul.f32 %v2413_v21, %v637_v44 }
  0x5a   :  { %vm3293_vm11 = vcmp.lt.f32.partialorder %v639_v42, 0.0004427343  ;;  %v678_v57 = vadd.f32 1.0, %v3279_v15  ;;  %v3303_v22 = vmul.f32 12.5, %v1416_v60  ;;  %v666_v4 = vand.u32 2147483647, %v2415_v40 }
  0x5b   :  { %v1811_v35 = vsub.f32 -0.9189385, %v1693_v37  ;;  %v2421_v54 = vpop.eup %2420  ;;  %v3305_v9 = vmul.f32 0.5, %v1878_v10  ;;  %v304_v28 = vand.u32 2147483647, %v3288_v32  ;;  %v664_v61 = vadd.f32 1.0, %v663_v49 }
  0x5c   :  { %v2423_v21 = vpop.eup %2422  ;;  %v1697_v56 = vmul.f32 0.6931472, %v2421_v54  ;;  %2432 = vlog2.f32 %v678_v57  ;;  %v681_v36 = vmul.f32 -0.5, %v3279_v15  ;;  %v3312_v53 = vmul.f32 0.5, %v1880_v51 }
  0x5d   :  { %v3309_v24 = vsub.f32 %v1811_v35, %v3162_v6  ;;  %v617_v29 = vmul.f32 0.6931472, %v2423_v21  ;;  %v306_v43 = vand.u32 2147483647, %v3301_v23  ;;  %v240_v8 = vmax.f32 %v3288_v32, 0.0 }
  0x5e   :  { %v2425_v47 = vpop.eup %2424  ;;  %v1813_v33 = vsub.f32 -0.9189385, %v1697_v56  ;;  %v242_v14 = vmax.f32 %v3301_v23, 0.0  ;;  %v368_v44 = vsub.f32 0.0, %v304_v28  ;;  %v1544_v42 = vsub.f32 0.69049937, %v3303_v22 }
  0x5f   :  { %v623_v6 = vsel %vm3281_vm10, %v620_v30, %v617_v29  ;;  %v635_v55 = vmul.f32 0.6931472, %v2425_v47  ;;  %vm3320_vm12 = vcmp.lt.f32.partialorder %v666_v4, 0.0004427343  ;;  %v665_v49 = vmul.f32 %v2415_v40, %v664_v61  ;;  %v3549_v23 = vld [vmem:[%s5243_s3 + $0xa0] sm:$0xff] }
  0x60   :  { %v3324_v7 = vpop.eup %2426  ;;  %v3327_v10 = vsub.f32 %v1813_v33, %v3186_v3  ;;  %v1127_v37 = vadd.f32 %v623_v6, %v231_v63  ;;  %v684_v51 = vand.u32 2147483647, %v3279_v15  ;;  %v682_v35 = vadd.f32 1.0, %v681_v36  ;;  %v3346_v3 = vld [vmem:[%s5243_s3 + $0x88] sm:$0xff] }
  0x61   :  { %v641_v30 = vsel %vm3293_vm11, %v638_v34, %v635_v55  ;;  %v651_v57 = vadd.f32 1.0, %v3324_v7  ;;  %v370_v54 = vsub.f32 0.0, %v306_v43  ;;  %v449_v40 = vmul.f32 1.442695, %v368_v44  ;;  %v41_v34 = vld [vmem:[%s5241_s1 + $0x50] sm:$0xff] }
  0x62   :  { %v3338_v4 = vpop.eup %2428  ;;  %v1129_v48 = vadd.f32 %v641_v30, %v233_v18  ;;  %v1191_v63 = vmul.f32 %v1127_v37, %v3200_v1  ;;  %2434 = vlog2.f32 %v1127_v37  ;;  %v654_v28 = vmul.f32 -0.5, %v3324_v7  ;;  %v3369_v37 = vld [vmem:[%s5243_s3 + $0x98] sm:$0xff] }
  0x63   :  { %v2431_v17 = vpop.eup %2430  ;;  %2436 = vlog2.f32 %v651_v57  ;;  %v669_v39 = vadd.f32 1.0, %v3338_v4  ;;  %v1883_v18 = vmul.f32 %v3346_v3, %v3346_v3  ;;  %v683_v61 = vmul.f32 %v3279_v15, %v682_v35 }
  0x64   :  { %v1193_v1 = vmul.f32 %v1129_v48, %v3221_v12  ;;  %v1255_v21 = vadd.f32 %v1191_v63, %v39_v26  ;;  %2438 = vlog2.f32 %v1129_v48  ;;  %v662_v56 = vmul.f32 0.6931472, %v2431_v17  ;;  %v44_v63 = vld [vmem:[%s5241_s1 + $0x68] sm:$0xff] }
  0x65   :  { %vm3357_vm13 = vcmp.lt.f32.partialorder %v684_v51, 0.0004427343  ;;  %2440 = vlog2.f32 %v669_v39  ;;  %v453_v36 = vmul.f32 1.442695, %v370_v54  ;;  %v655_v55 = vadd.f32 1.0, %v654_v28 }
  0x66   :  { %v2433_v43 = vpop.eup %2432  ;;  %v1257_v47 = vadd.f32 %v1193_v1, %v41_v34  ;;  %v1413_v33 = vmul.f32 %v1255_v21, %v1255_v21  ;;  %v668_v44 = vsel %vm3320_vm12, %v665_v49, %v662_v56  ;;  %2442 = vpow2.f32 %v449_v40  ;;  %v46_v40 = vld [vmem:[%s5241_s1 + $0x78] sm:$0xff] }
  0x67   :  { %v680_v6 = vmul.f32 0.6931472, %v2433_v43  ;;  %v1132_v12 = vadd.f32 %v668_v44, %v236_v27  ;;  %v672_v15 = vmul.f32 -0.5, %v3338_v4  ;;  %v1885_v60 = vmul.f32 %v3369_v37, %v3369_v37 }
  0x68   :  { %v2288_v51 = vpack.c.bf16 %v1257_v47, %v1255_v21  ;;  %v1415_v26 = vmul.f32 %v1257_v47, %v1257_v47  ;;  %v1477_v30 = vmul.f32 12.5, %v1413_v33  ;;  %v657_v16 = vand.u32 2147483647, %v3324_v7  ;;  %v3408_v47 = vld [vmem:[%s5242_s2 + $0x90] sm:$0xff] }
  0x69   :  { %v686_v49 = vsel %vm3357_vm13, %v683_v61, %v680_v6  ;;  %2444 = vlog2.f32 %v1132_v12  ;;  %v3376_v27 = vmul.f32 0.5, %v1883_v18  ;;  %v1196_v48 = vmul.f32 %v1132_v12, %v3235_v41 }
  0x6a   :  { %2289 = vmatpush1.bf16.msra.mxu0 %v2288_v51  ;;  %v1479_v35 = vmul.f32 12.5, %v1415_v26  ;;  %v1541_v57 = vsub.f32 0.69049937, %v1477_v30  ;;  %v1134_v54 = vadd.f32 %v686_v49, %v238_v62  ;;  %v656_v17 = vmul.f32 %v3324_v7, %v655_v55  ;;  %v3394_v62 = vld [vmem:[%s5242_s2 + $0x80] sm:$0xff] }
  0x6b   :  { %v673_v34 = vadd.f32 1.0, %v672_v15  ;;  %v675_v28 = vand.u32 2147483647, %v3338_v4  ;;  %2446 = vpow2.f32 %v453_v36  ;;  %vm3396_vm14 = vcmp.lt.f32.partialorder %v657_v16, 0.0004427343  ;;  %v3422_v26 = vld [vmem:[%s5243_s3 + $0x80] sm:$0xff] }
  0x6c   :  { %v2435_v39 = vpop.eup %2434  ;;  %v1543_v18 = vsub.f32 0.69049937, %v1479_v35  ;;  %v1604_v11 = vadd.f32 %v3184_v0, %v1541_v57  ;;  %v1198_v41 = vmul.f32 %v1134_v54, %v3240_v2  ;;  %2448 = vlog2.f32 %v1134_v54 }
  0x6d   :  { %v2437_v1 = vpop.eup %2436  ;;  %v1691_v21 = vmul.f32 0.6931472, %v2435_v39  ;;  %v3400_v56 = vmul.f32 0.5, %v1885_v60  ;;  %v239_v61 = vmax.f32 %v3394_v62, 0.0  ;;  %v1260_v2 = vadd.f32 %v1196_v48, %v44_v63 }
  0x6e   :  { %v2439_v29 = vpop.eup %2438  ;;  %v1605_v0 = vadd.f32 %v1604_v11, %v1542_v25  ;;  %v1262_v36 = vadd.f32 %v1198_v41, %v46_v40  ;;  %v653_v43 = vmul.f32 0.6931472, %v2437_v1  ;;  %v674_v12 = vmul.f32 %v3338_v4, %v673_v34 }
  0x6f   :  { %v2441_v33 = vpop.eup %2440  ;;  %v1695_v44 = vmul.f32 0.6931472, %v2439_v29  ;;  %v1810_v6 = vsub.f32 -0.9189385, %v1691_v21  ;;  %vm3411_vm15 = vcmp.lt.f32.partialorder %v675_v28, 0.0004427343  ;;  %v1418_v35 = vmul.f32 %v1260_v2, %v1260_v2 }
  0x70   :  { %v3415_v15 = vpop.eup %2442  ;;  %v1606_v19 = vadd.f32 %v1605_v0, %v1543_v18  ;;  %v2290_v25 = vpack.c.bf16 %v1262_v36, %v1260_v2  ;;  %v659_v51 = vsel %vm3396_vm14, %v656_v17, %v653_v43  ;;  %v303_v30 = vand.u32 2147483647, %v3394_v62  ;;  %v45_v18 = vld [vmem:[%s5241_s1 + $0x70] sm:$0xff] }
  0x71   :  { %v1812_v60 = vsub.f32 -0.9189385, %v1695_v44  ;;  %v2002_v4 = vsub.f32 %v1810_v6, %v3254_v38  ;;  %v671_v49 = vmul.f32 0.6931472, %v2441_v33  ;;  %v305_v16 = vand.u32 2147483647, %v3408_v47 }
  0x72   :  { %2291 = vmatprep.subr.bf16.mxu0 %v2290_v25  ;;  %v1131_v57 = vadd.f32 %v659_v51, %v235_v5  ;;  %v1607_v54 = vadd.f32 %v1606_v19, %v1544_v42  ;;  %v1882_v48 = vmul.f32 %v3422_v26, %v3422_v26  ;;  %v43_v38 = vld [vmem:[%s5241_s1 + $0x60] sm:$0xff]  ;;  %v696_v31 = vadd.f32 1.0, %v3415_v15  ;;  %v3464_v51 = vld [vmem:[%s5242_s2 + $0xa8] sm:$0xff] }
  0x73   :  { %v2445_v63 = vpop.eup %2444  ;;  %v2004_v40 = vsub.f32 %v1812_v60, %v3256_v46  ;;  %v2065_v17 = vadd.f32 %v3247_v59, %v2002_v4  ;;  %v677_v34 = vsel %vm3411_vm15, %v674_v12, %v671_v49  ;;  %v367_v28 = vsub.f32 0.0, %v303_v30 }
  0x74   :  { %v1701_v5 = vmul.f32 0.6931472, %v2445_v63  ;;  %v1133_v22 = vadd.f32 %v677_v34, %v237_v50  ;;  %v1195_v42 = vmul.f32 %v1131_v57, %v3269_v52  ;;  %v1420_v46 = vmul.f32 %v1262_v36, %v1262_v36 }
  0x75   :  { %v3444_v39 = vpop.eup %2446  ;;  %v2066_v59 = vadd.f32 %v2065_v17, %v3309_v24  ;;  %2450 = vlog2.f32 %v1131_v57  ;;  %v699_v11 = vmul.f32 -0.5, %v3415_v15  ;;  %v369_v7 = vsub.f32 0.0, %v305_v16 }
  0x76   :  { %v2449_v41 = vpop.eup %2448  ;;  %v1815_v1 = vsub.f32 -0.9189385, %v1701_v5  ;;  %v1197_v45 = vmul.f32 %v1133_v22, %v3274_v58  ;;  %v1259_v50 = vadd.f32 %v1195_v42, %v43_v38  ;;  %2452 = vlog2.f32 %v1133_v22 }
  0x77   :  { %v2067_v52 = vadd.f32 %v2066_v59, %v2004_v40  ;;  %v1705_v21 = vmul.f32 0.6931472, %v2449_v41  ;;  %2454 = vlog2.f32 %v696_v31  ;;  %v1482_v29 = vmul.f32 12.5, %v1418_v35 }
  0x78   :  { %v3453_v24 = vsub.f32 %v1815_v1, %v3259_v13  ;;  %v1261_v0 = vadd.f32 %v1197_v45, %v45_v18  ;;  %v1417_v2 = vmul.f32 %v1259_v50, %v1259_v50  ;;  %v1484_v36 = vmul.f32 12.5, %v1420_v46  ;;  %v3486_v46 = vld [vmem:[%s5242_s2 + $0xa0] sm:$0xff] }
  0x79   :  { %v1817_v43 = vsub.f32 -0.9189385, %v1705_v21  ;;  %v2068_v33 = vadd.f32 %v2067_v52, %v3327_v10  ;;  %v714_v44 = vadd.f32 1.0, %v3444_v39  ;;  %v700_v55 = vadd.f32 1.0, %v699_v11  ;;  %v3469_v10 = vld [vmem:[%s5242_s2 + $0xb8] sm:$0xff] }
  0x7a   :  { %v2292_v6 = vpack.c.bf16 %v1261_v0, %v1259_v50  ;;  %v1419_v58 = vmul.f32 %v1261_v0, %v1261_v0  ;;  %v1481_v12 = vmul.f32 12.5, %v1417_v2  ;;  %v717_v25 = vmul.f32 -0.5, %v3444_v39 }
  0x7b   :  { %v3458_v19 = vsub.f32 %v1817_v43, %v3264_v20  ;;  %2456 = vlog2.f32 %v714_v44  ;;  %v447_v13 = vmul.f32 1.442695, %v367_v28  ;;  %v1546_v30 = vsub.f32 0.69049937, %v1482_v29 }
  0x7c   :  { %2293 = vmatpush1.bf16.msra.mxu0 %v2292_v6  ;;  %v1483_v60 = vmul.f32 12.5, %v1419_v58  ;;  %v1545_v4 = vsub.f32 0.69049937, %v1481_v12  ;;  %v241_v20 = vmax.f32 %v3408_v47, 0.0  ;;  %v702_v49 = vand.u32 2147483647, %v3415_v15 }
  0x7d   :  { %2458 = vpow2.f32 %v447_v13  ;;  %v451_v16 = vmul.f32 1.442695, %v369_v7  ;;  %v3473_v35 = vmul.f32 0.5, %v1882_v48  ;;  %v308_v40 = vand.u32 2147483647, %v3464_v51  ;;  %v3481_v48 = vld [vmem:[%s5243_s3 + $0x90] sm:$0xff] }
  0x7e   :  { %v1547_v57 = vsub.f32 0.69049937, %v1483_v60  ;;  %v1608_v63 = vadd.f32 %v1607_v54, %v1545_v4  ;;  %v310_v17 = vand.u32 2147483647, %v3469_v10  ;;  %v1548_v34 = vsub.f32 0.69049937, %v1484_v36 }
  0x7f   :  { %v2451_v38 = vpop.eup %2450  ;;  %v701_v31 = vmul.f32 %v3415_v15, %v700_v55  ;;  %v718_v5 = vadd.f32 1.0, %v717_v25  ;;  %2460 = vpow2.f32 %v451_v16  ;;  %v372_v59 = vsub.f32 0.0, %v308_v40  ;;  %v3505_v6 = vld [vmem:[%s5242_s2 + $0xb0] sm:$0xff]  ;;  %v48_v4 = vld [vmem:[%s5241_s1 + $0x88] sm:$0xff] }
  0x80   :  { %v2453_v22 = vpop.eup %2452  ;;  %v1609_v42 = vadd.f32 %v1608_v63, %v1546_v30  ;;  %v1699_v28 = vmul.f32 0.6931472, %v2451_v38  ;;  %v374_v54 = vsub.f32 0.0, %v310_v17  ;;  %vm3488_vm0 = vcmp.lt.f32.partialorder %v702_v49, 0.0004427343  ;;  %v3523_v49 = vld [vmem:[%s5243_s3 + $0xa8] sm:$0xff] }
  0x81   :  { %v2455_v18 = vpop.eup %2454  ;;  %v1703_v11 = vmul.f32 0.6931472, %v2453_v22  ;;  %v720_v41 = vand.u32 2147483647, %v3444_v39  ;;  %v1884_v1 = vmul.f32 %v3481_v48, %v3481_v48  ;;  %v457_v21 = vmul.f32 1.442695, %v372_v59 }
  0x82   :  { %v1610_v45 = vadd.f32 %v1609_v42, %v1547_v57  ;;  %v1814_v50 = vsub.f32 -0.9189385, %v1699_v28  ;;  %v698_v52 = vmul.f32 0.6931472, %v2455_v18  ;;  %v719_v29 = vmul.f32 %v3444_v39, %v718_v5  ;;  %v50_v5 = vld [vmem:[%s5241_s1 + $0x98] sm:$0xff] }
  0x83   :  { %v1816_v7 = vsub.f32 -0.9189385, %v1703_v11  ;;  %v461_v0 = vmul.f32 1.442695, %v374_v54  ;;  %v307_v2 = vand.u32 2147483647, %v3486_v46  ;;  %2462 = vpow2.f32 %v457_v21 }
  0x84   :  { %v2006_v36 = vsub.f32 %v1814_v50, %v3305_v9  ;;  %v704_v43 = vsel %vm3488_vm0, %v701_v31, %v698_v52  ;;  %v3500_v44 = vadd.f32 %v1610_v45, %v1548_v34  ;;  %vm3508_vm1 = vcmp.lt.f32.partialorder %v720_v41, 0.0004427343 }
  0x85   :  { %v2457_v58 = vpop.eup %2456  ;;  %v2008_v12 = vsub.f32 %v1816_v7, %v3312_v53  ;;  %v1136_v9 = vadd.f32 %v704_v43, %v240_v8  ;;  %2464 = vpow2.f32 %v461_v0  ;;  %v3514_v13 = vmul.f32 0.5, %v1884_v1 }
  0x86   :  { %v2069_v55 = vadd.f32 %v2068_v33, %v2006_v36  ;;  %v716_v25 = vmul.f32 0.6931472, %v2457_v58  ;;  %v371_v30 = vsub.f32 0.0, %v307_v2  ;;  %v244_v32 = vmax.f32 %v3464_v51, 0.0  ;;  %v3564_v36 = vld [vmem:[%s5243_s3 + $0xb0] sm:$0xff] }
  0x87   :  { %v2459_v60 = vpop.eup %2458  ;;  %v1200_v53 = vmul.f32 %v1136_v9, %v3346_v3  ;;  %2466 = vlog2.f32 %v1136_v9  ;;  %v309_v8 = vand.u32 2147483647, %v3505_v6  ;;  %v3533_v3 = vld [vmem:[%s5243_s3 + $0xb8] sm:$0xff]  ;;  %v1887_v63 = vmul.f32 %v3523_v49, %v3523_v49 }
  0x88   :  { %v2070_v33 = vadd.f32 %v2069_v55, %v3453_v24  ;;  %v722_v16 = vsel %vm3508_vm1, %v719_v29, %v716_v25  ;;  %v687_v57 = vadd.f32 1.0, %v2459_v60  ;;  %v690_v38 = vmul.f32 -0.5, %v2459_v60 }
  0x89   :  { %v2461_v40 = vpop.eup %2460  ;;  %v1138_v17 = vadd.f32 %v722_v16, %v242_v14  ;;  %v1889_v24 = vmul.f32 %v3533_v3, %v3533_v3  ;;  %v455_v34 = vmul.f32 1.442695, %v371_v30  ;;  %v1264_v22 = vadd.f32 %v1200_v53, %v48_v4  ;;  %v3583_v16 = vld [vmem:[%s5242_s2 + $0xd8] sm:$0xff] }
  0x8a   :  { %v2071_v31 = vadd.f32 %v2070_v33, %v2008_v12  ;;  %2468 = vlog2.f32 %v687_v57  ;;  %v705_v42 = vadd.f32 1.0, %v2461_v40  ;;  %v246_v59 = vmax.f32 %v3469_v10, 0.0  ;;  %v3578_v33 = vld [vmem:[%s5242_s2 + $0xc8] sm:$0xff] }
  0x8b   :  { %v1202_v28 = vmul.f32 %v1138_v17, %v3369_v37  ;;  %2470 = vlog2.f32 %v1138_v17  ;;  %v373_v14 = vsub.f32 0.0, %v309_v8  ;;  %v693_v54 = vand.u32 2147483647, %v2459_v60 }
  0x8c   :  { %2472 = vlog2.f32 %v705_v42  ;;  %v243_v18 = vmax.f32 %v3486_v46, 0.0  ;;  %v1886_v11 = vmul.f32 %v3549_v23, %v3549_v23  ;;  %v708_v41 = vmul.f32 -0.5, %v2461_v40 }
  0x8d   :  { %v1266_v15 = vadd.f32 %v1202_v28, %v50_v5  ;;  %v3555_v37 = vadd.f32 %v2071_v31, %v3458_v19  ;;  %2474 = vpow2.f32 %v455_v34  ;;  %v2463_v1 = vpop.eup %2462  ;;  %v1422_v45 = vmul.f32 %v1264_v22, %v1264_v22 }
  0x8e   :  { %v691_v50 = vadd.f32 1.0, %v690_v38  ;;  %v3557_v52 = vmul.f32 0.5, %v1887_v63  ;;  %v3559_v21 = vmul.f32 0.5, %v1889_v24  ;;  %v711_v0 = vand.u32 2147483647, %v2461_v40 }
  0x8f   :  { %v2465_v7 = vpop.eup %2464  ;;  %v2294_v29 = vpack.c.bf16 %v1266_v15, %v1264_v22  ;;  %v732_v2 = vadd.f32 1.0, %v2463_v1  ;;  %v459_v43 = vmul.f32 1.442695, %v373_v14  ;;  %v735_v19 = vmul.f32 -0.5, %v2463_v1 }
  0x90   :  { %v750_v58 = vadd.f32 1.0, %v2465_v7  ;;  %v245_v12 = vmax.f32 %v3505_v6, 0.0  ;;  %v1888_v39 = vmul.f32 %v3564_v36, %v3564_v36  ;;  %vm3569_vm2 = vcmp.lt.f32.partialorder %v693_v54, 0.0004427343 }
  0x91   :  { %v2467_v9 = vpop.eup %2466  ;;  %2295 = vmatprep.subr.bf16.mxu0 %v2294_v29  ;;  %v709_v25 = vadd.f32 1.0, %v708_v41  ;;  %2476 = vlog2.f32 %v732_v2  ;;  %v3573_v30 = vmul.f32 0.5, %v1886_v11  ;;  %v1424_v4 = vmul.f32 %v1266_v15, %v1266_v15 }
  0x92   :  { %v1709_v53 = vmul.f32 0.6931472, %v2467_v9  ;;  %v692_v8 = vmul.f32 %v2459_v60, %v691_v50  ;;  %2478 = vlog2.f32 %v750_v58  ;;  %v3585_v57 = vmul.f32 12.5, %v1422_v45 }
  0x93   :  { %vm3587_vm3 = vcmp.lt.f32.partialorder %v711_v0, 0.0004427343  ;;  %v753_v17 = vmul.f32 -0.5, %v2465_v7  ;;  %2480 = vpow2.f32 %v459_v43  ;;  %v736_v24 = vadd.f32 1.0, %v735_v19 }
  0x94   :  { %v2469_v60 = vpop.eup %2468  ;;  %v1819_v38 = vsub.f32 -0.9189385, %v1709_v53  ;;  %v738_v34 = vand.u32 2147483647, %v2463_v1  ;;  %v3591_v31 = vmul.f32 0.5, %v1888_v39  ;;  %v710_v42 = vmul.f32 %v2461_v40, %v709_v25  ;;  %v47_v39 = vld [vmem:[%s5241_s1 + $0x80] sm:$0xff] }
  0x95   :  { %v2471_v5 = vpop.eup %2470  ;;  %v689_v22 = vmul.f32 0.6931472, %v2469_v60  ;;  %v312_v28 = vand.u32 2147483647, %v3578_v33  ;;  %v314_v14 = vand.u32 2147483647, %v3583_v16  ;;  %v737_v55 = vmul.f32 %v2463_v1, %v736_v24 }
  0x96   :  { %v2473_v54 = vpop.eup %2472  ;;  %v3595_v11 = vmul.f32 12.5, %v1424_v4  ;;  %v1713_v15 = vmul.f32 0.6931472, %v2471_v5  ;;  %v3598_v41 = vsub.f32 %v1819_v38, %v3376_v27  ;;  %v756_v45 = vand.u32 2147483647, %v2465_v7 }
  0x97   :  { %v3600_v50 = vpop.eup %2474  ;;  %v695_v29 = vsel %vm3569_vm2, %v692_v8, %v689_v22  ;;  %v707_v0 = vmul.f32 0.6931472, %v2473_v54  ;;  %v754_v2 = vadd.f32 1.0, %v753_v17  ;;  %v376_v40 = vsub.f32 0.0, %v312_v28  ;;  %v49_v17 = vld [vmem:[%s5241_s1 + $0x90] sm:$0xff] }
  0x98   :  { %v1821_v43 = vsub.f32 -0.9189385, %v1713_v15  ;;  %v1135_v19 = vadd.f32 %v695_v29, %v239_v61  ;;  %vm3606_vm4 = vcmp.lt.f32.partialorder %v738_v34, 0.0004427343  ;;  %v723_v27 = vadd.f32 1.0, %v3600_v50 }
  0x99   :  { %v713_v9 = vsel %vm3587_vm3, %v710_v42, %v707_v0  ;;  %v378_v25 = vsub.f32 0.0, %v314_v14  ;;  %v465_v4 = vmul.f32 1.442695, %v376_v40  ;;  %v755_v60 = vmul.f32 %v2465_v7, %v754_v2  ;;  %v52_v0 = vld [vmem:[%s5241_s1 + $0xa8] sm:$0xff]  ;;  %v54_v40 = vld [vmem:[%s5241_s1 + $0xb8] sm:$0xff] }
  0x9a   :  { %v3617_v53 = vsub.f32 %v1821_v43, %v3400_v56  ;;  %v1137_v62 = vadd.f32 %v713_v9, %v241_v20  ;;  %v1199_v61 = vmul.f32 %v1135_v19, %v3422_v26  ;;  %2482 = vlog2.f32 %v1135_v19 }
  0x9b   :  { %v2477_v8 = vpop.eup %2476  ;;  %vm3625_vm5 = vcmp.lt.f32.partialorder %v756_v45, 0.0004427343  ;;  %2484 = vlog2.f32 %v723_v27  ;;  %v726_v56 = vmul.f32 -0.5, %v3600_v50  ;;  %v1550_v24 = vsub.f32 0.69049937, %v3585_v57 }
  0x9c   :  { %v2479_v1 = vpop.eup %2478  ;;  %v1201_v47 = vmul.f32 %v1137_v62, %v3481_v48  ;;  %v1263_v20 = vadd.f32 %v1199_v61, %v47_v39  ;;  %2486 = vlog2.f32 %v1137_v62  ;;  %v734_v26 = vmul.f32 0.6931472, %v2477_v8 }
  0x9d   :  { %v3631_v38 = vpop.eup %2480  ;;  %v1552_v34 = vsub.f32 0.69049937, %v3595_v11  ;;  %v752_v7 = vmul.f32 0.6931472, %v2479_v1  ;;  %2488 = vpow2.f32 %v465_v4  ;;  %v469_v28 = vmul.f32 1.442695, %v378_v25 }
  0x9e   :  { %v1265_v5 = vadd.f32 %v1201_v47, %v49_v17  ;;  %v1421_v22 = vmul.f32 %v1263_v20, %v1263_v20  ;;  %v740_v42 = vsel %vm3606_vm4, %v737_v55, %v734_v26  ;;  %v727_v54 = vadd.f32 1.0, %v726_v56  ;;  %v3660_v4 = vld [vmem:[%s5243_s3 + $0xc8] sm:$0xff] }
  0x9f   :  { %v758_v48 = vsel %vm3625_vm5, %v755_v60, %v752_v7  ;;  %v1140_v14 = vadd.f32 %v740_v42, %v244_v32  ;;  %v741_v15 = vadd.f32 1.0, %v3631_v38  ;;  %v729_v32 = vand.u32 2147483647, %v3600_v50 }
  0xa0   :  { %v2296_v57 = vpack.c.bf16 %v1265_v5, %v1263_v20  ;;  %v1423_v45 = vmul.f32 %v1265_v5, %v1265_v5  ;;  %v1485_v29 = vmul.f32 12.5, %v1421_v22  ;;  %v1142_v2 = vadd.f32 %v758_v48, %v246_v59 }
  0xa1   :  { %v1204_v51 = vmul.f32 %v1140_v14, %v3523_v49  ;;  %2490 = vlog2.f32 %v1140_v14  ;;  %v248_v43 = vmax.f32 %v3578_v33, 0.0  ;;  %v728_v10 = vmul.f32 %v3600_v50, %v727_v54  ;;  %v3770_v33 = vld [vmem:[%s5243_s3 + $0xc0] sm:$0xff] }
  0xa2   :  { %2297 = vmatpush1.bf16.msra.mxu0 %v2296_v57  ;;  %v1487_v19 = vmul.f32 12.5, %v1423_v45  ;;  %v1549_v58 = vsub.f32 0.69049937, %v1485_v29  ;;  %v1206_v27 = vmul.f32 %v1142_v2, %v3533_v3  ;;  %2492 = vlog2.f32 %v1142_v2  ;;  %v51_v45 = vld [vmem:[%s5241_s1 + $0xa0] sm:$0xff] }
  0xa3   :  { %v1268_v39 = vadd.f32 %v1204_v51, %v52_v0  ;;  %2494 = vlog2.f32 %v741_v15  ;;  %v744_v59 = vmul.f32 -0.5, %v3631_v38  ;;  %vm3662_vm6 = vcmp.lt.f32.partialorder %v729_v32, 0.0004427343  ;;  %v3709_v51 = vld [vmem:[%s5242_s2 + $0xd0] sm:$0xff] }
  0xa4   :  { %v2483_v9 = vpop.eup %2482  ;;  %v1551_v55 = vsub.f32 0.69049937, %v1487_v19  ;;  %v1612_v49 = vadd.f32 %v3500_v44, %v1549_v58  ;;  %v1270_v25 = vadd.f32 %v1206_v27, %v54_v40  ;;  %2496 = vpow2.f32 %v469_v28  ;;  %v3674_v44 = vld [vmem:[%s5242_s2 + $0xc0] sm:$0xff]  ;;  %v3684_v28 = vld [vmem:[%s5243_s3 + $0xd8] sm:$0xff] }
  0xa5   :  { %v2485_v62 = vpop.eup %2484  ;;  %v1707_v3 = vmul.f32 0.6931472, %v2483_v9  ;;  %v250_v50 = vmax.f32 %v3583_v16, 0.0  ;;  %v3669_v8 = vmul.f32 %v3660_v4, %v3660_v4  ;;  %v747_v1 = vand.u32 2147483647, %v3631_v38 }
  0xa6   :  { %v2487_v17 = vpop.eup %2486  ;;  %v1613_v60 = vadd.f32 %v1612_v49, %v1550_v24  ;;  %v2298_v63 = vpack.c.bf16 %v1270_v25, %v1268_v39  ;;  %v725_v56 = vmul.f32 0.6931472, %v2485_v62  ;;  %v1426_v7 = vmul.f32 %v1268_v39, %v1268_v39 }
  0xa7   :  { %v3677_v47 = vpop.eup %2488  ;;  %v1711_v20 = vmul.f32 0.6931472, %v2487_v17  ;;  %v1818_v26 = vsub.f32 -0.9189385, %v1707_v3  ;;  %v745_v5 = vadd.f32 1.0, %v744_v59  ;;  %v1893_v57 = vmul.f32 %v3684_v28, %v3684_v28 }
  0xa8   :  { %v1614_v22 = vadd.f32 %v1613_v60, %v1551_v55  ;;  %2299 = vmatprep.subr.bf16.mxu0 %v2298_v63  ;;  %v731_v42 = vsel %vm3662_vm6, %v728_v10, %v725_v56  ;;  %v768_v24 = vadd.f32 1.0, %v3677_v47  ;;  %v311_v48 = vand.u32 2147483647, %v3674_v44 }
  0xa9   :  { %v1820_v14 = vsub.f32 -0.9189385, %v1711_v20  ;;  %v2010_v54 = vsub.f32 %v1818_v26, %v3473_v35  ;;  %v1139_v15 = vadd.f32 %v731_v42, %v243_v18  ;;  %vm3696_vm7 = vcmp.lt.f32.partialorder %v747_v1, 0.0004427343  ;;  %v53_v26 = vld [vmem:[%s5241_s1 + $0xb0] sm:$0xff] }
  0xaa   :  { %v1615_v0 = vadd.f32 %v1614_v22, %v1552_v34  ;;  %2498 = vlog2.f32 %v768_v24  ;;  %v771_v35 = vmul.f32 -0.5, %v3677_v47  ;;  %v1490_v19 = vmul.f32 12.5, %v1426_v7  ;;  %v3806_v24 = vld [vmem:[%s5242_s2 + $0xe0] sm:$0xff] }
  0xab   :  { %v2491_v2 = vpop.eup %2490  ;;  %v2012_v46 = vsub.f32 %v1820_v14, %v3514_v13  ;;  %v2073_v18 = vadd.f32 %v3555_v37, %v2010_v54  ;;  %v1203_v40 = vmul.f32 %v1139_v15, %v3549_v23  ;;  %2500 = vlog2.f32 %v1139_v15 }
  0xac   :  { %v2493_v32 = vpop.eup %2492  ;;  %v1717_v11 = vmul.f32 0.6931472, %v2491_v2  ;;  %v746_v34 = vmul.f32 %v3631_v38, %v745_v5  ;;  %v375_v58 = vsub.f32 0.0, %v311_v48  ;;  %v772_v37 = vadd.f32 1.0, %v771_v35 }
  0xad   :  { %v2495_v27 = vpop.eup %2494  ;;  %v2074_v39 = vadd.f32 %v2073_v18, %v3598_v41  ;;  %v1721_v13 = vmul.f32 0.6931472, %v2493_v32  ;;  %v1267_v10 = vadd.f32 %v1203_v40, %v51_v45  ;;  %v1428_v23 = vmul.f32 %v1270_v25, %v1270_v25 }
  0xae   :  { %v3713_v59 = vpop.eup %2496  ;;  %v1823_v9 = vsub.f32 -0.9189385, %v1717_v11  ;;  %v743_v55 = vmul.f32 0.6931472, %v2495_v27  ;;  %v313_v49 = vand.u32 2147483647, %v3709_v51 }
  0xaf   :  { %v2075_v62 = vadd.f32 %v2074_v39, %v2012_v46  ;;  %v1825_v3 = vsub.f32 -0.9189385, %v1721_v13  ;;  %v1425_v61 = vmul.f32 %v1267_v10, %v1267_v10  ;;  %v786_v17 = vadd.f32 1.0, %v3713_v59  ;;  %v56_v13 = vld [vmem:[%s5241_s1 + $0xc8] sm:$0xff] }
  0xb0   :  { %v1554_v38 = vsub.f32 0.69049937, %v1490_v19  ;;  %v3718_v60 = vsub.f32 %v1823_v9, %v3557_v52  ;;  %v749_v41 = vsel %vm3696_vm7, %v746_v34, %v743_v55  ;;  %v774_v63 = vand.u32 2147483647, %v3677_v47 }
  0xb1   :  { %v3724_v25 = vsub.f32 %v1825_v3, %v3559_v21  ;;  %v1141_v56 = vadd.f32 %v749_v41, %v245_v12  ;;  %v1489_v1 = vmul.f32 12.5, %v1425_v61  ;;  %v2076_v20 = vadd.f32 %v2075_v62, %v3617_v53 }
  0xb2   :  { %v773_v52 = vmul.f32 %v3677_v47, %v772_v37  ;;  %2502 = vlog2.f32 %v786_v17  ;;  %v789_v7 = vmul.f32 -0.5, %v3713_v59  ;;  %v377_v5 = vsub.f32 0.0, %v313_v49 }
  0xb3   :  { %v1205_v22 = vmul.f32 %v1141_v56, %v3564_v36  ;;  %v1553_v21 = vsub.f32 0.69049937, %v1489_v1  ;;  %2504 = vlog2.f32 %v1141_v56  ;;  %v463_v42 = vmul.f32 1.442695, %v375_v58  ;;  %v3745_v36 = vld [vmem:[%s5242_s2 + $0xe8] sm:$0xff] }
  0xb4   :  { %v2499_v6 = vpop.eup %2498  ;;  %v1492_v12 = vmul.f32 12.5, %v1428_v23  ;;  %vm3735_vm8 = vcmp.lt.f32.partialorder %v774_v63, 0.0004427343  ;;  %v3740_v53 = vmul.f32 0.5, %v3669_v8  ;;  %v467_v48 = vmul.f32 1.442695, %v377_v5 }
  0xb5   :  { %v2501_v47 = vpop.eup %2500  ;;  %v1269_v14 = vadd.f32 %v1205_v22, %v53_v26  ;;  %v1616_v54 = vadd.f32 %v1615_v0, %v1553_v21  ;;  %v770_v15 = vmul.f32 0.6931472, %v2499_v6  ;;  %2506 = vpow2.f32 %v463_v42  ;;  %v3752_v8 = vld [vmem:[%s5242_s2 + $0xf8] sm:$0xff] }
  0xb6   :  { %v1715_v45 = vmul.f32 0.6931472, %v2501_v47  ;;  %v790_v29 = vadd.f32 1.0, %v789_v7  ;;  %v3747_v35 = vmul.f32 0.5, %v1893_v57  ;;  %2508 = vpow2.f32 %v467_v48  ;;  %v58_v48 = vld [vmem:[%s5241_s1 + $0xd8] sm:$0xff] }
  0xb7   :  { %v2300_v2 = vpack.c.bf16 %v1269_v14, %v1267_v10  ;;  %v1427_v46 = vmul.f32 %v1269_v14, %v1269_v14  ;;  %v1617_v0 = vadd.f32 %v1616_v54, %v1554_v38  ;;  %v776_v18 = vsel %vm3735_vm8, %v773_v52, %v770_v15 }
  0xb8   :  { %v1822_v40 = vsub.f32 -0.9189385, %v1715_v45  ;;  %v792_v32 = vand.u32 2147483647, %v3713_v59  ;;  %v1144_v19 = vadd.f32 %v776_v18, %v248_v43  ;;  %v316_v57 = vand.u32 2147483647, %v3745_v36 }
  0xb9   :  { %v1556_v11 = vsub.f32 0.69049937, %v1492_v12  ;;  %2301 = vmatpush1.bf16.msra.mxu0 %v2300_v2  ;;  %v1491_v34 = vmul.f32 12.5, %v1427_v46  ;;  %v247_v58 = vmax.f32 %v3674_v44, 0.0  ;;  %v318_v27 = vand.u32 2147483647, %v3752_v8 }
  0xba   :  { %v2014_v39 = vsub.f32 %v1822_v40, %v3573_v30  ;;  %v1208_v10 = vmul.f32 %v1144_v19, %v3660_v4  ;;  %2510 = vlog2.f32 %v1144_v19  ;;  %v380_v43 = vsub.f32 0.0, %v316_v57  ;;  %v3776_v30 = vld [vmem:[%s5243_s3 + $0xd0] sm:$0xff]  ;;  %v3824_v46 = vld [vmem:[%s5243_s3 + $0xf8] sm:$0xff] }
  0xbb   :  { %v1555_v37 = vsub.f32 0.69049937, %v1491_v34  ;;  %v791_v23 = vmul.f32 %v3713_v59, %v790_v29  ;;  %v1890_v9 = vmul.f32 %v3770_v33, %v3770_v33  ;;  %v382_v55 = vsub.f32 0.0, %v318_v27  ;;  %v3819_v29 = vld [vmem:[%s5242_s2 + $0xf0] sm:$0xff] }
  0xbc   :  { %v2503_v4 = vpop.eup %2502  ;;  %v2077_v49 = vadd.f32 %v2076_v20, %v2014_v39  ;;  %vm3780_vm9 = vcmp.lt.f32.partialorder %v792_v32, 0.0004427343  ;;  %v1892_v3 = vmul.f32 %v3776_v30, %v3776_v30  ;;  %v473_v61 = vmul.f32 1.442695, %v380_v43 }
  0xbd   :  { %v2505_v59 = vpop.eup %2504  ;;  %v1618_v17 = vadd.f32 %v1617_v0, %v1555_v37  ;;  %v788_v38 = vmul.f32 0.6931472, %v2503_v4  ;;  %v1272_v41 = vadd.f32 %v1208_v10, %v56_v13  ;;  %v477_v63 = vmul.f32 1.442695, %v382_v55 }
  0xbe   :  { %v1719_v56 = vmul.f32 0.6931472, %v2505_v59  ;;  %v2078_v1 = vadd.f32 %v2077_v49, %v3718_v60  ;;  %v249_v26 = vmax.f32 %v3709_v51, 0.0  ;;  %2512 = vpow2.f32 %v473_v61  ;;  %v3801_v60 = vld [vmem:[%s5243_s3 + $0xe8] sm:$0xff] }
  0xbf   :  { %v2507_v20 = vpop.eup %2506  ;;  %v794_v52 = vsel %vm3780_vm9, %v791_v23, %v788_v38  ;;  %v3790_v7 = vadd.f32 %v1618_v17, %v1556_v11  ;;  %v3792_v5 = vmul.f32 0.5, %v1890_v9  ;;  %2514 = vpow2.f32 %v477_v63 }
  0xc0   :  { %v2509_v22 = vpop.eup %2508  ;;  %v1824_v21 = vsub.f32 -0.9189385, %v1719_v56  ;;  %v1146_v42 = vadd.f32 %v794_v52, %v250_v50  ;;  %v759_v6 = vadd.f32 1.0, %v2507_v20  ;;  %v3796_v12 = vmul.f32 0.5, %v1892_v3 }
  0xc1   :  { %v1430_v47 = vmul.f32 %v1272_v41, %v1272_v41  ;;  %v777_v16 = vadd.f32 1.0, %v2509_v22  ;;  %v252_v50 = vmax.f32 %v3745_v36, 0.0  ;;  %v1895_v14 = vmul.f32 %v3801_v60, %v3801_v60  ;;  %v60_v36 = vld [vmem:[%s5241_s1 + $0xe8] sm:$0xff] }
  0xc2   :  { %v2016_v54 = vsub.f32 %v1824_v21, %v3591_v31  ;;  %v1210_v15 = vmul.f32 %v1146_v42, %v3684_v28  ;;  %2516 = vlog2.f32 %v1146_v42  ;;  %v762_v45 = vmul.f32 -0.5, %v2507_v20  ;;  %v3857_v42 = vld [vmem:[%s5243_s3 + $0xe0] sm:$0xff] }
  0xc3   :  { %2518 = vlog2.f32 %v759_v6  ;;  %v780_v2 = vmul.f32 -0.5, %v2509_v22  ;;  %v254_v0 = vmax.f32 %v3752_v8, 0.0  ;;  %v315_v31 = vand.u32 2147483647, %v3806_v24 }
  0xc4   :  { %v2511_v18 = vpop.eup %2510  ;;  %v2079_v28 = vadd.f32 %v2078_v1, %v2016_v54  ;;  %v1274_v40 = vadd.f32 %v1210_v15, %v58_v48  ;;  %2520 = vlog2.f32 %v777_v16  ;;  %v1897_v32 = vmul.f32 %v3824_v46, %v3824_v46  ;;  %v3869_v16 = vld [vmem:[%s5242_s2 + $0x118] sm:$0xff] }
  0xc5   :  { %v3830_v19 = vmul.f32 12.5, %v1430_v47  ;;  %v1725_v57 = vmul.f32 0.6931472, %v2511_v18  ;;  %v3832_v11 = vmul.f32 0.5, %v1895_v14  ;;  %v317_v34 = vand.u32 2147483647, %v3819_v29 }
  0xc6   :  { %v2302_v27 = vpack.c.bf16 %v1274_v40, %v1272_v41  ;;  %v763_v39 = vadd.f32 1.0, %v762_v45  ;;  %v765_v13 = vand.u32 2147483647, %v2507_v20  ;;  %v3836_v10 = vadd.f32 %v2079_v28, %v3724_v25 }
  0xc7   :  { %v1827_v43 = vsub.f32 -0.9189385, %v1725_v57  ;;  %v781_v37 = vadd.f32 1.0, %v780_v2  ;;  %v783_v23 = vand.u32 2147483647, %v2509_v22  ;;  %v379_v9 = vsub.f32 0.0, %v315_v31 }
  0xc8   :  { %v2513_v55 = vpop.eup %2512  ;;  %2303 = vmatprep.subr.bf16.mxu0 %v2302_v27  ;;  %v3838_v4 = vmul.f32 0.5, %v1897_v32  ;;  %v251_v49 = vmax.f32 %v3806_v24, 0.0  ;;  %v253_v62 = vmax.f32 %v3819_v29, 0.0  ;;  %v381_v3 = vsub.f32 0.0, %v317_v34  ;;  %v3876_v2 = vld [vmem:[%s5243_s3 + $0xf0] sm:$0xff] }
  0xc9   :  { %v2515_v61 = vpop.eup %2514  ;;  %v1432_v59 = vmul.f32 %v1274_v40, %v1274_v40  ;;  %v1558_v17 = vsub.f32 0.69049937, %v3830_v19  ;;  %v3844_v25 = vsub.f32 %v1827_v43, %v3740_v53  ;;  %v804_v38 = vadd.f32 1.0, %v2513_v55 }
  0xca   :  { %v764_v41 = vmul.f32 %v2507_v20, %v763_v39  ;;  %vm3846_vm10 = vcmp.lt.f32.partialorder %v765_v13, 0.0004427343  ;;  %v807_v56 = vmul.f32 -0.5, %v2513_v55  ;;  %v822_v1 = vadd.f32 1.0, %v2515_v61 }
  0xcb   :  { %v782_v52 = vmul.f32 %v2509_v22, %v781_v37  ;;  %vm3850_vm11 = vcmp.lt.f32.partialorder %v783_v23, 0.0004427343  ;;  %2522 = vlog2.f32 %v804_v38  ;;  %v471_v53 = vmul.f32 1.442695, %v379_v9  ;;  %v3864_v22 = vld [vmem:[%s5242_s2 + $0x108] sm:$0xff] }
  0xcc   :  { %v2517_v6 = vpop.eup %2516  ;;  %2524 = vlog2.f32 %v822_v1  ;;  %v825_v20 = vmul.f32 -0.5, %v2515_v61  ;;  %v475_v48 = vmul.f32 1.442695, %v381_v3  ;;  %v1894_v47 = vmul.f32 %v3857_v42, %v3857_v42  ;;  %v57_v1 = vld [vmem:[%s5241_s1 + $0xd0] sm:$0xff] }
  0xcd   :  { %v2519_v14 = vpop.eup %2518  ;;  %v3871_v54 = vmul.f32 12.5, %v1432_v59  ;;  %v1729_v15 = vmul.f32 0.6931472, %v2517_v6  ;;  %v810_v45 = vand.u32 2147483647, %v2513_v55  ;;  %2526 = vpow2.f32 %v471_v53 }
  0xce   :  { %v2521_v31 = vpop.eup %2520  ;;  %v761_v18 = vmul.f32 0.6931472, %v2519_v14  ;;  %v808_v28 = vadd.f32 1.0, %v807_v56  ;;  %v828_v40 = vand.u32 2147483647, %v2515_v61  ;;  %v256_v32 = vmax.f32 %v3864_v22, 0.0 }
  0xcf   :  { %v1829_v57 = vsub.f32 -0.9189385, %v1729_v15  ;;  %v779_v34 = vmul.f32 0.6931472, %v2521_v31  ;;  %v1896_v27 = vmul.f32 %v3876_v2, %v3876_v2  ;;  %v320_v39 = vand.u32 2147483647, %v3864_v22 }
  0xd0   :  { %v767_v13 = vsel %vm3846_vm10, %v764_v41, %v761_v18  ;;  %v826_v43 = vadd.f32 1.0, %v825_v20  ;;  %2528 = vpow2.f32 %v475_v48  ;;  %v322_v37 = vand.u32 2147483647, %v3869_v16  ;;  %v55_v41 = vld [vmem:[%s5241_s1 + $0xc0] sm:$0xff] }
  0xd1   :  { %v3886_v23 = vsub.f32 %v1829_v57, %v3747_v35  ;;  %v785_v9 = vsel %vm3850_vm11, %v782_v52, %v779_v34  ;;  %v1143_v3 = vadd.f32 %v767_v13, %v247_v58  ;;  %v384_v59 = vsub.f32 0.0, %v320_v39 }
  0xd2   :  { %v1560_v38 = vsub.f32 0.69049937, %v3871_v54  ;;  %v1145_v63 = vadd.f32 %v785_v9, %v249_v26  ;;  %v258_v56 = vmax.f32 %v3869_v16, 0.0  ;;  %v386_v35 = vsub.f32 0.0, %v322_v37 }
  0xd3   :  { %v1207_v44 = vmul.f32 %v1143_v3, %v3770_v33  ;;  %2530 = vlog2.f32 %v1143_v3  ;;  %vm3903_vm12 = vcmp.lt.f32.partialorder %v810_v45, 0.0004427343  ;;  %v481_v52 = vmul.f32 1.442695, %v384_v59  ;;  %v3915_v33 = vld [vmem:[%s5243_s3 + $0x108] sm:$0xff]  ;;  %v3942_v3 = vld [vmem:[%s5242_s2 + $0x100] sm:$0xff] }
  0xd4   :  { %v1209_v21 = vmul.f32 %v1145_v63, %v3776_v30  ;;  %2532 = vlog2.f32 %v1145_v63  ;;  %v809_v51 = vmul.f32 %v2513_v55, %v808_v28  ;;  %v485_v26 = vmul.f32 1.442695, %v386_v35  ;;  %v3922_v55 = vld [vmem:[%s5243_s3 + $0x118] sm:$0xff] }
  0xd5   :  { %v2523_v53 = vpop.eup %2522  ;;  %v1271_v6 = vadd.f32 %v1207_v44, %v55_v41  ;;  %v827_v20 = vmul.f32 %v2515_v61, %v826_v43  ;;  %vm3908_vm13 = vcmp.lt.f32.partialorder %v828_v40, 0.0004427343  ;;  %2534 = vpow2.f32 %v481_v52 }
  0xd6   :  { %v2525_v14 = vpop.eup %2524  ;;  %v1273_v15 = vadd.f32 %v1209_v21, %v57_v1  ;;  %v806_v45 = vmul.f32 0.6931472, %v2523_v53  ;;  %v3917_v30 = vmul.f32 0.5, %v1894_v47  ;;  %v1899_v61 = vmul.f32 %v3915_v33, %v3915_v33 }
  0xd7   :  { %v3926_v31 = vpop.eup %2526  ;;  %v1429_v18 = vmul.f32 %v1271_v6, %v1271_v6  ;;  %v824_v28 = vmul.f32 0.6931472, %v2525_v14  ;;  %2536 = vpow2.f32 %v485_v26  ;;  %v1901_v40 = vmul.f32 %v3922_v55, %v3922_v55 }
  0xd8   :  { %v2304_v57 = vpack.c.bf16 %v1273_v15, %v1271_v6  ;;  %v1431_v34 = vmul.f32 %v1273_v15, %v1273_v15  ;;  %v812_v47 = vsel %vm3903_vm12, %v809_v51, %v806_v45  ;;  %v795_v39 = vadd.f32 1.0, %v3926_v31 }
  0xd9   :  { %v1493_v13 = vmul.f32 12.5, %v1429_v18  ;;  %v830_v43 = vsel %vm3908_vm13, %v827_v20, %v824_v28  ;;  %v1148_v37 = vadd.f32 %v812_v47, %v252_v50  ;;  %v3937_v9 = vmul.f32 0.5, %v1896_v27  ;;  %v62_v50 = vld [vmem:[%s5241_s1 + $0xf8] sm:$0xff]  ;;  %v3978_v18 = vld [vmem:[%s5243_s3 + $0x100] sm:$0xff] }
  0xda   :  { %v3944_v59 = vpop.eup %2528  ;;  %2305 = vmatpush1.bf16.msra.mxu0 %v2304_v57  ;;  %v1495_v41 = vmul.f32 12.5, %v1431_v34  ;;  %v1150_v63 = vadd.f32 %v830_v43, %v254_v0  ;;  %2538 = vlog2.f32 %v795_v39  ;;  %v255_v35 = vmax.f32 %v3942_v3, 0.0 }
  0xdb   :  { %v1557_v1 = vsub.f32 0.69049937, %v1493_v13  ;;  %v1212_v27 = vmul.f32 %v1148_v37, %v3801_v60  ;;  %2540 = vlog2.f32 %v1148_v37  ;;  %v798_v44 = vmul.f32 -0.5, %v3926_v31  ;;  %v3967_v60 = vld [vmem:[%s5242_s2 + $0x110] sm:$0xff] }
  0xdc   :  { %v1214_v8 = vmul.f32 %v1150_v63, %v3824_v46  ;;  %2542 = vlog2.f32 %v1150_v63  ;;  %v3958_v0 = vmul.f32 0.5, %v1899_v61  ;;  %v3960_v58 = vmul.f32 0.5, %v1901_v40 }
  0xdd   :  { %v2531_v52 = vpop.eup %2530  ;;  %v1559_v21 = vsub.f32 0.69049937, %v1495_v41  ;;  %v1620_v51 = vadd.f32 %v3790_v7, %v1557_v1  ;;  %v813_v26 = vadd.f32 1.0, %v3944_v59  ;;  %v319_v53 = vand.u32 2147483647, %v3942_v3 }
  0xde   :  { %v2533_v6 = vpop.eup %2532  ;;  %v1723_v46 = vmul.f32 0.6931472, %v2531_v52  ;;  %v1276_v20 = vadd.f32 %v1212_v27, %v60_v36  ;;  %v1278_v48 = vadd.f32 %v1214_v8, %v62_v50  ;;  %v816_v14 = vmul.f32 -0.5, %v3944_v59 }
  0xdf   :  { %v3971_v15 = vpop.eup %2534  ;;  %v1621_v7 = vadd.f32 %v1620_v51, %v1558_v17  ;;  %v1727_v45 = vmul.f32 0.6931472, %v2533_v6  ;;  %v799_v61 = vadd.f32 1.0, %v798_v44  ;;  %2544 = vlog2.f32 %v813_v26 }
  0xe0   :  { %v1826_v28 = vsub.f32 -0.9189385, %v1723_v46  ;;  %v2306_v40 = vpack.c.bf16 %v1278_v48, %v1276_v20  ;;  %v801_v57 = vand.u32 2147483647, %v3926_v31  ;;  %v321_v34 = vand.u32 2147483647, %v3967_v60 }
  0xe1   :  { %v3982_v47 = vpop.eup %2536  ;;  %v1622_v39 = vadd.f32 %v1621_v7, %v1559_v21  ;;  %v1828_v13 = vsub.f32 -0.9189385, %v1727_v45  ;;  %v257_v19 = vmax.f32 %v3967_v60, 0.0  ;;  %v3987_v17 = vmul.f32 %v3978_v18, %v3978_v18 }
  0xe2   :  { %v2018_v43 = vsub.f32 %v1826_v28, %v3792_v5  ;;  %2307 = vmatprep.subr.bf16.mxu0 %v2306_v40  ;;  %v817_v37 = vadd.f32 1.0, %v816_v14  ;;  %v819_v41 = vand.u32 2147483647, %v3944_v59  ;;  %v840_v63 = vadd.f32 1.0, %v3971_v15  ;;  %v61_v5 = vld [vmem:[%s5241_s1 + $0xf0] sm:$0xff] }
  0xe3   :  { %v2020_v1 = vsub.f32 %v1828_v13, %v3796_v12  ;;  %v800_v36 = vmul.f32 %v3926_v31, %v799_v61  ;;  %v3996_v50 = vadd.f32 %v1622_v39, %v1560_v38  ;;  %v383_v27 = vsub.f32 0.0, %v319_v53 }
  0xe4   :  { %v2539_v44 = vpop.eup %2538  ;;  %v2081_v8 = vadd.f32 %v3836_v10, %v2018_v43  ;;  %vm3999_vm14 = vcmp.lt.f32.partialorder %v801_v57, 0.0004427343  ;;  %2546 = vlog2.f32 %v840_v63  ;;  %v385_v52 = vsub.f32 0.0, %v321_v34  ;;  %v59_v57 = vld [vmem:[%s5241_s1 + $0xe0] sm:$0xff] }
  0xe5   :  { %v2541_v21 = vpop.eup %2540  ;;  %v1434_v51 = vmul.f32 %v1276_v20, %v1276_v20  ;;  %v797_v26 = vmul.f32 0.6931472, %v2539_v44  ;;  %v843_v12 = vmul.f32 -0.5, %v3971_v15  ;;  %v858_v31 = vadd.f32 1.0, %v3982_v47 }
  0xe6   :  { %v2543_v54 = vpop.eup %2542  ;;  %v2082_v38 = vadd.f32 %v2081_v8, %v3844_v25  ;;  %v1733_v53 = vmul.f32 0.6931472, %v2541_v21  ;;  %v818_v6 = vmul.f32 %v3944_v59, %v817_v37  ;;  %vm4007_vm15 = vcmp.lt.f32.partialorder %v819_v41, 0.0004427343  ;;  %v4033_v41 = vld [vmem:[%s5242_s2 + $0x128] sm:$0xff] }
  0xe7   :  { %v1737_v46 = vmul.f32 0.6931472, %v2543_v54  ;;  %v803_v14 = vsel %vm3999_vm14, %v800_v36, %v797_v26  ;;  %v846_v20 = vand.u32 2147483647, %v3971_v15  ;;  %2548 = vlog2.f32 %v858_v31 }
  0xe8   :  { %v2083_v7 = vadd.f32 %v2082_v38, %v2020_v1  ;;  %v1831_v45 = vsub.f32 -0.9189385, %v1733_v53  ;;  %v1147_v61 = vadd.f32 %v803_v14, %v251_v49  ;;  %v861_v25 = vmul.f32 -0.5, %v3982_v47 }
  0xe9   :  { %v2545_v28 = vpop.eup %2544  ;;  %v1436_v59 = vmul.f32 %v1278_v48, %v1278_v48  ;;  %v1833_v40 = vsub.f32 -0.9189385, %v1737_v46  ;;  %v844_v34 = vadd.f32 1.0, %v843_v12  ;;  %v479_v39 = vmul.f32 1.442695, %v383_v27 }
  0xea   :  { %v4021_v13 = vsub.f32 %v1831_v45, %v3832_v11  ;;  %v815_v43 = vmul.f32 0.6931472, %v2545_v28  ;;  %v1211_v37 = vmul.f32 %v1147_v61, %v3857_v42  ;;  %2550 = vlog2.f32 %v1147_v61  ;;  %v64_v28 = vld [vmem:[%s5241_s1 + $0x108] sm:$0xff] }
  0xeb   :  { %v1498_v24 = vmul.f32 12.5, %v1434_v51  ;;  %v4025_v49 = vsub.f32 %v1833_v40, %v3838_v4  ;;  %v4028_v48 = vadd.f32 %v2083_v7, %v3886_v23  ;;  %2552 = vpow2.f32 %v479_v39  ;;  %v4040_v4 = vld [vmem:[%s5242_s2 + $0x138] sm:$0xff] }
  0xec   :  { %v821_v11 = vsel %vm4007_vm15, %v818_v6, %v815_v43  ;;  %v1275_v63 = vadd.f32 %v1211_v37, %v59_v57  ;;  %v862_v1 = vadd.f32 1.0, %v861_v25  ;;  %v483_v42 = vmul.f32 1.442695, %v385_v52 }
  0xed   :  { %v4042_v36 = vmul.f32 12.5, %v1436_v59  ;;  %v1149_v23 = vadd.f32 %v821_v11, %v253_v62  ;;  %v845_v27 = vmul.f32 %v3971_v15, %v844_v34  ;;  %v864_v44 = vand.u32 2147483647, %v3982_v47  ;;  %v4060_v15 = vld [vmem:[%s5243_s3 + $0x110] sm:$0xff] }
  0xee   :  { %v2547_v8 = vpop.eup %2546  ;;  %v1433_v52 = vmul.f32 %v1275_v63, %v1275_v63  ;;  %vm4051_vm0 = vcmp.lt.f32.partialorder %v846_v20, 0.0004427343  ;;  %2554 = vpow2.f32 %v483_v42  ;;  %v324_v51 = vand.u32 2147483647, %v4033_v41 }
  0xef   :  { %v1213_v29 = vmul.f32 %v1149_v23, %v3876_v2  ;;  %2556 = vlog2.f32 %v1149_v23  ;;  %v842_v62 = vmul.f32 0.6931472, %v2547_v8  ;;  %v326_v26 = vand.u32 2147483647, %v4040_v4 }
  0xf0   :  { %v1497_v12 = vmul.f32 12.5, %v1433_v52  ;;  %v863_v31 = vmul.f32 %v3982_v47, %v862_v1  ;;  %v1900_v54 = vmul.f32 %v4060_v15, %v4060_v15  ;;  %v388_v38 = vsub.f32 0.0, %v324_v51 }
  0xf1   :  { %v2549_v53 = vpop.eup %2548  ;;  %v1562_v6 = vsub.f32 0.69049937, %v1498_v24  ;;  %v1277_v10 = vadd.f32 %v1213_v29, %v61_v5  ;;  %v848_v2 = vsel %vm4051_vm0, %v845_v27, %v842_v62  ;;  %vm4068_vm1 = vcmp.lt.f32.partialorder %v864_v44, 0.0004427343  ;;  %v4089_v24 = vld [vmem:[%s5243_s3 + $0x128] sm:$0xff] }
  0xf2   :  { %v1561_v14 = vsub.f32 0.69049937, %v1497_v12  ;;  %v860_v20 = vmul.f32 0.6931472, %v2549_v53  ;;  %v1152_v7 = vadd.f32 %v848_v2, %v256_v32  ;;  %v489_v47 = vmul.f32 1.442695, %v388_v38 }
  0xf3   :  { %v1564_v45 = vsub.f32 0.69049937, %v4042_v36  ;;  %v2308_v61 = vpack.c.bf16 %v1277_v10, %v1275_v63  ;;  %v1435_v25 = vmul.f32 %v1277_v10, %v1277_v10  ;;  %v390_v59 = vsub.f32 0.0, %v326_v26  ;;  %v4120_v38 = vld [vmem:[%s5242_s2 + $0x120] sm:$0xff] }
  0xf4   :  { %v2551_v40 = vpop.eup %2550  ;;  %v1624_v57 = vadd.f32 %v3996_v50, %v1561_v14  ;;  %v866_v34 = vsel %vm4068_vm1, %v863_v31, %v860_v20  ;;  %v1216_v39 = vmul.f32 %v1152_v7, %v3915_v33  ;;  %2558 = vlog2.f32 %v1152_v7  ;;  %v66_v33 = vld [vmem:[%s5241_s1 + $0x118] sm:$0xff] }
  0xf5   :  { %v4082_v22 = vpop.eup %2552  ;;  %2309 = vmatpush1.bf16.msra.mxu0 %v2308_v61  ;;  %v1499_v32 = vmul.f32 12.5, %v1435_v25  ;;  %v1731_v43 = vmul.f32 0.6931472, %v2551_v40  ;;  %v1154_v37 = vadd.f32 %v866_v34, %v258_v56  ;;  %2560 = vpow2.f32 %v489_v47 }
  0xf6   :  { %v1625_v50 = vadd.f32 %v1624_v57, %v1562_v6  ;;  %v1280_v11 = vadd.f32 %v1216_v39, %v64_v28  ;;  %v831_v63 = vadd.f32 1.0, %v4082_v22  ;;  %v1903_v1 = vmul.f32 %v4089_v24, %v4089_v24 }
  0xf7   :  { %v1563_v42 = vsub.f32 0.69049937, %v1499_v32  ;;  %v1830_v16 = vsub.f32 -0.9189385, %v1731_v43  ;;  %v1218_v56 = vmul.f32 %v1154_v37, %v3922_v55  ;;  %2562 = vlog2.f32 %v1154_v37  ;;  %v4109_v55 = vld [vmem:[%s5243_s3 + $0x138] sm:$0xff] }
  0xf8   :  { %v4098_v36 = vpop.eup %2554  ;;  %2564 = vlog2.f32 %v831_v63  ;;  %v834_v23 = vmul.f32 -0.5, %v4082_v22  ;;  %v4102_v27 = vmul.f32 0.5, %v3987_v17  ;;  %v493_v44 = vmul.f32 1.442695, %v390_v59 }
  0xf9   :  { %v2557_v8 = vpop.eup %2556  ;;  %v1626_v5 = vadd.f32 %v1625_v50, %v1563_v42  ;;  %v2022_v52 = vsub.f32 %v1830_v16, %v3917_v30  ;;  %v1282_v21 = vadd.f32 %v1218_v56, %v66_v33  ;;  %v849_v51 = vadd.f32 1.0, %v4098_v36 }
  0xfa   :  { %v1735_v29 = vmul.f32 0.6931472, %v2557_v8  ;;  %v4111_v62 = vmul.f32 0.5, %v1900_v54  ;;  %v260_v26 = vmax.f32 %v4033_v41, 0.0  ;;  %v1905_v17 = vmul.f32 %v4109_v55, %v4109_v55  ;;  %v4125_v54 = vld [vmem:[%s5242_s2 + $0x130] sm:$0xff] }
  0xfb   :  { %v2085_v12 = vadd.f32 %v4028_v48, %v2022_v52  ;;  %v2310_v31 = vpack.c.bf16 %v1282_v21, %v1280_v11  ;;  %v1438_v30 = vmul.f32 %v1280_v11, %v1280_v11  ;;  %2566 = vlog2.f32 %v849_v51  ;;  %v4163_v51 = vld [vmem:[%s5242_s2 + $0x148] sm:$0xff] }
  0xfc   :  { %v1832_v53 = vsub.f32 -0.9189385, %v1735_v29  ;;  %v835_v6 = vadd.f32 1.0, %v834_v23  ;;  %v852_v10 = vmul.f32 -0.5, %v4098_v36  ;;  %v4128_v2 = vadd.f32 %v1626_v5, %v1564_v45 }
  0xfd   :  { %v2086_v48 = vadd.f32 %v2085_v12, %v4021_v13  ;;  %2311 = vmatprep.subr.bf16.mxu0 %v2310_v31  ;;  %v262_v46 = vmax.f32 %v4040_v4, 0.0  ;;  %2568 = vpow2.f32 %v493_v44  ;;  %v4132_v14 = vmul.f32 0.5, %v1903_v1  ;;  %v63_v12 = vld [vmem:[%s5241_s1 + $0x100] sm:$0xff] }
  0xfe   :  { %v2559_v20 = vpop.eup %2558  ;;  %v2024_v7 = vsub.f32 %v1832_v53, %v3937_v9  ;;  %v837_v47 = vand.u32 2147483647, %v4082_v22  ;;  %v323_v61 = vand.u32 2147483647, %v4120_v38  ;;  %v325_v25 = vand.u32 2147483647, %v4125_v54 }
  0xff   :  { %v4138_v28 = vpop.eup %2560  ;;  %v4140_v45 = vmul.f32 12.5, %v1438_v30  ;;  %v1741_v13 = vmul.f32 0.6931472, %v2559_v20  ;;  %v4142_v59 = vmul.f32 0.5, %v1905_v17  ;;  %v259_v40 = vmax.f32 %v4120_v38, 0.0 }
 0x100   :  { %v2087_v57 = vadd.f32 %v2086_v48, %v2024_v7  ;;  %v836_v34 = vmul.f32 %v4082_v22, %v835_v6  ;;  %v853_v39 = vadd.f32 1.0, %v852_v10  ;;  %v876_v9 = vadd.f32 1.0, %v4138_v28 }
 0x101   :  { %v2563_v32 = vpop.eup %2562  ;;  %v1835_v43 = vsub.f32 -0.9189385, %v1741_v13  ;;  %v855_v37 = vand.u32 2147483647, %v4098_v36  ;;  %v387_v50 = vsub.f32 0.0, %v323_v61  ;;  %v389_v33 = vsub.f32 0.0, %v325_v25 }
 0x102   :  { %v2565_v11 = vpop.eup %2564  ;;  %v1745_v63 = vmul.f32 0.6931472, %v2563_v32  ;;  %vm4148_vm2 = vcmp.lt.f32.partialorder %v837_v47, 0.0004427343  ;;  %v4153_v42 = vadd.f32 %v2087_v57, %v4025_v49  ;;  %2570 = vlog2.f32 %v876_v9  ;;  %v4168_v49 = vld [vmem:[%s5242_s2 + $0x158] sm:$0xff]  ;;  %v65_v13 = vld [vmem:[%s5241_s1 + $0x110] sm:$0xff] }
 0x103   :  { %v4156_v22 = vsub.f32 %v1835_v43, %v3958_v0  ;;  %v833_v16 = vmul.f32 0.6931472, %v2565_v11  ;;  %v879_v56 = vmul.f32 -0.5, %v4138_v28  ;;  %v487_v23 = vmul.f32 1.442695, %v387_v50 }
 0x104   :  { %v1440_v44 = vmul.f32 %v1282_v21, %v1282_v21  ;;  %v1837_v8 = vsub.f32 -0.9189385, %v1745_v63  ;;  %v854_v5 = vmul.f32 %v4098_v36, %v853_v39  ;;  %v491_v52 = vmul.f32 1.442695, %v389_v33 }
 0x105   :  { %v2567_v0 = vpop.eup %2566  ;;  %v839_v29 = vsel %vm4148_vm2, %v836_v34, %v833_v16  ;;  %vm4172_vm3 = vcmp.lt.f32.partialorder %v855_v37, 0.0004427343  ;;  %v882_v36 = vand.u32 2147483647, %v4138_v28  ;;  %2572 = vpow2.f32 %v487_v23 }
 0x106   :  { %v4178_v17 = vsub.f32 %v1837_v8, %v3960_v58  ;;  %v851_v31 = vmul.f32 0.6931472, %v2567_v0  ;;  %v1151_v30 = vadd.f32 %v839_v29, %v255_v35  ;;  %2574 = vpow2.f32 %v491_v52 }
 0x107   :  { %v2569_v53 = vpop.eup %2568  ;;  %v880_v6 = vadd.f32 1.0, %v879_v56  ;;  %v261_v10 = vmax.f32 %v4125_v54, 0.0  ;;  %v328_v48 = vand.u32 2147483647, %v4163_v51  ;;  %v330_v20 = vand.u32 2147483647, %v4168_v49 }
 0x108   :  { %v857_v58 = vsel %vm4172_vm3, %v854_v5, %v851_v31  ;;  %v1215_v7 = vmul.f32 %v1151_v30, %v3978_v18  ;;  %2576 = vlog2.f32 %v1151_v30  ;;  %v894_v47 = vadd.f32 1.0, %v2569_v53  ;;  %v4202_v18 = vld [vmem:[%s5243_s3 + $0x120] sm:$0xff] }
 0x109   :  { %v4191_v61 = vmul.f32 12.5, %v1440_v44  ;;  %v1566_v3 = vsub.f32 0.69049937, %v4140_v45  ;;  %v1153_v35 = vadd.f32 %v857_v58, %v257_v19  ;;  %v392_v25 = vsub.f32 0.0, %v328_v48  ;;  %v4209_v19 = vld [vmem:[%s5243_s3 + $0x130] sm:$0xff] }
 0x10a   :  { %v1279_v57 = vadd.f32 %v1215_v7, %v63_v12  ;;  %2578 = vlog2.f32 %v894_v47  ;;  %v897_v34 = vmul.f32 -0.5, %v2569_v53  ;;  %v394_v39 = vsub.f32 0.0, %v330_v20  ;;  %v4234_v12 = vld [vmem:[%s5243_s3 + $0x148] sm:$0xff] }
 0x10b   :  { %v1217_v9 = vmul.f32 %v1153_v35, %v4060_v15  ;;  %2580 = vlog2.f32 %v1153_v35  ;;  %v881_v60 = vmul.f32 %v4138_v28, %v880_v6  ;;  %v1902_v45 = vmul.f32 %v4202_v18, %v4202_v18 }
 0x10c   :  { %v2571_v32 = vpop.eup %2570  ;;  %v1437_v43 = vmul.f32 %v1279_v57, %v1279_v57  ;;  %vm4213_vm4 = vcmp.lt.f32.partialorder %v882_v36, 0.0004427343  ;;  %v497_v50 = vmul.f32 1.442695, %v392_v25  ;;  %v501_v33 = vmul.f32 1.442695, %v394_v39 }
 0x10d   :  { %v1568_v15 = vsub.f32 0.69049937, %v4191_v61  ;;  %v1281_v11 = vadd.f32 %v1217_v9, %v65_v13  ;;  %v878_v28 = vmul.f32 0.6931472, %v2571_v32  ;;  %v1904_v63 = vmul.f32 %v4209_v19, %v4209_v19  ;;  %v68_v13 = vld [vmem:[%s5241_s1 + $0x128] sm:$0xff] }
 0x10e   :  { %v1501_v1 = vmul.f32 12.5, %v1437_v43  ;;  %v898_v16 = vadd.f32 1.0, %v897_v34  ;;  %v900_v56 = vand.u32 2147483647, %v2569_v53  ;;  %2582 = vpow2.f32 %v497_v50 }
 0x10f   :  { %v4220_v23 = vpop.eup %2572  ;;  %v2312_v44 = vpack.c.bf16 %v1281_v11, %v1279_v57  ;;  %v1439_v8 = vmul.f32 %v1281_v11, %v1281_v11  ;;  %v884_v5 = vsel %vm4213_vm4, %v881_v60, %v878_v28  ;;  %2584 = vpow2.f32 %v501_v33 }
 0x110   :  { %v4224_v52 = vpop.eup %2574  ;;  %v1565_v0 = vsub.f32 0.69049937, %v1501_v1  ;;  %v1156_v29 = vadd.f32 %v884_v5, %v260_v26  ;;  %v867_v21 = vadd.f32 1.0, %v4220_v23  ;;  %v4229_v36 = vmul.f32 0.5, %v1902_v45 }
 0x111   :  { %2313 = vmatpush1.bf16.msra.mxu0 %v2312_v44  ;;  %v1503_v31 = vmul.f32 12.5, %v1439_v8  ;;  %v885_v30 = vadd.f32 1.0, %v4224_v52  ;;  %v264_v6 = vmax.f32 %v4163_v51, 0.0  ;;  %v1907_v48 = vmul.f32 %v4234_v12, %v4234_v12 }
 0x112   :  { %v2577_v41 = vpop.eup %2576  ;;  %v1628_v26 = vadd.f32 %v4128_v2, %v1565_v0  ;;  %v899_v20 = vmul.f32 %v2569_v53, %v898_v16  ;;  %vm4241_vm5 = vcmp.lt.f32.partialorder %v900_v56, 0.0004427343  ;;  %2586 = vlog2.f32 %v1156_v29  ;;  %v4254_v53 = vld [vmem:[%s5243_s3 + $0x158] sm:$0xff] }
 0x113   :  { %v1567_v7 = vsub.f32 0.69049937, %v1503_v31  ;;  %v1739_v47 = vmul.f32 0.6931472, %v2577_v41  ;;  %2588 = vlog2.f32 %v867_v21  ;;  %v870_v61 = vmul.f32 -0.5, %v4220_v23 }
 0x114   :  { %v2579_v35 = vpop.eup %2578  ;;  %v1629_v25 = vadd.f32 %v1628_v26, %v1566_v3  ;;  %v1220_v57 = vmul.f32 %v1156_v29, %v4089_v24  ;;  %2590 = vlog2.f32 %v885_v30  ;;  %v888_v2 = vmul.f32 -0.5, %v4224_v52 }
 0x115   :  { %v2581_v34 = vpop.eup %2580  ;;  %v1834_v39 = vsub.f32 -0.9189385, %v1739_v47  ;;  %v896_v9 = vmul.f32 0.6931472, %v2579_v35  ;;  %v4256_v60 = vmul.f32 0.5, %v1904_v63  ;;  %v266_v3 = vmax.f32 %v4168_v49, 0.0 }
 0x116   :  { %v1630_v45 = vadd.f32 %v1629_v25, %v1567_v7  ;;  %v1743_v32 = vmul.f32 0.6931472, %v2581_v34  ;;  %v1909_v24 = vmul.f32 %v4254_v53, %v4254_v53  ;;  %v4261_v43 = vmul.f32 0.5, %v1907_v48 }
 0x117   :  { %v2026_v37 = vsub.f32 %v1834_v39, %v4102_v27  ;;  %v902_v50 = vsel %vm4241_vm5, %v899_v20, %v896_v9  ;;  %v871_v33 = vadd.f32 1.0, %v870_v61  ;;  %v873_v11 = vand.u32 2147483647, %v4220_v23  ;;  %v70_v27 = vld [vmem:[%s5241_s1 + $0x138] sm:$0xff]  ;;  %v4300_v20 = vld [vmem:[%s5242_s2 + $0x150] sm:$0xff] }
 0x118   :  { %v4267_v28 = vpop.eup %2582  ;;  %v1836_v63 = vsub.f32 -0.9189385, %v1743_v32  ;;  %v1158_v1 = vadd.f32 %v902_v50, %v262_v46  ;;  %v1284_v16 = vadd.f32 %v1220_v57, %v68_v13  ;;  %v889_v56 = vadd.f32 1.0, %v888_v2 }
 0x119   :  { %v4271_v44 = vpop.eup %2584  ;;  %v2089_v8 = vadd.f32 %v4153_v42, %v2026_v37  ;;  %v891_v5 = vand.u32 2147483647, %v4224_v52  ;;  %v4278_v0 = vadd.f32 %v1630_v45, %v1568_v15  ;;  %v912_v29 = vadd.f32 1.0, %v4267_v28  ;;  %v4287_v42 = vld [vmem:[%s5242_s2 + $0x140] sm:$0xff] }
 0x11a   :  { %v2028_v21 = vsub.f32 %v1836_v63, %v4111_v62  ;;  %v1222_v4 = vmul.f32 %v1158_v1, %v4109_v55  ;;  %2592 = vlog2.f32 %v1158_v1  ;;  %v915_v46 = vmul.f32 -0.5, %v4267_v28 }
 0x11b   :  { %v2090_v31 = vadd.f32 %v2089_v8, %v4156_v22  ;;  %v872_v30 = vmul.f32 %v4220_v23, %v871_v33  ;;  %vm4291_vm6 = vcmp.lt.f32.partialorder %v873_v11, 0.0004427343  ;;  %2594 = vlog2.f32 %v912_v29  ;;  %v67_v11 = vld [vmem:[%s5241_s1 + $0x120] sm:$0xff] }
 0x11c   :  { %v2587_v62 = vpop.eup %2586  ;;  %v1286_v48 = vadd.f32 %v1222_v4, %v70_v27  ;;  %v1442_v55 = vmul.f32 %v1284_v16, %v1284_v16  ;;  %v890_v41 = vmul.f32 %v4224_v52, %v889_v56  ;;  %v930_v26 = vadd.f32 1.0, %v4271_v44 }
 0x11d   :  { %v2589_v22 = vpop.eup %2588  ;;  %v2091_v58 = vadd.f32 %v2090_v31, %v2028_v21  ;;  %v1749_v23 = vmul.f32 0.6931472, %v2587_v62  ;;  %vm4302_vm7 = vcmp.lt.f32.partialorder %v891_v5, 0.0004427343  ;;  %v327_v47 = vand.u32 2147483647, %v4287_v42 }
 0x11e   :  { %v2591_v61 = vpop.eup %2590  ;;  %v2314_v35 = vpack.c.bf16 %v1286_v48, %v1284_v16  ;;  %v869_v25 = vmul.f32 0.6931472, %v2589_v22  ;;  %v916_v52 = vadd.f32 1.0, %v915_v46  ;;  %2596 = vlog2.f32 %v930_v26  ;;  %v69_v16 = vld [vmem:[%s5241_s1 + $0x130] sm:$0xff] }
 0x11f   :  { %v1839_v13 = vsub.f32 -0.9189385, %v1749_v23  ;;  %v887_v57 = vmul.f32 0.6931472, %v2591_v61  ;;  %v4308_v2 = vadd.f32 %v2091_v58, %v4178_v17  ;;  %v933_v34 = vmul.f32 -0.5, %v4271_v44 }
 0x120   :  { %2315 = vmatprep.subr.bf16.mxu0 %v2314_v35  ;;  %v4311_v39 = vmul.f32 12.5, %v1442_v55  ;;  %v875_v9 = vsel %vm4291_vm6, %v872_v30, %v869_v25  ;;  %v4315_v45 = vmul.f32 0.5, %v1909_v24  ;;  %v329_v32 = vand.u32 2147483647, %v4300_v20 }
 0x121   :  { %v4319_v37 = vsub.f32 %v1839_v13, %v4132_v14  ;;  %v893_v50 = vsel %vm4302_vm7, %v890_v41, %v887_v57  ;;  %v1155_v17 = vadd.f32 %v875_v9, %v259_v40  ;;  %v918_v33 = vand.u32 2147483647, %v4267_v28 }
 0x122   :  { %v1157_v24 = vadd.f32 %v893_v50, %v261_v10  ;;  %v936_v63 = vand.u32 2147483647, %v4271_v44  ;;  %v391_v1 = vsub.f32 0.0, %v327_v47  ;;  %v393_v14 = vsub.f32 0.0, %v329_v32 }
 0x123   :  { %v1219_v38 = vmul.f32 %v1155_v17, %v4202_v18  ;;  %2598 = vlog2.f32 %v1155_v17  ;;  %v917_v40 = vmul.f32 %v4267_v28, %v916_v52  ;;  %v934_v56 = vadd.f32 1.0, %v933_v34  ;;  %v4345_v18 = vld [vmem:[%s5242_s2 + $0x168] sm:$0xff] }
 0x124   :  { %v2593_v8 = vpop.eup %2592  ;;  %v1221_v27 = vmul.f32 %v1157_v24, %v4209_v19  ;;  %2600 = vlog2.f32 %v1157_v24  ;;  %v495_v54 = vmul.f32 1.442695, %v391_v1  ;;  %v499_v10 = vmul.f32 1.442695, %v393_v14 }
 0x125   :  { %v2595_v5 = vpop.eup %2594  ;;  %v1444_v29 = vmul.f32 %v1286_v48, %v1286_v48  ;;  %v1753_v21 = vmul.f32 0.6931472, %v2593_v8  ;;  %v1283_v4 = vadd.f32 %v1219_v38, %v67_v11  ;;  %vm4338_vm8 = vcmp.lt.f32.partialorder %v918_v33, 0.0004427343  ;;  %v4355_v48 = vld [vmem:[%s5242_s2 + $0x178] sm:$0xff] }
 0x126   :  { %v1285_v28 = vadd.f32 %v1221_v27, %v69_v16  ;;  %v914_v31 = vmul.f32 0.6931472, %v2595_v5  ;;  %vm4347_vm9 = vcmp.lt.f32.partialorder %v936_v63, 0.0004427343  ;;  %2602 = vpow2.f32 %v495_v54  ;;  %v74_v11 = vld [vmem:[%s5241_s1 + $0x158] sm:$0xff] }
 0x127   :  { %v1841_v30 = vsub.f32 -0.9189385, %v1753_v21  ;;  %v1441_v15 = vmul.f32 %v1283_v4, %v1283_v4  ;;  %v935_v62 = vmul.f32 %v4271_v44, %v934_v56  ;;  %2604 = vpow2.f32 %v499_v10  ;;  %v4403_v21 = vld [vmem:[%s5243_s3 + $0x168] sm:$0xff] }
 0x128   :  { %v2597_v55 = vpop.eup %2596  ;;  %v2316_v41 = vpack.c.bf16 %v1285_v28, %v1283_v4  ;;  %v1443_v26 = vmul.f32 %v1285_v28, %v1285_v28  ;;  %v920_v22 = vsel %vm4338_vm8, %v917_v40, %v914_v31  ;;  %v332_v58 = vand.u32 2147483647, %v4345_v18 }
 0x129   :  { %v4361_v23 = vsub.f32 %v1841_v30, %v4142_v59  ;;  %v1505_v7 = vmul.f32 12.5, %v1441_v15  ;;  %v932_v47 = vmul.f32 0.6931472, %v2597_v55  ;;  %v1160_v44 = vadd.f32 %v920_v22, %v264_v6  ;;  %v72_v59 = vld [vmem:[%s5241_s1 + $0x148] sm:$0xff]  ;;  %v4378_v6 = vld [vmem:[%s5243_s3 + $0x140] sm:$0xff] }
 0x12a   :  { %v1570_v61 = vsub.f32 0.69049937, %v4311_v39  ;;  %2317 = vmatpush1.bf16.msra.mxu0 %v2316_v41  ;;  %v1507_v35 = vmul.f32 12.5, %v1443_v26  ;;  %v334_v25 = vand.u32 2147483647, %v4355_v48  ;;  %v396_v52 = vsub.f32 0.0, %v332_v58 }
 0x12b   :  { %v1569_v13 = vsub.f32 0.69049937, %v1505_v7  ;;  %v938_v57 = vsel %vm4347_vm9, %v935_v62, %v932_v47  ;;  %v1224_v34 = vmul.f32 %v1160_v44, %v4234_v12  ;;  %2606 = vlog2.f32 %v1160_v44  ;;  %v4420_v26 = vld [vmem:[%s5243_s3 + $0x178] sm:$0xff]  ;;  %v4430_v47 = vld [vmem:[%s5242_s2 + $0x160] sm:$0xff] }
 0x12c   :  { %v1162_v51 = vadd.f32 %v938_v57, %v266_v3  ;;  %v263_v39 = vmax.f32 %v4287_v42, 0.0  ;;  %v398_v9 = vsub.f32 0.0, %v334_v25  ;;  %v505_v32 = vmul.f32 1.442695, %v396_v52 }
 0x12d   :  { %v2599_v50 = vpop.eup %2598  ;;  %v1508_v17 = vmul.f32 12.5, %v1444_v29  ;;  %v1571_v12 = vsub.f32 0.69049937, %v1507_v35  ;;  %v1632_v33 = vadd.f32 %v4278_v0, %v1569_v13  ;;  %v1906_v49 = vmul.f32 %v4378_v6, %v4378_v6  ;;  %v4391_v0 = vld [vmem:[%s5243_s3 + $0x150] sm:$0xff] }
 0x12e   :  { %v2601_v3 = vpop.eup %2600  ;;  %v1747_v24 = vmul.f32 0.6931472, %v2599_v50  ;;  %v1226_v63 = vmul.f32 %v1162_v51, %v4254_v53  ;;  %2608 = vlog2.f32 %v1162_v51  ;;  %v509_v1 = vmul.f32 1.442695, %v398_v9 }
 0x12f   :  { %v1633_v14 = vadd.f32 %v1632_v33, %v1570_v61  ;;  %v1751_v16 = vmul.f32 0.6931472, %v2601_v3  ;;  %v1288_v38 = vadd.f32 %v1224_v34, %v72_v59  ;;  %2610 = vpow2.f32 %v505_v32  ;;  %v4443_v34 = vld [vmem:[%s5242_s2 + $0x170] sm:$0xff] }
 0x130   :  { %v4393_v40 = vpop.eup %2602  ;;  %v1838_v56 = vsub.f32 -0.9189385, %v1747_v24  ;;  %v1290_v8 = vadd.f32 %v1226_v63, %v74_v11  ;;  %v1908_v27 = vmul.f32 %v4391_v0, %v4391_v0  ;;  %2612 = vpow2.f32 %v509_v1 }
 0x131   :  { %v4397_v53 = vpop.eup %2604  ;;  %v1572_v54 = vsub.f32 0.69049937, %v1508_v17  ;;  %v1634_v10 = vadd.f32 %v1633_v14, %v1571_v12  ;;  %v1840_v5 = vsub.f32 -0.9189385, %v1751_v16  ;;  %v903_v29 = vadd.f32 1.0, %v4393_v40 }
 0x132   :  { %v2030_v4 = vsub.f32 %v1838_v56, %v4229_v36  ;;  %v2318_v46 = vpack.c.bf16 %v1290_v8, %v1288_v38  ;;  %v265_v28 = vmax.f32 %v4300_v20, 0.0  ;;  %v1911_v31 = vmul.f32 %v4403_v21, %v4403_v21 }
 0x133   :  { %v2032_v19 = vsub.f32 %v1840_v5, %v4256_v60  ;;  %v1446_v30 = vmul.f32 %v1288_v38, %v1288_v38  ;;  %2614 = vlog2.f32 %v903_v29  ;;  %v4410_v15 = vmul.f32 0.5, %v1906_v49  ;;  %v4471_v29 = vld [vmem:[%s5243_s3 + $0x160] sm:$0xff] }
 0x134   :  { %v2093_v62 = vadd.f32 %v4308_v2, %v2030_v4  ;;  %2319 = vmatprep.subr.bf16.mxu0 %v2318_v46  ;;  %v906_v55 = vmul.f32 -0.5, %v4393_v40  ;;  %v921_v41 = vadd.f32 1.0, %v4397_v53  ;;  %v4415_v36 = vmul.f32 0.5, %v1908_v27 }
 0x135   :  { %v2607_v22 = vpop.eup %2606  ;;  %v1448_v60 = vmul.f32 %v1290_v8, %v1290_v8  ;;  %v4422_v58 = vadd.f32 %v1634_v10, %v1572_v54  ;;  %v268_v7 = vmax.f32 %v4345_v18, 0.0  ;;  %v1913_v2 = vmul.f32 %v4420_v26, %v4420_v26  ;;  %v78_v18 = vld [vmem:[%s5241_s1 + $0x178] sm:$0xff] }
 0x136   :  { %v2094_v44 = vadd.f32 %v2093_v62, %v4319_v37  ;;  %v1757_v61 = vmul.f32 0.6931472, %v2607_v22  ;;  %v270_v35 = vmax.f32 %v4355_v48, 0.0  ;;  %v4434_v25 = vmul.f32 0.5, %v1911_v31 }
 0x137   :  { %v4436_v52 = vmul.f32 12.5, %v1446_v30  ;;  %v909_v13 = vand.u32 2147483647, %v4393_v40  ;;  %2616 = vlog2.f32 %v921_v41  ;;  %v924_v57 = vmul.f32 -0.5, %v4397_v53  ;;  %v4489_v41 = vld [vmem:[%s5242_s2 + $0x198] sm:$0xff] }
 0x138   :  { %v2609_v59 = vpop.eup %2608  ;;  %v2095_v51 = vadd.f32 %v2094_v44, %v2032_v19  ;;  %v1843_v37 = vsub.f32 -0.9189385, %v1757_v61  ;;  %v907_v9 = vadd.f32 1.0, %v906_v55  ;;  %v331_v32 = vand.u32 2147483647, %v4430_v47 }
 0x139   :  { %v2611_v50 = vpop.eup %2610  ;;  %v4446_v17 = vmul.f32 12.5, %v1448_v60  ;;  %v1761_v12 = vmul.f32 0.6931472, %v2609_v59  ;;  %v927_v33 = vand.u32 2147483647, %v4397_v53  ;;  %v4449_v11 = vmul.f32 0.5, %v1913_v2 }
 0x13a   :  { %v2613_v49 = vpop.eup %2612  ;;  %v4452_v3 = vsub.f32 %v1843_v37, %v4261_v43  ;;  %v4455_v24 = vadd.f32 %v2095_v51, %v4361_v23  ;;  %v948_v63 = vadd.f32 1.0, %v2611_v50  ;;  %v333_v1 = vand.u32 2147483647, %v4443_v34  ;;  %v71_v59 = vld [vmem:[%s5241_s1 + $0x140] sm:$0xff] }
 0x13b   :  { %v1574_v14 = vsub.f32 0.69049937, %v4436_v52  ;;  %v1845_v16 = vsub.f32 -0.9189385, %v1761_v12  ;;  %v925_v38 = vadd.f32 1.0, %v924_v57  ;;  %v966_v56 = vadd.f32 1.0, %v2613_v49 }
 0x13c   :  { %v908_v8 = vmul.f32 %v4393_v40, %v907_v9  ;;  %2618 = vlog2.f32 %v948_v63  ;;  %v951_v27 = vmul.f32 -0.5, %v2611_v50  ;;  %v395_v54 = vsub.f32 0.0, %v331_v32  ;;  %v4476_v40 = vld [vmem:[%s5242_s2 + $0x188] sm:$0xff] }
 0x13d   :  { %v2615_v10 = vpop.eup %2614  ;;  %v1576_v43 = vsub.f32 0.69049937, %v4446_v17  ;;  %v4462_v5 = vsub.f32 %v1845_v16, %v4315_v45  ;;  %vm4464_vm10 = vcmp.lt.f32.partialorder %v909_v13, 0.0004427343  ;;  %2620 = vlog2.f32 %v966_v56 }
 0x13e   :  { %v905_v4 = vmul.f32 0.6931472, %v2615_v10  ;;  %vm4478_vm11 = vcmp.lt.f32.partialorder %v927_v33, 0.0004427343  ;;  %v969_v45 = vmul.f32 -0.5, %v2613_v49  ;;  %v397_v31 = vsub.f32 0.0, %v333_v1 }
 0x13f   :  { %v926_v19 = vmul.f32 %v4397_v53, %v925_v38  ;;  %v267_v30 = vmax.f32 %v4430_v47, 0.0  ;;  %v503_v62 = vmul.f32 1.442695, %v395_v54  ;;  %v1910_v55 = vmul.f32 %v4471_v29, %v4471_v29  ;;  %v1320_v47 = vld [vmem:[%s5240_s0 + $0x8] sm:$0xff] }
 0x140   :  { %v911_v22 = vsel %vm4464_vm10, %v908_v8, %v905_v4  ;;  %v952_v60 = vadd.f32 1.0, %v951_v27  ;;  %v954_v2 = vand.u32 2147483647, %v2611_v50  ;;  %v507_v44 = vmul.f32 1.442695, %v397_v31  ;;  %v73_v27 = vld [vmem:[%s5241_s1 + $0x150] sm:$0xff]  ;;  %1385 = vmatprep.mubr.f32.mxu0 %v1320_v47 }
 0x141   :  { %v2617_v61 = vpop.eup %2616  ;;  %v1159_v53 = vadd.f32 %v911_v22, %v263_v39  ;;  %v972_v13 = vand.u32 2147483647, %v2613_v49  ;;  %2622 = vpow2.f32 %v503_v62  ;;  %v336_v57 = vand.u32 2147483647, %v4476_v40  ;;  %v4530_v31 = vld [vmem:[%s5242_s2 + $0x180] sm:$0xff]  ;;  %v80_v47 = vld [vmem:[%s5241_s1 + $0x188] sm:$0xff] }
 0x142   :  { %v923_v51 = vmul.f32 0.6931472, %v2617_v61  ;;  %v970_v37 = vadd.f32 1.0, %v969_v45  ;;  %2624 = vpow2.f32 %v507_v44  ;;  %v338_v9 = vand.u32 2147483647, %v4489_v41 }
 0x143   :  { %v1223_v32 = vmul.f32 %v1159_v53, %v4378_v6  ;;  %2626 = vlog2.f32 %v1159_v53  ;;  %v269_v12 = vmax.f32 %v4443_v34, 0.0  ;;  %v400_v42 = vsub.f32 0.0, %v336_v57  ;;  %v4517_v6 = vld [vmem:[%s5243_s3 + $0x170] sm:$0xff] }
 0x144   :  { %v929_v39 = vsel %vm4478_vm11, %v926_v19, %v923_v51  ;;  %v953_v33 = vmul.f32 %v2611_v50, %v952_v60  ;;  %vm4504_vm12 = vcmp.lt.f32.partialorder %v954_v2, 0.0004427343  ;;  %v402_v1 = vsub.f32 0.0, %v338_v9 }
 0x145   :  { %v1161_v16 = vadd.f32 %v929_v39, %v265_v28  ;;  %v1287_v38 = vadd.f32 %v1223_v32, %v71_v59  ;;  %vm4510_vm13 = vcmp.lt.f32.partialorder %v972_v13, 0.0004427343  ;;  %v513_v8 = vmul.f32 1.442695, %v400_v42  ;;  %v76_v32 = vld [vmem:[%s5241_s1 + $0x168] sm:$0xff] }
 0x146   :  { %v2619_v50 = vpop.eup %2618  ;;  %v971_v54 = vmul.f32 %v2613_v49, %v970_v37  ;;  %v1912_v20 = vmul.f32 %v4517_v6, %v4517_v6  ;;  %v4524_v28 = vmul.f32 0.5, %v1910_v55  ;;  %v517_v10 = vmul.f32 1.442695, %v402_v1  ;;  %v4535_v49 = vld [vmem:[%s5243_s3 + $0x188] sm:$0xff]  ;;  %v4568_v1 = vld [vmem:[%s5243_s3 + $0x198] sm:$0xff] }
 0x147   :  { %v2621_v23 = vpop.eup %2620  ;;  %v1225_v4 = vmul.f32 %v1161_v16, %v4391_v0  ;;  %v1445_v46 = vmul.f32 %v1287_v38, %v1287_v38  ;;  %2628 = vlog2.f32 %v1161_v16  ;;  %v950_v45 = vmul.f32 0.6931472, %v2619_v50 }
 0x148   :  { %v968_v19 = vmul.f32 0.6931472, %v2621_v23  ;;  %v272_v62 = vmax.f32 %v4476_v40, 0.0  ;;  %v274_v55 = vmax.f32 %v4489_v41, 0.0  ;;  %2630 = vpow2.f32 %v513_v8 }
 0x149   :  { %v1289_v0 = vadd.f32 %v1225_v4, %v73_v27  ;;  %v1509_v22 = vmul.f32 12.5, %v1445_v46  ;;  %v956_v60 = vsel %vm4504_vm12, %v953_v33, %v950_v45  ;;  %v1915_v2 = vmul.f32 %v4535_v49, %v4535_v49 }
 0x14a   :  { %v974_v44 = vsel %vm4510_vm13, %v971_v54, %v968_v19  ;;  %v1164_v61 = vadd.f32 %v956_v60, %v268_v7  ;;  %2632 = vpow2.f32 %v517_v10  ;;  %v335_v53 = vand.u32 2147483647, %v4530_v31 }
 0x14b   :  { %v4548_v13 = vpop.eup %2622  ;;  %v2320_v57 = vpack.c.bf16 %v1289_v0, %v1287_v38  ;;  %v1447_v59 = vmul.f32 %v1289_v0, %v1289_v0  ;;  %v1573_v51 = vsub.f32 0.69049937, %v1509_v22  ;;  %v1166_v37 = vadd.f32 %v974_v44, %v270_v35 }
 0x14c   :  { %v4552_v9 = vpop.eup %2624  ;;  %v1228_v7 = vmul.f32 %v1164_v61, %v4403_v21  ;;  %2634 = vlog2.f32 %v1164_v61  ;;  %v939_v42 = vadd.f32 1.0, %v4548_v13  ;;  %v942_v39 = vmul.f32 -0.5, %v4548_v13  ;;  %v4573_v21 = vld [vmem:[%s5242_s2 + $0x190] sm:$0xff] }
 0x14d   :  { %v2627_v33 = vpop.eup %2626  ;;  %2321 = vmatpush1.bf16.msra.mxu0 %v2320_v57  ;;  %v1511_v48 = vmul.f32 12.5, %v1447_v59  ;;  %v1636_v35 = vadd.f32 %v4422_v58, %v1573_v51  ;;  %v1230_v63 = vmul.f32 %v1166_v37, %v4420_v26  ;;  %2636 = vlog2.f32 %v1166_v37 }
 0x14e   :  { %v1755_v16 = vmul.f32 0.6931472, %v2627_v33  ;;  %2638 = vlog2.f32 %v939_v42  ;;  %v4575_v38 = vmul.f32 0.5, %v1912_v20  ;;  %v1917_v58 = vmul.f32 %v4568_v1, %v4568_v1 }
 0x14f   :  { %v1575_v56 = vsub.f32 0.69049937, %v1511_v48  ;;  %v1637_v26 = vadd.f32 %v1636_v35, %v1574_v14  ;;  %v1292_v8 = vadd.f32 %v1228_v7, %v76_v32  ;;  %v1294_v50 = vadd.f32 %v1230_v63, %v78_v18 }
 0x150   :  { %v1842_v27 = vsub.f32 -0.9189385, %v1755_v16  ;;  %v957_v54 = vadd.f32 1.0, %v4552_v9  ;;  %v4582_v10 = vmul.f32 0.5, %v1915_v2  ;;  %v337_v23 = vand.u32 2147483647, %v4573_v21 }
 0x151   :  { %v2629_v4 = vpop.eup %2628  ;;  %v1638_v46 = vadd.f32 %v1637_v26, %v1575_v56  ;;  %v2322_v20 = vpack.c.bf16 %v1294_v50, %v1292_v8  ;;  %v943_v45 = vadd.f32 1.0, %v942_v39  ;;  %v399_v19 = vsub.f32 0.0, %v335_v53 }
 0x152   :  { %v4585_v0 = vpop.eup %2630  ;;  %v1759_v22 = vmul.f32 0.6931472, %v2629_v4  ;;  %v2034_v52 = vsub.f32 %v1842_v27, %v4410_v15  ;;  %2640 = vlog2.f32 %v957_v54  ;;  %v271_v14 = vmax.f32 %v4530_v31, 0.0 }
 0x153   :  { %2323 = vmatprep.subr.bf16.mxu0 %v2322_v20  ;;  %v945_v60 = vand.u32 2147483647, %v4548_v13  ;;  %v960_v2 = vmul.f32 -0.5, %v4552_v9  ;;  %v4593_v44 = vadd.f32 %v1638_v46, %v1576_v43  ;;  %v4595_v61 = vmul.f32 0.5, %v1917_v58  ;;  %v75_v46 = vld [vmem:[%s5241_s1 + $0x160] sm:$0xff] }
 0x154   :  { %v4597_v53 = vpop.eup %2632  ;;  %v1844_v57 = vsub.f32 -0.9189385, %v1759_v22  ;;  %v2097_v59 = vadd.f32 %v4455_v24, %v2034_v52  ;;  %v1450_v15 = vmul.f32 %v1292_v8, %v1292_v8  ;;  %v984_v51 = vadd.f32 1.0, %v4585_v0  ;;  %v4639_v52 = vld [vmem:[%s5243_s3 + $0x180] sm:$0xff] }
 0x155   :  { %v944_v37 = vmul.f32 %v4548_v13, %v943_v45  ;;  %v961_v32 = vadd.f32 1.0, %v960_v2  ;;  %v401_v18 = vsub.f32 0.0, %v337_v23  ;;  %v511_v7 = vmul.f32 1.442695, %v399_v19 }
 0x156   :  { %v2635_v42 = vpop.eup %2634  ;;  %v2036_v17 = vsub.f32 %v1844_v57, %v4415_v36  ;;  %v2098_v43 = vadd.f32 %v2097_v59, %v4452_v3  ;;  %2642 = vlog2.f32 %v984_v51  ;;  %v987_v39 = vmul.f32 -0.5, %v4585_v0 }
 0x157   :  { %v2637_v33 = vpop.eup %2636  ;;  %v1452_v48 = vmul.f32 %v1294_v50, %v1294_v50  ;;  %v1765_v35 = vmul.f32 0.6931472, %v2635_v42  ;;  %vm4605_vm14 = vcmp.lt.f32.partialorder %v945_v60, 0.0004427343  ;;  %v1002_v13 = vadd.f32 1.0, %v4597_v53  ;;  %v4644_v60 = vld [vmem:[%s5242_s2 + $0x1a8] sm:$0xff] }
 0x158   :  { %v2639_v63 = vpop.eup %2638  ;;  %v2099_v16 = vadd.f32 %v2098_v43, %v2036_v17  ;;  %v4610_v58 = vmul.f32 12.5, %v1450_v15  ;;  %v1769_v56 = vmul.f32 0.6931472, %v2637_v33  ;;  %v963_v36 = vand.u32 2147483647, %v4552_v9  ;;  %v77_v33 = vld [vmem:[%s5241_s1 + $0x170] sm:$0xff] }
 0x159   :  { %v1847_v3 = vsub.f32 -0.9189385, %v1765_v35  ;;  %v941_v26 = vmul.f32 0.6931472, %v2639_v63  ;;  %2644 = vlog2.f32 %v1002_v13  ;;  %v1005_v8 = vmul.f32 -0.5, %v4597_v53  ;;  %v4685_v63 = vld [vmem:[%s5243_s3 + $0x190] sm:$0xff] }
 0x15a   :  { %v1849_v50 = vsub.f32 -0.9189385, %v1769_v56  ;;  %v962_v27 = vmul.f32 %v4552_v9, %v961_v32  ;;  %v4616_v54 = vadd.f32 %v2099_v16, %v4462_v5  ;;  %v988_v23 = vadd.f32 1.0, %v987_v39  ;;  %v4670_v39 = vld [vmem:[%s5242_s2 + $0x1b8] sm:$0xff]  ;;  %v4745_v13 = vld [vmem:[%s5242_s2 + $0x1b0] sm:$0xff] }
 0x15b   :  { %v4619_v4 = vsub.f32 %v1847_v3, %v4434_v25  ;;  %v947_v20 = vsel %vm4605_vm14, %v944_v37, %v941_v26  ;;  %2646 = vpow2.f32 %v511_v7  ;;  %v515_v45 = vmul.f32 1.442695, %v401_v18 }
 0x15c   :  { %v2641_v19 = vpop.eup %2640  ;;  %v4627_v22 = vsub.f32 %v1849_v50, %v4449_v11  ;;  %vm4629_vm15 = vcmp.lt.f32.partialorder %v963_v36, 0.0004427343  ;;  %v1163_v25 = vadd.f32 %v947_v20, %v267_v30  ;;  %v990_v9 = vand.u32 2147483647, %v4585_v0 }
 0x15d   :  { %v4646_v11 = vmul.f32 12.5, %v1452_v48  ;;  %v959_v2 = vmul.f32 0.6931472, %v2641_v19  ;;  %v1006_v57 = vadd.f32 1.0, %v1005_v8  ;;  %v273_v59 = vmax.f32 %v4573_v21, 0.0 }
 0x15e   :  { %v1227_v30 = vmul.f32 %v1163_v25, %v4471_v29  ;;  %2648 = vlog2.f32 %v1163_v25  ;;  %v1008_v15 = vand.u32 2147483647, %v4597_v53  ;;  %v1914_v51 = vmul.f32 %v4639_v52, %v4639_v52 }
 0x15f   :  { %v965_v37 = vsel %vm4629_vm15, %v962_v27, %v959_v2  ;;  %v989_v32 = vmul.f32 %v4585_v0, %v988_v23  ;;  %2650 = vpow2.f32 %v515_v45  ;;  %v340_v18 = vand.u32 2147483647, %v4644_v60 }
 0x160   :  { %v2643_v7 = vpop.eup %2642  ;;  %v1578_v42 = vsub.f32 0.69049937, %v4610_v58  ;;  %v1165_v29 = vadd.f32 %v965_v37, %v269_v12  ;;  %v1291_v17 = vadd.f32 %v1227_v30, %v75_v46  ;;  %vm4663_vm0 = vcmp.lt.f32.partialorder %v990_v9, 0.0004427343  ;;  %v82_v30 = vld [vmem:[%s5241_s1 + $0x198] sm:$0xff] }
 0x161   :  { %v1580_v0 = vsub.f32 0.69049937, %v4646_v11  ;;  %v986_v48 = vmul.f32 0.6931472, %v2643_v7  ;;  %v1007_v34 = vmul.f32 %v4597_v53, %v1006_v57  ;;  %v404_v12 = vsub.f32 0.0, %v340_v18 }
 0x162   :  { %v1229_v35 = vmul.f32 %v1165_v29, %v4517_v6  ;;  %v1449_v24 = vmul.f32 %v1291_v17, %v1291_v17  ;;  %2652 = vlog2.f32 %v1165_v29  ;;  %vm4678_vm1 = vcmp.lt.f32.partialorder %v1008_v15, 0.0004427343  ;;  %v4729_v29 = vld [vmem:[%s5243_s3 + $0x1b8] sm:$0xff] }
 0x163   :  { %v2645_v16 = vpop.eup %2644  ;;  %v992_v58 = vsel %vm4663_vm0, %v989_v32, %v986_v48  ;;  %v1916_v53 = vmul.f32 %v4685_v63, %v4685_v63  ;;  %v342_v6 = vand.u32 2147483647, %v4670_v39  ;;  %v521_v56 = vmul.f32 1.442695, %v404_v12  ;;  %v4738_v48 = vld [vmem:[%s5242_s2 + $0x1a0] sm:$0xff] }
 0x164   :  { %v1293_v36 = vadd.f32 %v1229_v35, %v77_v33  ;;  %v1513_v3 = vmul.f32 12.5, %v1449_v24  ;;  %v1004_v26 = vmul.f32 0.6931472, %v2645_v16  ;;  %v1168_v8 = vadd.f32 %v992_v58, %v272_v62 }
 0x165   :  { %v4694_v50 = vpop.eup %2646  ;;  %v4696_v27 = vmul.f32 0.5, %v1914_v51  ;;  %v276_v23 = vmax.f32 %v4644_v60, 0.0  ;;  %v278_v46 = vmax.f32 %v4670_v39, 0.0  ;;  %2654 = vpow2.f32 %v521_v56 }
 0x166   :  { %v2324_v20 = vpack.c.bf16 %v1293_v36, %v1291_v17  ;;  %v1451_v45 = vmul.f32 %v1293_v36, %v1293_v36  ;;  %v1577_v19 = vsub.f32 0.69049937, %v1513_v3  ;;  %v1010_v5 = vsel %vm4678_vm1, %v1007_v34, %v1004_v26 }
 0x167   :  { %v1170_v25 = vadd.f32 %v1010_v5, %v274_v55  ;;  %v1232_v40 = vmul.f32 %v1168_v8, %v4535_v49  ;;  %2656 = vlog2.f32 %v1168_v8  ;;  %v975_v62 = vadd.f32 1.0, %v4694_v50  ;;  %v4718_v49 = vld [vmem:[%s5243_s3 + $0x1a8] sm:$0xff] }
 0x168   :  { %v2649_v9 = vpop.eup %2648  ;;  %2325 = vmatpush1.bf16.msra.mxu0 %v2324_v20  ;;  %v1515_v2 = vmul.f32 12.5, %v1451_v45  ;;  %v1640_v57 = vadd.f32 %v4593_v44, %v1577_v19  ;;  %v4713_v41 = vmul.f32 0.5, %v1916_v53  ;;  %v406_v55 = vsub.f32 0.0, %v342_v6 }
 0x169   :  { %v4720_v15 = vpop.eup %2650  ;;  %v1763_v51 = vmul.f32 0.6931472, %v2649_v9  ;;  %v1234_v44 = vmul.f32 %v1170_v25, %v4568_v1  ;;  %2658 = vlog2.f32 %v1170_v25  ;;  %v1919_v37 = vmul.f32 %v4718_v49, %v4718_v49 }
 0x16a   :  { %v1579_v32 = vsub.f32 0.69049937, %v1515_v2  ;;  %v1641_v18 = vadd.f32 %v1640_v57, %v1578_v42  ;;  %2660 = vlog2.f32 %v975_v62  ;;  %v978_v7 = vmul.f32 -0.5, %v4694_v50 }
 0x16b   :  { %v1846_v17 = vsub.f32 -0.9189385, %v1763_v51  ;;  %v1296_v43 = vadd.f32 %v1232_v40, %v80_v47  ;;  %v1298_v33 = vadd.f32 %v1234_v44, %v82_v30  ;;  %v4733_v1 = vmul.f32 %v4729_v29, %v4729_v29 }
 0x16c   :  { %v2653_v42 = vpop.eup %2652  ;;  %v1642_v34 = vadd.f32 %v1641_v18, %v1579_v32  ;;  %v981_v12 = vand.u32 2147483647, %v4694_v50  ;;  %v993_v35 = vadd.f32 1.0, %v4720_v15  ;;  %v525_v24 = vmul.f32 1.442695, %v406_v55 }
 0x16d   :  { %v1767_v16 = vmul.f32 0.6931472, %v2653_v42  ;;  %v2038_v58 = vsub.f32 %v1846_v17, %v4524_v28  ;;  %v2326_v53 = vpack.c.bf16 %v1298_v33, %v1296_v43  ;;  %v275_v6 = vmax.f32 %v4738_v48, 0.0 }
 0x16e   :  { %v979_v56 = vadd.f32 1.0, %v978_v7  ;;  %2662 = vlog2.f32 %v993_v35  ;;  %v996_v36 = vmul.f32 -0.5, %v4720_v15  ;;  %v339_v3 = vand.u32 2147483647, %v4738_v48 }
 0x16f   :  { %v4751_v26 = vpop.eup %2654  ;;  %v1848_v8 = vsub.f32 -0.9189385, %v1767_v16  ;;  %v2101_v20 = vadd.f32 %v4616_v54, %v2038_v58  ;;  %2327 = vmatprep.subr.bf16.mxu0 %v2326_v53  ;;  %v4756_v45 = vadd.f32 %v1642_v34, %v1580_v0  ;;  %v341_v28 = vand.u32 2147483647, %v4745_v13 }
 0x170   :  { %v1454_v19 = vmul.f32 %v1296_v43, %v1296_v43  ;;  %vm4759_vm2 = vcmp.lt.f32.partialorder %v981_v12, 0.0004427343  ;;  %2664 = vpow2.f32 %v525_v24  ;;  %v4763_v25 = vmul.f32 0.5, %v1919_v37 }
 0x171   :  { %v2657_v40 = vpop.eup %2656  ;;  %v2040_v62 = vsub.f32 %v1848_v8, %v4575_v38  ;;  %v2102_v54 = vadd.f32 %v2101_v20, %v4619_v4  ;;  %v1456_v9 = vmul.f32 %v1298_v33, %v1298_v33  ;;  %v1020_v11 = vadd.f32 1.0, %v4751_v26 }
 0x172   :  { %v1773_v0 = vmul.f32 0.6931472, %v2657_v40  ;;  %v980_v2 = vmul.f32 %v4694_v50, %v979_v56  ;;  %v997_v57 = vadd.f32 1.0, %v996_v36  ;;  %v403_v47 = vsub.f32 0.0, %v339_v3  ;;  %v4802_v56 = vld [vmem:[%s5243_s3 + $0x1b0] sm:$0xff] }
 0x173   :  { %v2659_v30 = vpop.eup %2658  ;;  %v2103_v55 = vadd.f32 %v2102_v54, %v2040_v62  ;;  %v999_v51 = vand.u32 2147483647, %v4720_v15  ;;  %2666 = vlog2.f32 %v1020_v11  ;;  %v405_v44 = vsub.f32 0.0, %v341_v28 }
 0x174   :  { %v2661_v37 = vpop.eup %2660  ;;  %v4770_v32 = vmul.f32 12.5, %v1454_v19  ;;  %v1777_v38 = vmul.f32 0.6931472, %v2659_v30  ;;  %v1851_v18 = vsub.f32 -0.9189385, %v1773_v0  ;;  %v1023_v4 = vmul.f32 -0.5, %v4751_v26 }
 0x175   :  { %v4773_v7 = vmul.f32 12.5, %v1456_v9  ;;  %v977_v17 = vmul.f32 0.6931472, %v2661_v37  ;;  %v4776_v50 = vadd.f32 %v2103_v55, %v4627_v22  ;;  %v519_v43 = vmul.f32 1.442695, %v403_v47  ;;  %v4838_v55 = vld [vmem:[%s5242_s2 + $0x1c0] sm:$0xff] }
 0x176   :  { %v1853_v33 = vsub.f32 -0.9189385, %v1777_v38  ;;  %v4779_v42 = vsub.f32 %v1851_v18, %v4582_v10  ;;  %v998_v34 = vmul.f32 %v4720_v15, %v997_v57  ;;  %v523_v12 = vmul.f32 1.442695, %v405_v44  ;;  %v4797_v15 = vld [vmem:[%s5243_s3 + $0x1a0] sm:$0xff]  ;;  %v4848_v44 = vld [vmem:[%s5242_s2 + $0x1d0] sm:$0xff] }
 0x177   :  { %v983_v35 = vsel %vm4759_vm2, %v980_v2, %v977_v17  ;;  %vm4784_vm3 = vcmp.lt.f32.partialorder %v999_v51, 0.0004427343  ;;  %v1026_v16 = vand.u32 2147483647, %v4751_v26  ;;  %2668 = vpow2.f32 %v519_v43  ;;  %v81_v2 = vld [vmem:[%s5241_s1 + $0x190] sm:$0xff]  ;;  %v4843_v51 = vld [vmem:[%s5242_s2 + $0x1c8] sm:$0xff] }
 0x178   :  { %v2663_v22 = vpop.eup %2662  ;;  %v4790_v58 = vsub.f32 %v1853_v33, %v4595_v61  ;;  %v1167_v10 = vadd.f32 %v983_v35, %v271_v14  ;;  %v1024_v53 = vadd.f32 1.0, %v1023_v4  ;;  %2670 = vpow2.f32 %v523_v12  ;;  %v79_v61 = vld [vmem:[%s5241_s1 + $0x180] sm:$0xff]  ;;  %v4886_v0 = vld [vmem:[%s5242_s2 + $0x1f0] sm:$0xff] }
 0x179   :  { %v995_v36 = vmul.f32 0.6931472, %v2663_v22  ;;  %v4808_v31 = vmul.f32 0.5, %v4733_v1  ;;  %v1918_v14 = vmul.f32 %v4797_v15, %v4797_v15  ;;  %v1920_v3 = vmul.f32 %v4802_v56, %v4802_v56 }
 0x17a   :  { %v2665_v8 = vpop.eup %2664  ;;  %v1582_v20 = vsub.f32 0.69049937, %v4770_v32  ;;  %v1231_v28 = vmul.f32 %v1167_v10, %v4639_v52  ;;  %2672 = vlog2.f32 %v1167_v10  ;;  %v277_v19 = vmax.f32 %v4745_v13, 0.0 }
 0x17b   :  { %v1001_v1 = vsel %vm4784_vm3, %v998_v34, %v995_v36  ;;  %v1038_v40 = vadd.f32 1.0, %v2665_v8  ;;  %v1041_v62 = vmul.f32 -0.5, %v2665_v8  ;;  %v1025_v11 = vmul.f32 %v4751_v26, %v1024_v53  ;;  %v4863_v34 = vld [vmem:[%s5242_s2 + $0x1e0] sm:$0xff] }
 0x17c   :  { %v1169_v54 = vadd.f32 %v1001_v1, %v273_v59  ;;  %v1295_v9 = vadd.f32 %v1231_v28, %v79_v61  ;;  %vm4823_vm4 = vcmp.lt.f32.partialorder %v1026_v16, 0.0004427343  ;;  %v1044_v57 = vand.u32 2147483647, %v2665_v8 }
 0x17d   :  { %v2667_v52 = vpop.eup %2666  ;;  %2674 = vlog2.f32 %v1038_v40  ;;  %v4830_v47 = vmul.f32 0.5, %v1918_v14  ;;  %v4832_v30 = vmul.f32 0.5, %v1920_v3  ;;  %v1042_v37 = vadd.f32 1.0, %v1041_v62  ;;  %v4877_v3 = vld [vmem:[%s5242_s2 + $0x1e8] sm:$0xff] }
 0x17e   :  { %v1233_v21 = vmul.f32 %v1169_v54, %v4685_v63  ;;  %v1453_v59 = vmul.f32 %v1295_v9, %v1295_v9  ;;  %2676 = vlog2.f32 %v1169_v54  ;;  %v1022_v26 = vmul.f32 0.6931472, %v2667_v52  ;;  %v4853_v63 = vld [vmem:[%s5242_s2 + $0x1d8] sm:$0xff] }
 0x17f   :  { %vm4866_vm5 = vcmp.lt.f32.partialorder %v1044_v57, 0.0004427343  ;;  %v343_v10 = vand.u32 2147483647, %v4838_v55  ;;  %v344_v28 = vand.u32 2147483647, %v4843_v51  ;;  %v1043_v40 = vmul.f32 %v2665_v8, %v1042_v37 }
 0x180   :  { %v1297_v17 = vadd.f32 %v1233_v21, %v81_v2  ;;  %v1517_v43 = vmul.f32 12.5, %v1453_v59  ;;  %v1028_v33 = vsel %vm4823_vm4, %v1025_v11, %v1022_v26  ;;  %v345_v60 = vand.u32 2147483647, %v4848_v44  ;;  %v4891_v8 = vld [vmem:[%s5242_s2 + $0x1f8] sm:$0xff] }
 0x181   :  { %v2669_v35 = vpop.eup %2668  ;;  %v1172_v16 = vadd.f32 %v1028_v33, %v276_v23  ;;  %v346_v23 = vand.u32 2147483647, %v4853_v63  ;;  %v347_v59 = vand.u32 2147483647, %v4863_v34  ;;  %v348_v26 = vand.u32 2147483647, %v4877_v3 }
 0x182   :  { %v2671_v53 = vpop.eup %2670  ;;  %v2328_v61 = vpack.c.bf16 %v1297_v17, %v1295_v9  ;;  %v1455_v36 = vmul.f32 %v1297_v17, %v1297_v17  ;;  %v1011_v14 = vadd.f32 1.0, %v2669_v35  ;;  %v1581_v1 = vsub.f32 0.69049937, %v1517_v43 }
 0x183   :  { %v1236_v54 = vmul.f32 %v1172_v16, %v4718_v49  ;;  %v1014_v9 = vmul.f32 -0.5, %v2669_v35  ;;  %v1029_v11 = vadd.f32 1.0, %v2671_v53  ;;  %v84_v49 = vld [vmem:[%s5241_s1 + $0x1a8] sm:$0xff]  ;;  %v1017_v57 = vand.u32 2147483647, %v2669_v35 }
 0x184   :  { %v2673_v62 = vpop.eup %2672  ;;  %2329 = vmatpush1.bf16.msra.mxu0 %v2328_v61  ;;  %2678 = vlog2.f32 %v1011_v14  ;;  %v4893_v52 = vmul.f32 12.5, %v1455_v36  ;;  %v1032_v21 = vmul.f32 -0.5, %v2671_v53  ;;  %v349_v43 = vand.u32 2147483647, %v4886_v0 }
 0x185   :  { %v1771_v2 = vmul.f32 0.6931472, %v2673_v62  ;;  %2680 = vlog2.f32 %v1172_v16  ;;  %v1644_v36 = vadd.f32 %v4756_v45, %v1581_v1  ;;  %v1300_v62 = vadd.f32 %v1236_v54, %v84_v49 }
 0x186   :  { %2682 = vlog2.f32 %v1029_v11  ;;  %v1015_v22 = vadd.f32 1.0, %v1014_v9  ;;  %v1583_v16 = vsub.f32 0.69049937, %v4893_v52  ;;  %vm4905_vm6 = vcmp.lt.f32.partialorder %v1017_v57, 0.0004427343  ;;  %v86_v9 = vld [vmem:[%s5241_s1 + $0x1b8] sm:$0xff] }
 0x187   :  { %v2675_v37 = vpop.eup %2674  ;;  %v1850_v17 = vsub.f32 -0.9189385, %v1771_v2  ;;  %v1033_v18 = vadd.f32 1.0, %v1032_v21  ;;  %v1035_v38 = vand.u32 2147483647, %v2671_v53  ;;  %v407_v5 = vsub.f32 0.0, %v343_v10 }
 0x188   :  { %v2677_v61 = vpop.eup %2676  ;;  %v1040_v14 = vmul.f32 0.6931472, %v2675_v37  ;;  %v408_v54 = vsub.f32 0.0, %v344_v28  ;;  %v1458_v52 = vmul.f32 %v1300_v62, %v1300_v62  ;;  %v1016_v24 = vmul.f32 %v2669_v35, %v1015_v22 }
 0x189   :  { %v1775_v11 = vmul.f32 0.6931472, %v2677_v61  ;;  %v2042_v12 = vsub.f32 %v1850_v17, %v4696_v27  ;;  %v1645_v27 = vadd.f32 %v1644_v36, %v1582_v20  ;;  %vm4922_vm7 = vcmp.lt.f32.partialorder %v1035_v38, 0.0004427343  ;;  %v85_v36 = vld [vmem:[%s5241_s1 + $0x1b0] sm:$0xff] }
 0x18a   :  { %v1046_v2 = vsel %vm4866_vm5, %v1043_v40, %v1040_v14  ;;  %v409_v40 = vsub.f32 0.0, %v345_v60  ;;  %v527_v20 = vmul.f32 1.442695, %v407_v5  ;;  %v529_v22 = vmul.f32 1.442695, %v408_v54 }
 0x18b   :  { %v1852_v33 = vsub.f32 -0.9189385, %v1775_v11  ;;  %v2105_v45 = vadd.f32 %v4776_v50, %v2042_v12  ;;  %v1174_v1 = vadd.f32 %v1046_v2, %v278_v46  ;;  %v410_v12 = vsub.f32 0.0, %v346_v23 }
 0x18c   :  { %v1034_v46 = vmul.f32 %v2671_v53, %v1033_v18  ;;  %v412_v37 = vsub.f32 0.0, %v348_v26  ;;  %v413_v26 = vsub.f32 0.0, %v349_v43  ;;  %v284_v14 = vmax.f32 %v4877_v3, 0.0 }
 0x18d   :  { %v2044_v49 = vsub.f32 %v1852_v33, %v4713_v41  ;;  %v2106_v10 = vadd.f32 %v2105_v45, %v4779_v42  ;;  %v1238_v50 = vmul.f32 %v1174_v1, %v4729_v29  ;;  %2684 = vlog2.f32 %v1174_v1 }
 0x18e   :  { %v2679_v39 = vpop.eup %2678  ;;  %v411_v41 = vsub.f32 0.0, %v347_v59  ;;  %2686 = vpow2.f32 %v527_v20  ;;  %v531_v42 = vmul.f32 1.442695, %v409_v40  ;;  %v533_v38 = vmul.f32 1.442695, %v410_v12  ;;  %v83_v59 = vld [vmem:[%s5241_s1 + $0x1a0] sm:$0xff] }
 0x18f   :  { %v2681_v28 = vpop.eup %2680  ;;  %v2107_v57 = vadd.f32 %v2106_v10, %v2044_v49  ;;  %v1302_v21 = vadd.f32 %v1238_v50, %v86_v9  ;;  %v1013_v35 = vmul.f32 0.6931472, %v2679_v39  ;;  %2688 = vpow2.f32 %v529_v22 }
 0x190   :  { %v2683_v60 = vpop.eup %2682  ;;  %v1781_v53 = vmul.f32 0.6931472, %v2681_v28  ;;  %2690 = vpow2.f32 %v531_v42  ;;  %v5369_v13 = vand.u32 2147483647, %v4891_v8  ;;  %v285_v1 = vmax.f32 %v4886_v0, 0.0 }
 0x191   :  { %v2330_v29 = vpack.c.bf16 %v1302_v21, %v1300_v62  ;;  %v1019_v23 = vsel %vm4905_vm6, %v1016_v24, %v1013_v35  ;;  %v1031_v18 = vmul.f32 0.6931472, %v2683_v60  ;;  %v4931_v17 = vadd.f32 %v2107_v57, %v4790_v58 }
 0x192   :  { %v1171_v5 = vadd.f32 %v1019_v23, %v275_v6  ;;  %v1460_v33 = vmul.f32 %v1302_v21, %v1302_v21  ;;  %v535_v6 = vmul.f32 1.442695, %v411_v41  ;;  %v1646_v58 = vadd.f32 %v1645_v27, %v1583_v16 }
 0x193   :  { %2331 = vmatprep.subr.bf16.mxu0 %v2330_v29  ;;  %v1037_v4 = vsel %vm4922_vm7, %v1034_v46, %v1031_v18  ;;  %v537_v62 = vmul.f32 1.442695, %v412_v37  ;;  %v1522_v16 = vmul.f32 12.5, %v1458_v52  ;;  %v1855_v45 = vsub.f32 -0.9189385, %v1781_v53 }
 0x194   :  { %v1173_v61 = vadd.f32 %v1037_v4, %v277_v19  ;;  %v1235_v48 = vmul.f32 %v1171_v5, %v4797_v15  ;;  %2692 = vlog2.f32 %v1171_v5  ;;  %v414_v19 = vsub.f32 0.0, %v5369_v13  ;;  %v4951_v15 = vld [vmem:[%s5245_s5] sm:$0x3] }
 0x195   :  { %2694 = vpow2.f32 %v533_v38  ;;  %v4953_v2 = vmul.f32 12.5, %v1460_v33  ;;  %v5370_v24 = vsub.f32 0.69049937, %v4773_v7  ;;  %v286_v49 = vmax.f32 %v4891_v8, 0.0 }
 0x196   :  { %v1237_v11 = vmul.f32 %v1173_v61, %v4802_v56  ;;  %v1299_v43 = vadd.f32 %v1235_v48, %v83_v59  ;;  %2696 = vlog2.f32 %v1173_v61  ;;  %v539_v56 = vmul.f32 1.442695, %v413_v26 }
 0x197   :  { %v2685_v54 = vpop.eup %2684  ;;  %2698 = vpow2.f32 %v535_v6  ;;  %v1647_v40 = vadd.f32 %v1646_v58, %v5370_v24  ;;  %v2140_v10 = vand.u32 2147483647, %v4951_v15  ;;  %v541_v46 = vmul.f32 1.442695, %v414_v19 }
 0x198   :  { %v1301_v27 = vadd.f32 %v1237_v11, %v85_v36  ;;  %v1457_v9 = vmul.f32 %v1299_v43, %v1299_v43  ;;  %2700 = vpow2.f32 %v537_v62  ;;  %v2687_v50 = vpop.eup %2686  ;;  %v1586_v32 = vsub.f32 0.69049937, %v1522_v16 }
 0x199   :  { %v4961_v20 = vsub.f32 %v1855_v45, %v4763_v25  ;;  %v1047_v28 = vadd.f32 1.0, %v2687_v50  ;;  %v1050_v57 = vmul.f32 -0.5, %v2687_v50  ;;  %v2689_v21 = vpop.eup %2688  ;;  %v1588_v7 = vsub.f32 0.69049937, %v4953_v2 }
 0x19a   :  { %v2332_v52 = vpack.c.bf16 %v1301_v27, %v1299_v43  ;;  %v1459_v12 = vmul.f32 %v1301_v27, %v1301_v27  ;;  %v1521_v39 = vmul.f32 12.5, %v1457_v9  ;;  %2702 = vpow2.f32 %v539_v56  ;;  %v2691_v60 = vpop.eup %2690 }
 0x19b   :  { %v4964_v41 = vmul.f32 0.6931472, %v2685_v54  ;;  %2704 = vlog2.f32 %v1047_v28  ;;  %v1056_v37 = vadd.f32 1.0, %v2689_v21  ;;  %v2141_v42 = vsub.f32 0.0, %v2140_v10 }
 0x19c   :  { %2333 = vmatpush1.bf16.msra.mxu0 %v2332_v52  ;;  %v1523_v35 = vmul.f32 12.5, %v1459_v12  ;;  %v1585_v22 = vsub.f32 0.69049937, %v1521_v39  ;;  %2706 = vpow2.f32 %v541_v46  ;;  %v1053_v25 = vand.u32 2147483647, %v2687_v50 }
 0x19d   :  { %v1059_v18 = vmul.f32 -0.5, %v2689_v21  ;;  %v1051_v5 = vadd.f32 1.0, %v1050_v57  ;;  %2708 = vlog2.f32 %v1056_v37  ;;  %v1065_v33 = vadd.f32 1.0, %v2691_v60 }
 0x19e   :  { %v2693_v29 = vpop.eup %2692  ;;  %v1648_v23 = vadd.f32 %v1647_v40, %v1585_v22  ;;  %v1587_v4 = vsub.f32 0.69049937, %v1523_v35  ;;  %v1062_v61 = vand.u32 2147483647, %v2689_v21  ;;  %v1068_v48 = vmul.f32 -0.5, %v2691_v60 }
 0x19f   :  { %v2695_v38 = vpop.eup %2694  ;;  %v1779_v53 = vmul.f32 0.6931472, %v2693_v29  ;;  %v1857_v6 = vsub.f32 -0.9189385, %v4964_v41  ;;  %v1060_v36 = vadd.f32 1.0, %v1059_v18  ;;  %2710 = vlog2.f32 %v1065_v33 }
 0x1a0   :  { %v2697_v59 = vpop.eup %2696  ;;  %v1649_v26 = vadd.f32 %v1648_v23, %v1586_v32  ;;  %v1071_v43 = vand.u32 2147483647, %v2691_v60  ;;  %v1074_v13 = vadd.f32 1.0, %v2695_v38  ;;  %v2139_v19 = vmax.f32 %v4951_v15, 0.0 }
 0x1a1   :  { %v1854_v58 = vsub.f32 -0.9189385, %v1779_v53  ;;  %v2699_v62 = vpop.eup %2698  ;;  %v4967_v11 = vmul.f32 0.6931472, %v2697_v59  ;;  %v1052_v2 = vmul.f32 %v2687_v50, %v1051_v5  ;;  %vm4970_vm8 = vcmp.lt.f32.partialorder %v1053_v25, 0.0004427343 }
 0x1a2   :  { %v2701_v16 = vpop.eup %2700  ;;  %v1077_v54 = vmul.f32 -0.5, %v2695_v38  ;;  %v4974_v27 = vmul.f32 1.442695, %v2141_v42  ;;  %v1650_v9 = vadd.f32 %v1649_v26, %v1587_v4  ;;  %vm4976_vm9 = vcmp.lt.f32.partialorder %v1062_v61, 0.0004427343 }
 0x1a3   :  { %v1069_v24 = vadd.f32 1.0, %v1068_v48  ;;  %2712 = vlog2.f32 %v1074_v13  ;;  %v2046_v40 = vsub.f32 %v1854_v58, %v4830_v47  ;;  %v1061_v10 = vmul.f32 %v2689_v21, %v1060_v36  ;;  %v5006_v13 = vld [vmem:[%s5243_s3 + $0x1c0] sm:$0xff] }
 0x1a4   :  { %v1080_v52 = vand.u32 2147483647, %v2695_v38  ;;  %v1083_v12 = vadd.f32 1.0, %v2699_v62  ;;  %v2703_v50 = vpop.eup %2702  ;;  %v1856_v39 = vsub.f32 -0.9189385, %v4967_v11  ;;  %v1086_v32 = vmul.f32 -0.5, %v2699_v62 }
 0x1a5   :  { %vm4982_vm10 = vcmp.lt.f32.partialorder %v1071_v43, 0.0004427343  ;;  %v1092_v28 = vadd.f32 1.0, %v2701_v16  ;;  %v2705_v57 = vpop.eup %2704  ;;  %v1078_v35 = vadd.f32 1.0, %v1077_v54  ;;  %v1089_v22 = vand.u32 2147483647, %v2699_v62 }
 0x1a6   :  { %2714 = vlog2.f32 %v1083_v12  ;;  %v1095_v37 = vmul.f32 -0.5, %v2701_v16  ;;  %v2707_v42 = vpop.eup %2706  ;;  %v4986_v29 = vadd.f32 %v1650_v9, %v1588_v7  ;;  %v1049_v47 = vmul.f32 0.6931472, %v2705_v57  ;;  %v5025_v57 = vld [vmem:[%s5243_s3 + $0x1d0] sm:$0xff] }
 0x1a7   :  { %v1070_v21 = vmul.f32 %v2691_v60, %v1069_v24  ;;  %2716 = vlog2.f32 %v1092_v28  ;;  %v2709_v23 = vpop.eup %2708  ;;  %v4989_v25 = vadd.f32 %v4931_v17, %v2046_v40  ;;  %vm4991_vm11 = vcmp.lt.f32.partialorder %v1080_v52, 0.0004427343  ;;  %v87_v40 = vld [vmem:[%s5241_s1 + $0x1c0] sm:$0xff] }
 0x1a8   :  { %v1087_v53 = vadd.f32 1.0, %v1086_v32  ;;  %v1101_v5 = vadd.f32 1.0, %v2703_v50  ;;  %v1055_v33 = vsel %vm4970_vm8, %v1052_v2, %v1049_v47  ;;  %v1058_v59 = vmul.f32 0.6931472, %v2709_v23  ;;  %v5047_v23 = vld [vmem:[%s5243_s3 + $0x1d8] sm:$0xff] }
 0x1a9   :  { %v1096_v4 = vadd.f32 1.0, %v1095_v37  ;;  %v1104_v7 = vmul.f32 -0.5, %v2703_v50  ;;  %v2711_v26 = vpop.eup %2710  ;;  %v1079_v61 = vmul.f32 %v2695_v38, %v1078_v35  ;;  %vm4997_vm12 = vcmp.lt.f32.partialorder %v1089_v22, 0.0004427343  ;;  %v5011_v38 = vld [vmem:[%s5243_s3 + $0x1c8] sm:$0xff] }
 0x1aa   :  { %v1098_v17 = vand.u32 2147483647, %v2701_v16  ;;  %2718 = vlog2.f32 %v1101_v5  ;;  %v1064_v48 = vsel %vm4976_vm9, %v1061_v10, %v1058_v59  ;;  %v1067_v58 = vmul.f32 0.6931472, %v2711_v26  ;;  %v93_v5 = vld [vmem:[%s5241_s1 + $0x1f0] sm:$0xff] }
 0x1ab   :  { %v1105_v36 = vadd.f32 1.0, %v1104_v7  ;;  %v1107_v43 = vand.u32 2147483647, %v2703_v50  ;;  %v1110_v2 = vadd.f32 1.0, %v2707_v42  ;;  %v1113_v45 = vmul.f32 -0.5, %v2707_v42 }
 0x1ac   :  { %v1116_v54 = vand.u32 2147483647, %v2707_v42  ;;  %v5381_v9 = vmax.f32 %v4838_v55, 0.0  ;;  %v1073_v10 = vsel %vm4982_vm10, %v1070_v21, %v1067_v58  ;;  %v1088_v52 = vmul.f32 %v2699_v62, %v1087_v53  ;;  %v88_v62 = vld [vmem:[%s5241_s1 + $0x1c8] sm:$0xff]  ;;  %v89_v21 = vld [vmem:[%s5241_s1 + $0x1d0] sm:$0xff]  ;;  %v5071_v58 = vld [vmem:[%s5243_s3 + $0x1e0] sm:$0xff] }
 0x1ad   :  { %v2713_v24 = vpop.eup %2712  ;;  %v1097_v12 = vmul.f32 %v2701_v16, %v1096_v4  ;;  %v5382_v32 = vmax.f32 %v4843_v51, 0.0  ;;  %vm5027_vm13 = vcmp.lt.f32.partialorder %v1098_v17, 0.0004427343  ;;  %2720 = vlog2.f32 %v1110_v2 }
 0x1ae   :  { %v1175_v56 = vadd.f32 %v1055_v33, %v5381_v9  ;;  %v1076_v55 = vmul.f32 0.6931472, %v2713_v24  ;;  %v1114_v22 = vadd.f32 1.0, %v1113_v45  ;;  %v5385_v16 = vmax.f32 %v4848_v44, 0.0  ;;  %v91_v24 = vld [vmem:[%s5241_s1 + $0x1e0] sm:$0xff] }
 0x1af   :  { %v1176_v28 = vadd.f32 %v1064_v48, %v5382_v32  ;;  %2722 = vpow2.f32 %v4974_v27  ;;  %v1106_v53 = vmul.f32 %v2703_v50, %v1105_v36  ;;  %vm5051_vm14 = vcmp.lt.f32.partialorder %v1107_v43, 0.0004427343  ;;  %v90_v50 = vld [vmem:[%s5241_s1 + $0x1d8] sm:$0xff] }
 0x1b0   :  { %v5036_v51 = vadd.f32 %v1073_v10, %v5385_v16  ;;  %v1239_v46 = vmul.f32 %v1175_v56, %v5006_v13  ;;  %v2715_v47 = vpop.eup %2714  ;;  %v1082_v44 = vsel %vm4991_vm11, %v1079_v61, %v1076_v55  ;;  %vm5055_vm15 = vcmp.lt.f32.partialorder %v1116_v54, 0.0004427343 }
 0x1b1   :  { %v1240_v37 = vmul.f32 %v1176_v28, %v5011_v38  ;;  %v2717_v33 = vpop.eup %2716  ;;  %v1085_v59 = vmul.f32 0.6931472, %v2715_v47  ;;  %v5390_v4 = vmax.f32 %v4853_v63, 0.0  ;;  %v1115_v17 = vmul.f32 %v2707_v42, %v1114_v22  ;;  %v5080_v42 = vld [vmem:[%s5243_s3 + $0x1e8] sm:$0xff]  ;;  %v5103_v22 = vld [vmem:[%s5243_s3 + $0x1f0] sm:$0xff] }
 0x1b2   :  { %v1241_v26 = vmul.f32 %v5036_v51, %v5025_v57  ;;  %v1303_v18 = vadd.f32 %v1239_v46, %v87_v40  ;;  %v1094_v61 = vmul.f32 0.6931472, %v2717_v33  ;;  %2724 = vlog2.f32 %v1175_v56 }
 0x1b3   :  { %v5061_v7 = vadd.f32 %v1082_v44, %v5390_v4  ;;  %v1304_v48 = vadd.f32 %v1240_v37, %v88_v62  ;;  %v1091_v63 = vsel %vm4997_vm12, %v1088_v52, %v1085_v59  ;;  %v5391_v9 = vmax.f32 %v4863_v34, 0.0 }
 0x1b4   :  { %v1305_v43 = vadd.f32 %v1241_v26, %v89_v21  ;;  %v1461_v2 = vmul.f32 %v1303_v18, %v1303_v18  ;;  %v2719_v45 = vpop.eup %2718  ;;  %v1100_v54 = vsel %vm5027_vm13, %v1097_v12, %v1094_v61  ;;  %2726 = vlog2.f32 %v1176_v28  ;;  %v92_v12 = vld [vmem:[%s5241_s1 + $0x1e8] sm:$0xff]  ;;  %v5124_v61 = vld [vmem:[%s5243_s3 + $0x1f8] sm:$0xff] }
 0x1b5   :  { %v1242_v36 = vmul.f32 %v5061_v7, %v5047_v23  ;;  %v5086_v56 = vadd.f32 %v1091_v63, %v5391_v9  ;;  %v1462_v60 = vmul.f32 %v1304_v48, %v1304_v48  ;;  %v1103_v40 = vmul.f32 0.6931472, %v2719_v45 }
 0x1b6   :  { %v5093_v10 = vadd.f32 %v1100_v54, %v284_v14  ;;  %v1463_v32 = vmul.f32 %v1305_v43, %v1305_v43  ;;  %v1525_v55 = vmul.f32 12.5, %v1461_v2  ;;  %v2336_v35 = vpack.c.bf16 %v1305_v43, %v1303_v18 }
 0x1b7   :  { %v1306_v52 = vadd.f32 %v1242_v36, %v90_v50  ;;  %v1243_v34 = vmul.f32 %v5086_v56, %v5071_v58  ;;  %v1526_v28 = vmul.f32 12.5, %v1462_v60  ;;  %v1109_v3 = vsel %vm5051_vm14, %v1106_v53, %v1103_v40  ;;  %v2721_v46 = vpop.eup %2720 }
 0x1b8   :  { %v1244_v14 = vmul.f32 %v5093_v10, %v5080_v42  ;;  %v1527_v16 = vmul.f32 12.5, %v1463_v32  ;;  %v5111_v37 = vadd.f32 %v1109_v3, %v285_v1  ;;  %v1589_v21 = vsub.f32 0.69049937, %v1525_v55 }
 0x1b9   :  { %v1464_v62 = vmul.f32 %v1306_v52, %v1306_v52  ;;  %v1307_v47 = vadd.f32 %v1243_v34, %v91_v24  ;;  %v1590_v44 = vsub.f32 0.69049937, %v1526_v28  ;;  %v5113_v33 = vpop.eup %2722  ;;  %v1112_v53 = vmul.f32 0.6931472, %v2721_v46 }
 0x1ba   :  { %v1308_v59 = vadd.f32 %v1244_v14, %v92_v12  ;;  %v1591_v26 = vsub.f32 0.69049937, %v1527_v16  ;;  %v1245_v18 = vmul.f32 %v5111_v37, %v5103_v22  ;;  %v1652_v0 = vadd.f32 %v4986_v29, %v1589_v21 }
 0x1bb   :  { %v1528_v4 = vmul.f32 12.5, %v1464_v62  ;;  %v1465_v50 = vmul.f32 %v1307_v47, %v1307_v47  ;;  %v2334_v1 = vpack.c.bf16 %v1306_v52, %v1304_v48  ;;  %v1118_v63 = vsel %vm5055_vm15, %v1115_v17, %v1112_v53  ;;  %v94_v48 = vld [vmem:[%s5241_s1 + $0x1f8] sm:$0xff] }
 0x1bc   :  { %v1466_v36 = vmul.f32 %v1308_v59, %v1308_v59  ;;  %v2144_v2 = vadd.f32 1.0, %v5113_v33  ;;  %v2725_v45 = vpop.eup %2724  ;;  %v1182_v54 = vadd.f32 %v1118_v63, %v286_v49  ;;  %v1309_v9 = vadd.f32 %v1245_v18, %v93_v5 }
 0x1bd   :  { %v1592_v43 = vsub.f32 0.69049937, %v1528_v4  ;;  %v1529_v60 = vmul.f32 12.5, %v1465_v50  ;;  %v1653_v29 = vadd.f32 %v1652_v0, %v1590_v44  ;;  %2335 = vmatprep.subr.bf16.mxu0 %v2334_v1  ;;  %v2147_v27 = vmul.f32 -0.5, %v5113_v33  ;;  %v2138_v1 = vld [vmem:[%s5246_s6] sm:$0x3] }
 0x1be   :  { %v1530_v24 = vmul.f32 12.5, %v1466_v36  ;;  %2337 = vmatpush1.bf16.msra.mxu0 %v2336_v35  ;;  %2728 = vlog2.f32 %v2144_v2  ;;  %v1922_v17 = vmul.f32 %v5006_v13, %v5006_v13  ;;  %v2727_v40 = vpop.eup %2726  ;;  %v1246_v8 = vmul.f32 %v1182_v54, %v5124_v61  ;;  %s2815_s6 = smov [#allocation3]  }
 0x1bf   :  { %v1467_v49 = vmul.f32 %v1309_v9, %v1309_v9  ;;  %v1593_v52 = vsub.f32 0.69049937, %v1529_v60  ;;  %v1654_v32 = vadd.f32 %v1653_v29, %v1591_v26  ;;  %v2049_v12 = vsub.f32 %v1857_v6, %v4808_v31  ;;  %s2243_s18 = sshll.u32 %s2815_s6, 4  ;;  %s2244_s18 = int_to_ptr.vmem [resolvable:$true] %s2243_s18 }
 0x1c0   :  { %v2048_v34 = vsub.f32 %v1856_v39, %v4832_v30  ;;  %v2110_v55 = vadd.f32 %v4989_v25, %v4961_v20  ;;  %v1594_v28 = vsub.f32 0.69049937, %v1530_v24  ;;  %v1310_v35 = vadd.f32 %v1246_v8, %v94_v48  ;;  %s2744_s19 = scalar_lea.vmem %s2244_s18, 256  ;;  %p2749_p1 = scmp.lt.s32.totalorder %s2244_s18, %s2244_s18 }
 0x1c1   :  { %v1531_v13 = vmul.f32 12.5, %v1467_v49  ;;  %v1655_v3 = vadd.f32 %v1654_v32, %v1592_v43  ;;  %v2340_v14 = vpack.c.bf16 %v1309_v9, %v1307_v47  ;;  %v2148_v62 = vadd.f32 1.0, %v2147_v27  ;;  %p2745_p0 = scmp.ne.s32.totalorder %s2244_s18, %s2744_s19  ;;  %p2750_p2 = scmp.lt.s32.totalorder %s2744_s19, %s2744_s19 }
 0x1c2   :  { %v1787_v16 = vmul.f32 0.6931472, %v2725_v45  ;;  %v1789_v46 = vmul.f32 0.6931472, %v2727_v40  ;;  %2730 = vlog2.f32 %v5036_v51  ;;  %v1468_v21 = vmul.f32 %v1310_v35, %v1310_v35 }
 0x1c3   :  { %v1595_v41 = vsub.f32 0.69049937, %v1531_v13  ;;  %v1656_v31 = vadd.f32 %v1655_v3, %v1593_v52  ;;  %v2338_v6 = vpack.c.bf16 %v1310_v35, %v1308_v59  ;;  %v2111_v44 = vadd.f32 %v2110_v55, %v2048_v34  ;;  %p2751_p3 = por %p2750_p2, %p2749_p1 }
 0x1c4   :  { %v2150_v30 = vand.u32 2147483647, %v5113_v33  ;;  %2732 = vlog2.f32 %v5061_v7  ;;  %v1923_v20 = vmul.f32 %v5011_v38, %v5011_v38  ;;  %v1532_v11 = vmul.f32 12.5, %v1468_v21  ;;  %v1319_v7 = vld [vmem:[%s5240_s0] sm:$0xff] }
 0x1c5   :  { %v1657_v39 = vadd.f32 %v1656_v31, %v1594_v28  ;;  %2339 = vmatprep.subr.bf16.mxu0 %v2338_v6  ;;  %v2159_v25 = vlaneseq  ;;  %2734 = vlog2.f32 %v5086_v56  ;;  %v2149_v51 = vmul.f32 %v5113_v33, %v2148_v62  ;;  %p2752_p4 = pnand %p2751_p3, %p2745_p0 }
 0x1c6   :  { %2341 = vmatpush1.bf16.msra.mxu0 %v2340_v14  ;;  %2736 = vlog2.f32 %v5093_v10  ;;  %v1858_v47 = vsub.f32 -0.9189385, %v1787_v16  ;;  %v1859_v5 = vsub.f32 -0.9189385, %v1789_v46  ;;  %v1596_v53 = vsub.f32 0.69049937, %v1532_v11 }
 0x1c7   :  { %v1658_v59 = vadd.f32 %v1657_v39, %v1595_v41  ;;  %2738 = vlog2.f32 %v5111_v37  ;;  %v1986_v38 = vmul.f32 0.5, %v1922_v17  ;;  %v2112_v26 = vadd.f32 %v2111_v44, %v2049_v12 }
 0x1c8   :  { %v2729_v4 = vpop.eup %2728  ;;  %vm2151_vm0 = vcmp.lt.f32.partialorder %v2150_v30, 0.0004427343  ;;  %2740 = vlog2.f32 %v1182_v54  ;;  %v1987_v56 = vmul.f32 0.5, %v1923_v20  ;;  %v2160_v50 = vshrl.u32 %v2159_v25, 7  ;;  %v2136_v54 = vld [vmem:[%s5244_s4] sm:$0x3] }
 0x1c9   :  { %v1659_v18 = vadd.f32 %v1658_v59, %v1596_v53  ;;  %v2146_v33 = vmul.f32 0.6931472, %v2729_v4  ;;  %v1924_v10 = vmul.f32 %v5025_v57, %v5025_v57  ;;  %1386 = vmatmul.mubr.f32.vlgmr.msra.gmra.mrb[0].mxu0 %v1319_v7  ;;  %v2050_v0 = vsub.f32 %v1858_v47, %v1986_v38 }
 0x1ca   :  { %v1925_v63 = vmul.f32 %v5047_v23, %v5047_v23  ;;  %v2051_v36 = vsub.f32 %v1859_v5, %v1987_v56  ;;  %v1926_v45 = vmul.f32 %v5071_v58, %v5071_v58  ;;  %v5172_v9 = vsub.s32 0, %v2160_v50 }
 0x1cb   :  { %1660 = vadd.xlane.f32.xlu0 %v1659_v18  ;;  %v2152_v37 = vsel %vm2151_vm0, %v2149_v51, %v2146_v33  ;;  %v2113_v57 = vadd.f32 %v2112_v26, %v2050_v0  ;;  %v1927_v29 = vmul.f32 %v5080_v42, %v5080_v42  ;;  %v1988_v23 = vmul.f32 0.5, %v1924_v10 }
 0x1cc   :  { %v2731_v43 = vpop.eup %2730  ;;  %v2153_v2 = vadd.f32 %v2152_v37, %v2139_v19  ;;  %v5176_v27 = vsub.s32 1, %v2160_v50  ;;  %v1928_v15 = vmul.f32 %v5103_v22, %v5103_v22  ;;  %v1989_v40 = vmul.f32 0.5, %v1925_v63 }
 0x1cd   :  { %v1791_v60 = vmul.f32 0.6931472, %v2731_v43  ;;  %v2114_v8 = vadd.f32 %v2113_v57, %v2051_v36  ;;  %v1929_v42 = vmul.f32 %v5124_v61, %v5124_v61  ;;  %v1990_v12 = vmul.f32 0.5, %v1926_v45 }
 0x1ce   :  { %v2733_v48 = vpop.eup %2732  ;;  %v2154_v24 = vmul.f32 %v2153_v2, %v2138_v1  ;;  %2742 = vlog2.f32 %v2153_v2  ;;  %v1991_v35 = vmul.f32 0.5, %v1927_v29  ;;  %v1992_v16 = vmul.f32 0.5, %v1928_v15 }
 0x1cf   :  { %v2735_v19 = vpop.eup %2734  ;;  %v1793_v58 = vmul.f32 0.6931472, %v2733_v48  ;;  %v1860_v17 = vsub.f32 -0.9189385, %v1791_v60  ;;  %v1993_v61 = vmul.f32 0.5, %v1929_v42  ;;  %v2208_v25 = vmul.f32 %v2138_v1, %v2138_v1 }
 0x1d0   :  { %v2737_v49 = vpop.eup %2736  ;;  %v5180_v52 = vadd.f32 %v2154_v24, %v2136_v54  ;;  %v1795_v32 = vmul.f32 0.6931472, %v2735_v19  ;;  %vm2188_vm1 = vcmask 1040384   ;;  %vm1401_vm2 = vcmask 0  }
 0x1d1   :  { %v2739_v34 = vpop.eup %2738  ;;  %v1797_v55 = vmul.f32 0.6931472, %v2737_v49  ;;  %v1861_v28 = vsub.f32 -0.9189385, %v1793_v58  ;;  %v2052_v13 = vsub.f32 %v1860_v17, %v1988_v23  ;;  %v2209_v56 = vmul.f32 0.5, %v2208_v25 }
 0x1d2   :  { %v2741_v22 = vpop.eup %2740  ;;  %v2174_v3 = vmul.f32 %v5180_v52, %v5180_v52  ;;  %v1799_v14 = vmul.f32 0.6931472, %v2739_v34  ;;  %v1862_v62 = vsub.f32 -0.9189385, %v1795_v32  ;;  %v2814_v57 = vmov 0.0  }
 0x1d3   :  { %v1801_v46 = vmul.f32 0.6931472, %v2741_v22  ;;  %v1863_v21 = vsub.f32 -0.9189385, %v1797_v55  ;;  %v2053_v41 = vsub.f32 %v1861_v28, %v1989_v40  ;;  %v2115_v31 = vadd.f32 %v2114_v8, %v2052_v13  ;;  %1402 = vst.msk [vmem:[#allocation5] sm:$0x1] %vm1401_vm2, %v2814_v57 }
 0x1d4   :  { %v2175_v6 = vmul.f32 12.5, %v2174_v3  ;;  %v1864_v44 = vsub.f32 -0.9189385, %v1799_v14  ;;  %v2054_v30 = vsub.f32 %v1862_v62, %v1990_v12  ;;  %1403 = vst.msk [vmem:[#allocation7] sm:$0x1] %vm1401_vm2, %v2814_v57 }
 0x1d5   :  { %v1865_v20 = vsub.f32 -0.9189385, %v1801_v46  ;;  %v2055_v11 = vsub.f32 %v1863_v21, %v1991_v35  ;;  %v2116_v39 = vadd.f32 %v2115_v31, %v2053_v41 }
 0x1d6   :  { %v2176_v51 = vsub.f32 0.69049937, %v2175_v6  ;;  %v2056_v47 = vsub.f32 %v1864_v44, %v1992_v16  ;;  %v2162_v44 = vrot.slane %v5180_v52, %v5172_v9 }
 0x1d7   :  { %v2117_v5 = vadd.f32 %v2116_v39, %v2054_v30  ;;  %v2057_v38 = vsub.f32 %v1865_v20, %v1993_v61  ;;  %v2166_v61 = vrot.slane %v5180_v52, %v5176_v27 }
 0x1d8   :  { %v2743_v7 = vpop.eup %2742  ;;  %v2181_v53 = vrot.slane %v2176_v51, %v5172_v9  ;;  %v2185_v59 = vrot.slane %v2176_v51, %v5176_v27 }
 0x1d9   :  { %v2118_v4 = vadd.f32 %v2117_v5, %v2055_v11  ;;  %v2206_v26 = vmul.f32 0.6931472, %v2743_v7 }
 0x1da   :  { %v2189_v18 = vsel %vm2188_vm1, %v2181_v53, 0.0  ;;  %v2190_v33 = vsel %vm2188_vm1, %v2185_v59, 0.0  ;;  %v1404_v41 = vld [vmem:[#allocation5] sm:$0x1] }
 0x1db   :  { %v2191_v50 = vadd.f32 %v2190_v33, %v2189_v18  ;;  %v2119_v10 = vadd.f32 %v2118_v4, %v2056_v47  ;;  %v2207_v0 = vsub.f32 -0.9189385, %v2206_v26 }
 0x1dd   :  { %2192 = vadd.xlane.f32.xlu1 %v2191_v50  ;;  %v2120_v1 = vadd.f32 %v2119_v10, %v2057_v38  ;;  %v2210_v37 = vsub.f32 %v2207_v0, %v2209_v56 }
 0x1df   :  { %2121 = vadd.xlane.f32.xlu0 %v2120_v1  ;;  %v2215_v63 = vrot.slane %v2210_v37, %v5172_v9  ;;  %v2219_v36 = vrot.slane %v2210_v37, %v5176_v27 }
 0x1e1   :  { %v2222_v43 = vsel %vm2188_vm1, %v2215_v63, 0.0  ;;  %v2223_v2 = vsel %vm2188_vm1, %v2219_v36, 0.0 }
 0x1e2   :  { %v2224_v45 = vadd.f32 %v2223_v2, %v2222_v43 }
 0x1e4   :  { %2225 = vadd.xlane.f32.xlu1 %v2224_v45 }
 0x258   :  { %v1661_v54 = vpop.xlane.xlu0 %1660 }
 0x259   :  { %v1662_v60 = vrot.slane %v1661_v54, 4 }
 0x25b   :  { %v1663_v29 = vadd.f32 %v1662_v60, %v1661_v54 }
 0x25d   :  { %v1664_v23 = vrot.slane %v1663_v29, 2 }
 0x25f   :  { %v1665_v48 = vadd.f32 %v1664_v23, %v1663_v29 }
 0x261   :  { %v1666_v24 = vrot.slane %v1665_v48, 1 }
 0x263   :  { %v1667_v15 = vadd.f32 %v1666_v24, %v1665_v48 }
 0x265   :  { %2342 = vpush %v1667_v15 }
 0x26a   :  { %v2193_v19 = vpop.xlane.xlu1 %2192 }
 0x26b   :  { %v2194_v58 = vrot.slane %v2193_v19, 4 }
 0x26c   :  { %v2122_v17 = vpop.xlane.xlu0 %2121 }
 0x26d   :  { %v2195_v40 = vadd.f32 %v2194_v58, %v2193_v19  ;;  %v2123_v8 = vrot.slane %v2122_v17, 4 }
 0x26f   :  { %v2196_v49 = vrot.slane %v2195_v40, 2  ;;  %v2124_v32 = vadd.f32 %v2123_v8, %v2122_v17 }
 0x271   :  { %v2125_v42 = vrot.slane %v2124_v32, 2  ;;  %v2226_v12 = vpop.xlane.xlu1 %2225  ;;  %v2197_v34 = vadd.f32 %v2196_v49, %v2195_v40 }
 0x272   :  { %v2227_v55 = vrot.slane %v2226_v12, 4 }
 0x273   :  { %v2126_v28 = vadd.f32 %v2125_v42, %v2124_v32  ;;  %v2198_v35 = vrot.slane %v2197_v34, 1 }
 0x274   :  { %v2228_v13 = vadd.f32 %v2227_v55, %v2226_v12 }
 0x275   :  { %v2127_v22 = vrot.slane %v2126_v28, 1  ;;  %v2199_v14 = vadd.f32 %v2198_v35, %v2197_v34 }
 0x276   :  { %v2229_v3 = vrot.slane %v2228_v13, 2 }
 0x277   :  { %v2128_v62 = vadd.f32 %v2127_v22, %v2126_v28 }
 0x278   :  { %v2230_v16 = vadd.f32 %v2229_v3, %v2228_v13 }
 0x279   :  { %2344 = vpush %v2128_v62 }
 0x27a   :  { %2346 = vpush %v2199_v14  ;;  %v2231_v46 = vrot.slane %v2230_v16, 1 }
 0x27c   :  { %v2232_v21 = vadd.f32 %v2231_v46, %v2230_v16 }
 0x27e   :  { %2348 = vpush %v2232_v21 }
 0x296   :  { %s2343_s4 = spop %2342 }
 0x297   :  { %v1669_v31 = vstv %s2343_s4 }
 0x298   :  { %v1670_v6 = vadd.f32 %v1669_v31, %v1404_v41 }
 0x29a   :  { %1672 = vst.msk [vmem:[#allocation5] sm:$0x1] %vm1401_vm2, %v1670_v6 }
 0x29c   :  { %v1387_v30 = vpop.f32.mrb[0].mxu0 }
 0x29d   :  { %v2169_v20 = vadd.f32 %v2162_v44, %v1387_v30  ;;  %v1389_v11 = vpop.f32.mrb[1].mxu0 }
 0x29e   :  { %v2170_v39 = vadd.f32 %v2166_v61, %v1389_v11 }
 0x29f   :  { %2171 = vst [vmem:[#allocation3] sm:$0xff] %v2169_v20 }
 0x2a0   :  { %2172 = vst [vmem:[#allocation3 + $0x8] sm:$0xff] %v2170_v39 }
 0x2a1   :  { %2755 = shalt.err (!%p2752_p4)
}
 0x2a2   :  { %s2756_s21 = scalar_lea.hbm %s5247_s7, 256 }
 0x2a3   :  { %p2757_p5 = scmp.ne.s32.totalorder %s5247_s7, %s2756_s21  ;;  %p2760_p6 = scmp.lt.u32.totalorder %s2756_s21, %s5247_s7 }
 0x2a5   :  { %p2762_p7 = pnand %p2760_p6, %p2757_p5 }
 0x2a7   :  { %2765 = shalt.err (!%p2762_p7)
}
 0x2a8   :  { %2246 = dma.vmem_to_hbm [thread:$0]  %s2244_s18, 256, %s5247_s7, [#allocation4]   ;;  %v1673_v9 = vld [vmem:[#allocation7] sm:$0x1]  ;;  %v2173_v27 = vld [vmem:[#allocation5] sm:$0x1] }
 0x2a9   :  { %s2816_s28 = smov [#allocation5]  }
 0x2aa   :  { %s2345_s5 = spop %2344  ;;  %s2253_s29 = sshll.u32 %s2816_s28, 4  ;;  %s2254_s29 = int_to_ptr.vmem [resolvable:$true] %s2253_s29 }
 0x2ab   :  { %v2130_v52 = vstv %s2345_s5  ;;  %s2347_s30 = spop %2346  ;;  %s2766_s10 = scalar_lea.vmem %s2254_s29, 16 }
 0x2ac   :  { %v2131_v25 = vadd.f32 %v2130_v52, %v1673_v9  ;;  %v2201_v51 = vstv %s2347_s30  ;;  %p2767_p8 = scmp.ne.s32.totalorder %s2254_s29, %s2766_s10  ;;  %s2770_s11 = scalar_lea.vmem %s2254_s29, 32 }
 0x2ad   :  { %v2202_v47 = vadd.f32 %v2201_v51, %v2173_v27  ;;  %p2771_p9 = scmp.lt.s32.totalorder %s2254_s29, %s2254_s29  ;;  %p2772_p10 = scmp.lt.s32.totalorder %s2770_s11, %s2766_s10 }
 0x2ae   :  { %2132 = vst.msk [vmem:[#allocation7] sm:$0x1] %vm1401_vm2, %v2131_v25 }
 0x2af   :  { %2203 = vst.msk [vmem:[#allocation5] sm:$0x1] %vm1401_vm2, %v2202_v47  ;;  %p2773_p11 = por %p2772_p10, %p2771_p9 }
 0x2b1   :  { %p2774_p12 = pnand %p2773_p11, %p2767_p8 }
 0x2b3   :  { %2777 = shalt.err (!%p2774_p12)
}
 0x2b4   :  { %s2778_s13 = scalar_lea.hbm %s5248_s8, 16 }
 0x2b5   :  { %p2779_p13 = scmp.ne.s32.totalorder %s5248_s8, %s2778_s13  ;;  %p2782_p0 = scmp.lt.u32.totalorder %s2778_s13, %s5248_s8 }
 0x2b7   :  { %p2784_p1 = pnand %p2782_p0, %p2779_p13 }
 0x2b9   :  { %2787 = shalt.err (!%p2784_p1)
}
 0x2ba   :  { %2256 = dma.vmem_to_hbm [thread:$0]  %s2254_s29, 16, %s5248_s8, [#allocation6]   ;;  %v2204_v5 = vld [vmem:[#allocation7] sm:$0x1] }
 0x2bb   :  { %s2349_s17 = spop %2348  ;;  %s2817_s4 = smov [#allocation7]  }
 0x2bc   :  { %s2263_s6 = sshll.u32 %s2817_s4, 4  ;;  %v2234_v7 = vstv %s2349_s17  ;;  %s2264_s6 = int_to_ptr.vmem [resolvable:$true] %s2263_s6 }
 0x2bd   :  { %v2235_v53 = vadd.f32 %v2234_v7, %v2204_v5  ;;  %s2788_s18 = scalar_lea.vmem %s2264_s6, 16  ;;  %s2792_s19 = scalar_lea.vmem %s2264_s6, 32 }
 0x2be   :  { %p2789_p2 = scmp.ne.s32.totalorder %s2264_s6, %s2788_s18  ;;  %p2793_p3 = scmp.lt.s32.totalorder %s2264_s6, %s2264_s6 }
 0x2bf   :  { %2236 = vst.msk [vmem:[#allocation7] sm:$0x1] %vm1401_vm2, %v2235_v53  ;;  %p2794_p4 = scmp.lt.s32.totalorder %s2792_s19, %s2788_s18 }
 0x2c1   :  { %p2795_p5 = por %p2794_p4, %p2793_p3 }
 0x2c3   :  { %p2796_p6 = pnand %p2795_p5, %p2789_p2 }
 0x2c5   :  { %2799 = shalt.err (!%p2796_p6)
}
 0x2c6   :  { %s2800_s8 = scalar_lea.hbm %s5249_s9, 16 }
 0x2c7   :  { %p2801_p7 = scmp.ne.s32.totalorder %s5249_s9, %s2800_s8  ;;  %p2804_p8 = scmp.lt.u32.totalorder %s2800_s8, %s5249_s9 }
 0x2c9   :  { %p2806_p9 = pnand %p2804_p8, %p2801_p7 }
 0x2cb   :  { %2809 = shalt.err (!%p2806_p9)
}
 0x2cc   :  { %2266 = dma.vmem_to_hbm [thread:$0]  %s2264_s6, 16, %s5249_s9, [#allocation6]  }
 0x2cd   :  { %2810 = dma.done.wait [#allocation4], 256  }
 0x2ce   :  { %2811 = vsyncadd [#allocation4], 4294967040 }
 0x2cf   :  { %2812 = dma.done.wait [#allocation6], 32  }
 0x2d0   :  { %2813 = vsyncadd [#allocation6], 4294967264 }
 0x2d1   :  { %2276 = vsyncpa [#allocation4], 1 }
 0x2d2   :  { %2277 = vsyncpa [#allocation6], 1 }

</bundles_post_ra>
